<compile_context>
chip_gen: v5e
topology: v5e:2x2
jax: 0.10.0
libtpu: 0.0.40
codegen_flags: <defaults>
</compile_context>

<pallas_src>
import functools

import jax
import jax.numpy as jnp
from jax import lax
from jax.experimental import pallas as pl
from jax.experimental.pallas import tpu as pltpu

# ----------------------------- model config ---------------------------------
BATCH = 2
SEQ = 8
INPUT_SIZE = 128       # small stand-in for 256*18*18 (kept lane-aligned)
HIDDEN_SIZE = 128      # small stand-in for 512 (multiple of 128 for alignment)
NUM_LAYERS = 2
OUTPUT_SIZE = 6


# ----------------------------- Pallas kernel ---------------------------------
def fused_lstm_fc_kernel(x_ref, wih1_ref, whh1_ref, b1_ref,
                         wih2_ref, whh2_ref, b2_ref,
                         fcw_ref, fcb_ref, out_ref,
                         gx_sc, h1_sc, *, B, T, H):
    """Fused 2-layer LSTM + FC head.

    gx_sc: (B*T, 4H) VMEM scratch for hoisted gate projections (row = b*T + t),
           reused for both layers.
    h1_sc: (B*T, H)  VMEM scratch for the layer-1 hidden sequence.
    Gate order matches PyTorch: i, f, g, o.  bias = b_ih + b_hh already fused.
    """
    f32 = jnp.float32

    def lstm_cell(gates, c):
        # H is a multiple of 128 -> all slices are lane-aligned.
        i_g = jax.nn.sigmoid(gates[:, 0 * H:1 * H])
        f_g = jax.nn.sigmoid(gates[:, 1 * H:2 * H])
        g_g = jnp.tanh(gates[:, 2 * H:3 * H])
        o_g = jax.nn.sigmoid(gates[:, 3 * H:4 * H])
        c_new = f_g * c + i_g * g_g
        h_new = o_g * jnp.tanh(c_new)
        return h_new, c_new

    def gx_rows(t):
        # Gather the B rows {b*T + t} of the flat gate-projection scratch.
        return jnp.concatenate(
            [gx_sc[pl.ds(b * T + t, 1), :] for b in range(B)], axis=0)

    h0 = jnp.zeros((B, H), f32)
    c0 = jnp.zeros((B, H), f32)

    # ---- layer 1: hoisted input projection (one MXU matmul, M = T*B) --------
    x2d = x_ref[...].reshape(B * T, x_ref.shape[-1])          # free reshape
    gx_sc[...] = (jnp.dot(x2d, wih1_ref[...], preferred_element_type=f32)
                  + b1_ref[...])

    def layer1_step(t, carry):
        h, c = carry
        gates = gx_rows(t) + jnp.dot(h, whh1_ref[...],
                                     preferred_element_type=f32)
        h, c = lstm_cell(gates, c)
        for b in range(B):                                     # B is tiny/static
            h1_sc[pl.ds(b * T + t, 1), :] = h[b:b + 1, :]
        return h, c

    _ = lax.fori_loop(0, T, layer1_step, (h0, c0), unroll=True)

    # ---- layer 2: hoisted projection off the stored layer-1 sequence --------
    gx_sc[...] = (jnp.dot(h1_sc[...], wih2_ref[...], preferred_element_type=f32)
                  + b2_ref[...])

    def layer2_step(t, carry):
        h, c = carry
        gates = gx_rows(t) + jnp.dot(h, whh2_ref[...],
                                     preferred_element_type=f32)
        return lstm_cell(gates, c)

    h2, _ = lax.fori_loop(0, T, layer2_step, (h0, c0), unroll=True)

    # ---- FC head on the last timestep's hidden state ------------------------
    out_ref[...] = (jnp.dot(h2, fcw_ref[...], preferred_element_type=f32)
                    + fcb_ref[...])


# ----------------------------- wrapper ----------------------------------------
def pose_estimation_lstm_forward(x, params):
    """x: (B, T, D) float32 (batch_first) -> (B, OUTPUT_SIZE). h0 = c0 = 0."""
    B, T, D = x.shape
    (wih1, whh1, b1), (wih2, whh2, b2) = params["lstm"]
    H = whh1.shape[0]
    O = params["fc_w_t"].shape[1]

    kernel = functools.partial(fused_lstm_fc_kernel, B=B, T=T, H=H)
    return pl.pallas_call(
        kernel,
        out_shape=jax.ShapeDtypeStruct((B, O), jnp.float32),
        # No grid: everything (weights, x, state) is VMEM-resident; time is an
        # unrolled in-kernel loop. Scratch persists for the whole invocation.
        scratch_shapes=[
            pltpu.VMEM((B * T, 4 * H), jnp.float32),   # gate projections
            pltpu.VMEM((B * T, H), jnp.float32),       # layer-1 hidden sequence
        ],
    )(x, wih1, whh1, b1, wih2, whh2, b2, params["fc_w_t"], params["fc_b"])


# ----------------------------- params / reference ----------------------------
def init_params(key):
    """PyTorch-shaped params, stored pre-transposed (W^T) for x @ W matmuls.

    NOTE: kept f32 so the allclose check against the f32 reference is tight.
    For v6e/v7x production sizes, cast W_ih/W_hh to bf16 (keep f32 accumulate
    and f32 h/c/activations) and relax the validation tolerance.
    """
    params = {"lstm": []}
    bound = HIDDEN_SIZE ** -0.5
    for layer in range(NUM_LAYERS):
        d_in = INPUT_SIZE if layer == 0 else HIDDEN_SIZE
        key, k1, k2, k3, k4 = jax.random.split(key, 5)
        w_ih = jax.random.uniform(k1, (4 * HIDDEN_SIZE, d_in),
                                  minval=-bound, maxval=bound)
        w_hh = jax.random.uniform(k2, (4 * HIDDEN_SIZE, HIDDEN_SIZE),
                                  minval=-bound, maxval=bound)
        b_ih = jax.random.uniform(k3, (4 * HIDDEN_SIZE,),
                                  minval=-bound, maxval=bound)
        b_hh = jax.random.uniform(k4, (4 * HIDDEN_SIZE,),
                                  minval=-bound, maxval=bound)
        params["lstm"].append((
            w_ih.T.astype(jnp.float32),                               # (d_in, 4H)
            w_hh.T.astype(jnp.float32),                               # (H, 4H)
            (b_ih + b_hh).reshape(1, 4 * HIDDEN_SIZE).astype(jnp.float32),
        ))
    key, k5, k6 = jax.random.split(key, 3)
    fc_w = jax.random.uniform(k5, (OUTPUT_SIZE, HIDDEN_SIZE),
                              minval=-bound, maxval=bound)
    fc_b = jax.random.uniform(k6, (OUTPUT_SIZE,), minval=-bound, maxval=bound)
    params["fc_w_t"] = fc_w.T.astype(jnp.float32)                     # (H, O)
    params["fc_b"] = fc_b.reshape(1, OUTPUT_SIZE).astype(jnp.float32)
    return params


def reference_forward(x, params):
    """Pure-JAX reference mirroring torch.nn.LSTM semantics (gate order i,f,g,o)."""
    B = x.shape[0]
    layer_in = x
    for (wih_t, whh_t, b) in params["lstm"]:
        H = whh_t.shape[0]
        h = jnp.zeros((B, H), jnp.float32)
        c = jnp.zeros((B, H), jnp.float32)
        outs = []
        for t in range(layer_in.shape[1]):
            gates = layer_in[:, t, :] @ wih_t + h @ whh_t + b
            i_g = jax.nn.sigmoid(gates[:, 0 * H:1 * H])
            f_g = jax.nn.sigmoid(gates[:, 1 * H:2 * H])
            g_g = jnp.tanh(gates[:, 2 * H:3 * H])
            o_g = jax.nn.sigmoid(gates[:, 3 * H:4 * H])
            c = f_g * c + i_g * g_g
            h = o_g * jnp.tanh(c)
            outs.append(h)
        layer_in = jnp.stack(outs, axis=1)
    return layer_in[:, -1, :] @ params["fc_w_t"] + params["fc_b"]


# ----------------------------- main -------------------------------------------
if __name__ == "__main__":
    key = jax.random.PRNGKey(0)
    key, kx, kp = jax.random.split(key, 3)
    x = jax.random.normal(kx, (BATCH, SEQ, INPUT_SIZE), dtype=jnp.float32)
    params = init_params(kp)

    fwd = jax.jit(pose_estimation_lstm_forward)
    out = jax.block_until_ready(fwd(x, params))

    ref = reference_forward(x, params)
    assert out.shape == (BATCH, OUTPUT_SIZE)
    assert jnp.allclose(out, ref, atol=1e-4, rtol=1e-4), \
        float(jnp.max(jnp.abs(out - ref)))

    print("KERNEL_OK")
</pallas_src>

<mosaic_0001>
module attributes {stable_mosaic.version = 11 : i64} {
  func.func @fused_lstm_fc_kernel(%arg0: memref<2x8x128xf32, #tpu.memory_space<vmem>>, %arg1: memref<128x512xf32, #tpu.memory_space<vmem>>, %arg2: memref<128x512xf32, #tpu.memory_space<vmem>>, %arg3: memref<1x512xf32, #tpu.memory_space<vmem>>, %arg4: memref<128x512xf32, #tpu.memory_space<vmem>>, %arg5: memref<128x512xf32, #tpu.memory_space<vmem>>, %arg6: memref<1x512xf32, #tpu.memory_space<vmem>>, %arg7: memref<128x6xf32, #tpu.memory_space<vmem>>, %arg8: memref<1x6xf32, #tpu.memory_space<vmem>>, %arg9: memref<2x6xf32, #tpu.memory_space<vmem>>, %arg10: memref<16x512xf32, #tpu.memory_space<vmem>>, %arg11: memref<16x128xf32, #tpu.memory_space<vmem>>) attributes {dimension_semantics = [], scalar_prefetch = 0 : i64, scratch_operands = 2 : i64, tpu.core_type = #tpu.core_type<tc>} {
    %cst = arith.constant 0.000000e+00 : f32
    %0 = vector.broadcast %cst : f32 to vector<2x128xf32>
    %cst_0 = arith.constant 0.000000e+00 : f32
    %1 = vector.broadcast %cst_0 : f32 to vector<2x128xf32>
    %c0 = arith.constant 0 : index
    %c0_1 = arith.constant 0 : index
    %c0_2 = arith.constant 0 : index
    %2 = vector.load %arg0[%c0, %c0_1, %c0_2] : memref<2x8x128xf32, #tpu.memory_space<vmem>>, vector<2x8x128xf32>
    %3 = vector.shape_cast %2 : vector<2x8x128xf32> to vector<16x128xf32>
    %c0_3 = arith.constant 0 : index
    %c0_4 = arith.constant 0 : index
    %4 = vector.load %arg1[%c0_3, %c0_4] : memref<128x512xf32, #tpu.memory_space<vmem>>, vector<128x512xf32>
    %cst_5 = arith.constant dense<0.000000e+00> : vector<16x512xf32>
    %5 = tpu.matmul %3, %4, %cst_5 {dimension_numbers = #tpu.dot_dimension_numbers<[1], [0], [0], [1], [0, 0, 1, 1], [], []>} : vector<16x128xf32>, vector<128x512xf32>, vector<16x512xf32> -> vector<16x512xf32>
    %c0_6 = arith.constant 0 : index
    %c0_7 = arith.constant 0 : index
    %6 = vector.load %arg3[%c0_6, %c0_7] : memref<1x512xf32, #tpu.memory_space<vmem>>, vector<1x512xf32>
    %7 = vector.broadcast %6 : vector<1x512xf32> to vector<16x512xf32>
    %8 = arith.addf %5, %7 : vector<16x512xf32>
    %c0_8 = arith.constant 0 : index
    %c0_9 = arith.constant 0 : index
    %9 = vector.load %arg10[%c0_8, %c0_9] : memref<16x512xf32, #tpu.memory_space<vmem>>, vector<16x512xf32>
    tpu.vector_store %arg10[%c0_8, %c0_9], %8 {strides = array<i32>} : memref<16x512xf32, #tpu.memory_space<vmem>>, vector<16x512xf32>,
    %c0_i32 = arith.constant 0 : i32
    %c0_i32_10 = arith.constant 0 : i32
    %10 = arith.addi %c0_i32_10, %c0_i32 : i32
    %11 = arith.index_cast %10 : i32 to index
    %c0_11 = arith.constant 0 : index
    %12 = vector.load %arg10[%11, %c0_11] : memref<16x512xf32, #tpu.memory_space<vmem>>, vector<1x512xf32>
    %c8_i32 = arith.constant 8 : i32
    %13 = arith.addi %c8_i32, %c0_i32 : i32
    %14 = arith.index_cast %13 : i32 to index
    %c0_12 = arith.constant 0 : index
    %15 = vector.load %arg10[%14, %c0_12] : memref<16x512xf32, #tpu.memory_space<vmem>>, vector<1x512xf32>
    %16 = tpu.concatenate %12, %15 in 0 : vector<1x512xf32>, vector<1x512xf32> -> vector<2x512xf32>
    %c0_13 = arith.constant 0 : index
    %c0_14 = arith.constant 0 : index
    %17 = vector.load %arg2[%c0_13, %c0_14] : memref<128x512xf32, #tpu.memory_space<vmem>>, vector<128x512xf32>
    %cst_15 = arith.constant dense<0.000000e+00> : vector<2x512xf32>
    %18 = tpu.matmul %0, %17, %cst_15 {dimension_numbers = #tpu.dot_dimension_numbers<[1], [0], [0], [1], [0, 0, 1, 1], [], []>} : vector<2x128xf32>, vector<128x512xf32>, vector<2x512xf32> -> vector<2x512xf32>
    %19 = arith.addf %16, %18 : vector<2x512xf32>
    %20 = vector.extract_strided_slice %19 {offsets = [0, 0], sizes = [2, 128], strides = [1, 1]} : vector<2x512xf32> to vector<2x128xf32>
    %21 = arith.negf %20 : vector<2x128xf32>
    %22 = math.exp %21 : vector<2x128xf32>
    %cst_16 = arith.constant 1.000000e+00 : f32
    %23 = vector.broadcast %cst_16 : f32 to vector<2x128xf32>
    %24 = arith.addf %23, %22 : vector<2x128xf32>
    %25 = arith.divf %23, %24 : vector<2x128xf32>
    %26 = vector.extract_strided_slice %19 {offsets = [0, 128], sizes = [2, 128], strides = [1, 1]} : vector<2x512xf32> to vector<2x128xf32>
    %27 = arith.negf %26 : vector<2x128xf32>
    %28 = math.exp %27 : vector<2x128xf32>
    %cst_17 = arith.constant 1.000000e+00 : f32
    %29 = vector.broadcast %cst_17 : f32 to vector<2x128xf32>
    %30 = arith.addf %29, %28 : vector<2x128xf32>
    %31 = arith.divf %29, %30 : vector<2x128xf32>
    %32 = vector.extract_strided_slice %19 {offsets = [0, 256], sizes = [2, 128], strides = [1, 1]} : vector<2x512xf32> to vector<2x128xf32>
    %33 = math.tanh %32 : vector<2x128xf32>
    %34 = vector.extract_strided_slice %19 {offsets = [0, 384], sizes = [2, 128], strides = [1, 1]} : vector<2x512xf32> to vector<2x128xf32>
    %35 = arith.negf %34 : vector<2x128xf32>
    %36 = math.exp %35 : vector<2x128xf32>
    %cst_18 = arith.constant 1.000000e+00 : f32
    %37 = vector.broadcast %cst_18 : f32 to vector<2x128xf32>
    %38 = arith.addf %37, %36 : vector<2x128xf32>
    %39 = arith.divf %37, %38 : vector<2x128xf32>
    %40 = arith.mulf %31, %1 : vector<2x128xf32>
    %41 = arith.mulf %25, %33 : vector<2x128xf32>
    %42 = arith.addf %40, %41 : vector<2x128xf32>
    %43 = math.tanh %42 : vector<2x128xf32>
    %44 = arith.mulf %39, %43 : vector<2x128xf32>
    %45 = vector.extract_strided_slice %44 {offsets = [0, 0], sizes = [1, 128], strides = [1, 1]} : vector<2x128xf32> to vector<1x128xf32>
    %c0_i32_19 = arith.constant 0 : i32
    %46 = arith.addi %c0_i32_19, %c0_i32 : i32
    %47 = arith.index_cast %46 : i32 to index
    %c0_20 = arith.constant 0 : index
    %48 = vector.load %arg11[%47, %c0_20] : memref<16x128xf32, #tpu.memory_space<vmem>>, vector<1x128xf32>
    tpu.vector_store %arg11[%47, %c0_20], %45 {strides = array<i32>} : memref<16x128xf32, #tpu.memory_space<vmem>>, vector<1x128xf32>,
    %49 = vector.extract_strided_slice %44 {offsets = [1, 0], sizes = [1, 128], strides = [1, 1]} : vector<2x128xf32> to vector<1x128xf32>
    %c8_i32_21 = arith.constant 8 : i32
    %50 = arith.addi %c8_i32_21, %c0_i32 : i32
    %51 = arith.index_cast %50 : i32 to index
    %c0_22 = arith.constant 0 : index
    %52 = vector.load %arg11[%51, %c0_22] : memref<16x128xf32, #tpu.memory_space<vmem>>, vector<1x128xf32>
    tpu.vector_store %arg11[%51, %c0_22], %49 {strides = array<i32>} : memref<16x128xf32, #tpu.memory_space<vmem>>, vector<1x128xf32>,
    %c1_i32 = arith.constant 1 : i32
    %c0_i32_23 = arith.constant 0 : i32
    %53 = arith.addi %c0_i32_23, %c1_i32 : i32
    %54 = arith.index_cast %53 : i32 to index
    %c0_24 = arith.constant 0 : index
    %55 = vector.load %arg10[%54, %c0_24] : memref<16x512xf32, #tpu.memory_space<vmem>>, vector<1x512xf32>
    %c8_i32_25 = arith.constant 8 : i32
    %56 = arith.addi %c8_i32_25, %c1_i32 : i32
    %57 = arith.index_cast %56 : i32 to index
    %c0_26 = arith.constant 0 : index
    %58 = vector.load %arg10[%57, %c0_26] : memref<16x512xf32, #tpu.memory_space<vmem>>, vector<1x512xf32>
    %59 = tpu.concatenate %55, %58 in 0 : vector<1x512xf32>, vector<1x512xf32> -> vector<2x512xf32>
    %c0_27 = arith.constant 0 : index
    %c0_28 = arith.constant 0 : index
    %60 = vector.load %arg2[%c0_27, %c0_28] : memref<128x512xf32, #tpu.memory_space<vmem>>, vector<128x512xf32>
    %cst_29 = arith.constant dense<0.000000e+00> : vector<2x512xf32>
    %61 = tpu.matmul %44, %60, %cst_29 {dimension_numbers = #tpu.dot_dimension_numbers<[1], [0], [0], [1], [0, 0, 1, 1], [], []>} : vector<2x128xf32>, vector<128x512xf32>, vector<2x512xf32> -> vector<2x512xf32>
    %62 = arith.addf %59, %61 : vector<2x512xf32>
    %63 = vector.extract_strided_slice %62 {offsets = [0, 0], sizes = [2, 128], strides = [1, 1]} : vector<2x512xf32> to vector<2x128xf32>
    %64 = arith.negf %63 : vector<2x128xf32>
    %65 = math.exp %64 : vector<2x128xf32>
    %cst_30 = arith.constant 1.000000e+00 : f32
    %66 = vector.broadcast %cst_30 : f32 to vector<2x128xf32>
    %67 = arith.addf %66, %65 : vector<2x128xf32>
    %68 = arith.divf %66, %67 : vector<2x128xf32>
    %69 = vector.extract_strided_slice %62 {offsets = [0, 128], sizes = [2, 128], strides = [1, 1]} : vector<2x512xf32> to vector<2x128xf32>
    %70 = arith.negf %69 : vector<2x128xf32>
    %71 = math.exp %70 : vector<2x128xf32>
    %cst_31 = arith.constant 1.000000e+00 : f32
    %72 = vector.broadcast %cst_31 : f32 to vector<2x128xf32>
    %73 = arith.addf %72, %71 : vector<2x128xf32>
    %74 = arith.divf %72, %73 : vector<2x128xf32>
    %75 = vector.extract_strided_slice %62 {offsets = [0, 256], sizes = [2, 128], strides = [1, 1]} : vector<2x512xf32> to vector<2x128xf32>
    %76 = math.tanh %75 : vector<2x128xf32>
    %77 = vector.extract_strided_slice %62 {offsets = [0, 384], sizes = [2, 128], strides = [1, 1]} : vector<2x512xf32> to vector<2x128xf32>
    %78 = arith.negf %77 : vector<2x128xf32>
    %79 = math.exp %78 : vector<2x128xf32>
    %cst_32 = arith.constant 1.000000e+00 : f32
    %80 = vector.broadcast %cst_32 : f32 to vector<2x128xf32>
    %81 = arith.addf %80, %79 : vector<2x128xf32>
    %82 = arith.divf %80, %81 : vector<2x128xf32>
    %83 = arith.mulf %74, %42 : vector<2x128xf32>
    %84 = arith.mulf %68, %76 : vector<2x128xf32>
    %85 = arith.addf %83, %84 : vector<2x128xf32>
    %86 = math.tanh %85 : vector<2x128xf32>
    %87 = arith.mulf %82, %86 : vector<2x128xf32>
    %88 = vector.extract_strided_slice %87 {offsets = [0, 0], sizes = [1, 128], strides = [1, 1]} : vector<2x128xf32> to vector<1x128xf32>
    %c0_i32_33 = arith.constant 0 : i32
    %89 = arith.addi %c0_i32_33, %c1_i32 : i32
    %90 = arith.index_cast %89 : i32 to index
    %c0_34 = arith.constant 0 : index
    %91 = vector.load %arg11[%90, %c0_34] : memref<16x128xf32, #tpu.memory_space<vmem>>, vector<1x128xf32>
    tpu.vector_store %arg11[%90, %c0_34], %88 {strides = array<i32>} : memref<16x128xf32, #tpu.memory_space<vmem>>, vector<1x128xf32>,
    %92 = vector.extract_strided_slice %87 {offsets = [1, 0], sizes = [1, 128], strides = [1, 1]} : vector<2x128xf32> to vector<1x128xf32>
    %c8_i32_35 = arith.constant 8 : i32
    %93 = arith.addi %c8_i32_35, %c1_i32 : i32
    %94 = arith.index_cast %93 : i32 to index
    %c0_36 = arith.constant 0 : index
    %95 = vector.load %arg11[%94, %c0_36] : memref<16x128xf32, #tpu.memory_space<vmem>>, vector<1x128xf32>
    tpu.vector_store %arg11[%94, %c0_36], %92 {strides = array<i32>} : memref<16x128xf32, #tpu.memory_space<vmem>>, vector<1x128xf32>,
    %c2_i32 = arith.constant 2 : i32
    %c0_i32_37 = arith.constant 0 : i32
    %96 = arith.addi %c0_i32_37, %c2_i32 : i32
    %97 = arith.index_cast %96 : i32 to index
    %c0_38 = arith.constant 0 : index
    %98 = vector.load %arg10[%97, %c0_38] : memref<16x512xf32, #tpu.memory_space<vmem>>, vector<1x512xf32>
    %c8_i32_39 = arith.constant 8 : i32
    %99 = arith.addi %c8_i32_39, %c2_i32 : i32
    %100 = arith.index_cast %99 : i32 to index
    %c0_40 = arith.constant 0 : index
    %101 = vector.load %arg10[%100, %c0_40] : memref<16x512xf32, #tpu.memory_space<vmem>>, vector<1x512xf32>
    %102 = tpu.concatenate %98, %101 in 0 : vector<1x512xf32>, vector<1x512xf32> -> vector<2x512xf32>
    %c0_41 = arith.constant 0 : index
    %c0_42 = arith.constant 0 : index
    %103 = vector.load %arg2[%c0_41, %c0_42] : memref<128x512xf32, #tpu.memory_space<vmem>>, vector<128x512xf32>
    %cst_43 = arith.constant dense<0.000000e+00> : vector<2x512xf32>
    %104 = tpu.matmul %87, %103, %cst_43 {dimension_numbers = #tpu.dot_dimension_numbers<[1], [0], [0], [1], [0, 0, 1, 1], [], []>} : vector<2x128xf32>, vector<128x512xf32>, vector<2x512xf32> -> vector<2x512xf32>
    %105 = arith.addf %102, %104 : vector<2x512xf32>
    %106 = vector.extract_strided_slice %105 {offsets = [0, 0], sizes = [2, 128], strides = [1, 1]} : vector<2x512xf32> to vector<2x128xf32>
    %107 = arith.negf %106 : vector<2x128xf32>
    %108 = math.exp %107 : vector<2x128xf32>
    %cst_44 = arith.constant 1.000000e+00 : f32
    %109 = vector.broadcast %cst_44 : f32 to vector<2x128xf32>
    %110 = arith.addf %109, %108 : vector<2x128xf32>
    %111 = arith.divf %109, %110 : vector<2x128xf32>
    %112 = vector.extract_strided_slice %105 {offsets = [0, 128], sizes = [2, 128], strides = [1, 1]} : vector<2x512xf32> to vector<2x128xf32>
    %113 = arith.negf %112 : vector<2x128xf32>
    %114 = math.exp %113 : vector<2x128xf32>
    %cst_45 = arith.constant 1.000000e+00 : f32
    %115 = vector.broadcast %cst_45 : f32 to vector<2x128xf32>
    %116 = arith.addf %115, %114 : vector<2x128xf32>
    %117 = arith.divf %115, %116 : vector<2x128xf32>
    %118 = vector.extract_strided_slice %105 {offsets = [0, 256], sizes = [2, 128], strides = [1, 1]} : vector<2x512xf32> to vector<2x128xf32>
    %119 = math.tanh %118 : vector<2x128xf32>
    %120 = vector.extract_strided_slice %105 {offsets = [0, 384], sizes = [2, 128], strides = [1, 1]} : vector<2x512xf32> to vector<2x128xf32>
    %121 = arith.negf %120 : vector<2x128xf32>
    %122 = math.exp %121 : vector<2x128xf32>
    %cst_46 = arith.constant 1.000000e+00 : f32
    %123 = vector.broadcast %cst_46 : f32 to vector<2x128xf32>
    %124 = arith.addf %123, %122 : vector<2x128xf32>
    %125 = arith.divf %123, %124 : vector<2x128xf32>
    %126 = arith.mulf %117, %85 : vector<2x128xf32>
    %127 = arith.mulf %111, %119 : vector<2x128xf32>
    %128 = arith.addf %126, %127 : vector<2x128xf32>
    %129 = math.tanh %128 : vector<2x128xf32>
    %130 = arith.mulf %125, %129 : vector<2x128xf32>
    %131 = vector.extract_strided_slice %130 {offsets = [0, 0], sizes = [1, 128], strides = [1, 1]} : vector<2x128xf32> to vector<1x128xf32>
    %c0_i32_47 = arith.constant 0 : i32
    %132 = arith.addi %c0_i32_47, %c2_i32 : i32
    %133 = arith.index_cast %132 : i32 to index
    %c0_48 = arith.constant 0 : index
    %134 = vector.load %arg11[%133, %c0_48] : memref<16x128xf32, #tpu.memory_space<vmem>>, vector<1x128xf32>
    tpu.vector_store %arg11[%133, %c0_48], %131 {strides = array<i32>} : memref<16x128xf32, #tpu.memory_space<vmem>>, vector<1x128xf32>,
    %135 = vector.extract_strided_slice %130 {offsets = [1, 0], sizes = [1, 128], strides = [1, 1]} : vector<2x128xf32> to vector<1x128xf32>
    %c8_i32_49 = arith.constant 8 : i32
    %136 = arith.addi %c8_i32_49, %c2_i32 : i32
    %137 = arith.index_cast %136 : i32 to index
    %c0_50 = arith.constant 0 : index
    %138 = vector.load %arg11[%137, %c0_50] : memref<16x128xf32, #tpu.memory_space<vmem>>, vector<1x128xf32>
    tpu.vector_store %arg11[%137, %c0_50], %135 {strides = array<i32>} : memref<16x128xf32, #tpu.memory_space<vmem>>, vector<1x128xf32>,
    %c3_i32 = arith.constant 3 : i32
    %c0_i32_51 = arith.constant 0 : i32
    %139 = arith.addi %c0_i32_51, %c3_i32 : i32
    %140 = arith.index_cast %139 : i32 to index
    %c0_52 = arith.constant 0 : index
    %141 = vector.load %arg10[%140, %c0_52] : memref<16x512xf32, #tpu.memory_space<vmem>>, vector<1x512xf32>
    %c8_i32_53 = arith.constant 8 : i32
    %142 = arith.addi %c8_i32_53, %c3_i32 : i32
    %143 = arith.index_cast %142 : i32 to index
    %c0_54 = arith.constant 0 : index
    %144 = vector.load %arg10[%143, %c0_54] : memref<16x512xf32, #tpu.memory_space<vmem>>, vector<1x512xf32>
    %145 = tpu.concatenate %141, %144 in 0 : vector<1x512xf32>, vector<1x512xf32> -> vector<2x512xf32>
    %c0_55 = arith.constant 0 : index
    %c0_56 = arith.constant 0 : index
    %146 = vector.load %arg2[%c0_55, %c0_56] : memref<128x512xf32, #tpu.memory_space<vmem>>, vector<128x512xf32>
    %cst_57 = arith.constant dense<0.000000e+00> : vector<2x512xf32>
    %147 = tpu.matmul %130, %146, %cst_57 {dimension_numbers = #tpu.dot_dimension_numbers<[1], [0], [0], [1], [0, 0, 1, 1], [], []>} : vector<2x128xf32>, vector<128x512xf32>, vector<2x512xf32> -> vector<2x512xf32>
    %148 = arith.addf %145, %147 : vector<2x512xf32>
    %149 = vector.extract_strided_slice %148 {offsets = [0, 0], sizes = [2, 128], strides = [1, 1]} : vector<2x512xf32> to vector<2x128xf32>
    %150 = arith.negf %149 : vector<2x128xf32>
    %151 = math.exp %150 : vector<2x128xf32>
    %cst_58 = arith.constant 1.000000e+00 : f32
    %152 = vector.broadcast %cst_58 : f32 to vector<2x128xf32>
    %153 = arith.addf %152, %151 : vector<2x128xf32>
    %154 = arith.divf %152, %153 : vector<2x128xf32>
    %155 = vector.extract_strided_slice %148 {offsets = [0, 128], sizes = [2, 128], strides = [1, 1]} : vector<2x512xf32> to vector<2x128xf32>
    %156 = arith.negf %155 : vector<2x128xf32>
    %157 = math.exp %156 : vector<2x128xf32>
    %cst_59 = arith.constant 1.000000e+00 : f32
    %158 = vector.broadcast %cst_59 : f32 to vector<2x128xf32>
    %159 = arith.addf %158, %157 : vector<2x128xf32>
    %160 = arith.divf %158, %159 : vector<2x128xf32>
    %161 = vector.extract_strided_slice %148 {offsets = [0, 256], sizes = [2, 128], strides = [1, 1]} : vector<2x512xf32> to vector<2x128xf32>
    %162 = math.tanh %161 : vector<2x128xf32>
    %163 = vector.extract_strided_slice %148 {offsets = [0, 384], sizes = [2, 128], strides = [1, 1]} : vector<2x512xf32> to vector<2x128xf32>
    %164 = arith.negf %163 : vector<2x128xf32>
    %165 = math.exp %164 : vector<2x128xf32>
    %cst_60 = arith.constant 1.000000e+00 : f32
    %166 = vector.broadcast %cst_60 : f32 to vector<2x128xf32>
    %167 = arith.addf %166, %165 : vector<2x128xf32>
    %168 = arith.divf %166, %167 : vector<2x128xf32>
    %169 = arith.mulf %160, %128 : vector<2x128xf32>
    %170 = arith.mulf %154, %162 : vector<2x128xf32>
    %171 = arith.addf %169, %170 : vector<2x128xf32>
    %172 = math.tanh %171 : vector<2x128xf32>
    %173 = arith.mulf %168, %172 : vector<2x128xf32>
    %174 = vector.extract_strided_slice %173 {offsets = [0, 0], sizes = [1, 128], strides = [1, 1]} : vector<2x128xf32> to vector<1x128xf32>
    %c0_i32_61 = arith.constant 0 : i32
    %175 = arith.addi %c0_i32_61, %c3_i32 : i32
    %176 = arith.index_cast %175 : i32 to index
    %c0_62 = arith.constant 0 : index
    %177 = vector.load %arg11[%176, %c0_62] : memref<16x128xf32, #tpu.memory_space<vmem>>, vector<1x128xf32>
    tpu.vector_store %arg11[%176, %c0_62], %174 {strides = array<i32>} : memref<16x128xf32, #tpu.memory_space<vmem>>, vector<1x128xf32>,
    %178 = vector.extract_strided_slice %173 {offsets = [1, 0], sizes = [1, 128], strides = [1, 1]} : vector<2x128xf32> to vector<1x128xf32>
    %c8_i32_63 = arith.constant 8 : i32
    %179 = arith.addi %c8_i32_63, %c3_i32 : i32
    %180 = arith.index_cast %179 : i32 to index
    %c0_64 = arith.constant 0 : index
    %181 = vector.load %arg11[%180, %c0_64] : memref<16x128xf32, #tpu.memory_space<vmem>>, vector<1x128xf32>
    tpu.vector_store %arg11[%180, %c0_64], %178 {strides = array<i32>} : memref<16x128xf32, #tpu.memory_space<vmem>>, vector<1x128xf32>,
    %c4_i32 = arith.constant 4 : i32
    %c0_i32_65 = arith.constant 0 : i32
    %182 = arith.addi %c0_i32_65, %c4_i32 : i32
    %183 = arith.index_cast %182 : i32 to index
    %c0_66 = arith.constant 0 : index
    %184 = vector.load %arg10[%183, %c0_66] : memref<16x512xf32, #tpu.memory_space<vmem>>, vector<1x512xf32>
    %c8_i32_67 = arith.constant 8 : i32
    %185 = arith.addi %c8_i32_67, %c4_i32 : i32
    %186 = arith.index_cast %185 : i32 to index
    %c0_68 = arith.constant 0 : index
    %187 = vector.load %arg10[%186, %c0_68] : memref<16x512xf32, #tpu.memory_space<vmem>>, vector<1x512xf32>
    %188 = tpu.concatenate %184, %187 in 0 : vector<1x512xf32>, vector<1x512xf32> -> vector<2x512xf32>
    %c0_69 = arith.constant 0 : index
    %c0_70 = arith.constant 0 : index
    %189 = vector.load %arg2[%c0_69, %c0_70] : memref<128x512xf32, #tpu.memory_space<vmem>>, vector<128x512xf32>
    %cst_71 = arith.constant dense<0.000000e+00> : vector<2x512xf32>
    %190 = tpu.matmul %173, %189, %cst_71 {dimension_numbers = #tpu.dot_dimension_numbers<[1], [0], [0], [1], [0, 0, 1, 1], [], []>} : vector<2x128xf32>, vector<128x512xf32>, vector<2x512xf32> -> vector<2x512xf32>
    %191 = arith.addf %188, %190 : vector<2x512xf32>
    %192 = vector.extract_strided_slice %191 {offsets = [0, 0], sizes = [2, 128], strides = [1, 1]} : vector<2x512xf32> to vector<2x128xf32>
    %193 = arith.negf %192 : vector<2x128xf32>
    %194 = math.exp %193 : vector<2x128xf32>
    %cst_72 = arith.constant 1.000000e+00 : f32
    %195 = vector.broadcast %cst_72 : f32 to vector<2x128xf32>
    %196 = arith.addf %195, %194 : vector<2x128xf32>
    %197 = arith.divf %195, %196 : vector<2x128xf32>
    %198 = vector.extract_strided_slice %191 {offsets = [0, 128], sizes = [2, 128], strides = [1, 1]} : vector<2x512xf32> to vector<2x128xf32>
    %199 = arith.negf %198 : vector<2x128xf32>
    %200 = math.exp %199 : vector<2x128xf32>
    %cst_73 = arith.constant 1.000000e+00 : f32
    %201 = vector.broadcast %cst_73 : f32 to vector<2x128xf32>
    %202 = arith.addf %201, %200 : vector<2x128xf32>
    %203 = arith.divf %201, %202 : vector<2x128xf32>
    %204 = vector.extract_strided_slice %191 {offsets = [0, 256], sizes = [2, 128], strides = [1, 1]} : vector<2x512xf32> to vector<2x128xf32>
    %205 = math.tanh %204 : vector<2x128xf32>
    %206 = vector.extract_strided_slice %191 {offsets = [0, 384], sizes = [2, 128], strides = [1, 1]} : vector<2x512xf32> to vector<2x128xf32>
    %207 = arith.negf %206 : vector<2x128xf32>
    %208 = math.exp %207 : vector<2x128xf32>
    %cst_74 = arith.constant 1.000000e+00 : f32
    %209 = vector.broadcast %cst_74 : f32 to vector<2x128xf32>
    %210 = arith.addf %209, %208 : vector<2x128xf32>
    %211 = arith.divf %209, %210 : vector<2x128xf32>
    %212 = arith.mulf %203, %171 : vector<2x128xf32>
    %213 = arith.mulf %197, %205 : vector<2x128xf32>
    %214 = arith.addf %212, %213 : vector<2x128xf32>
    %215 = math.tanh %214 : vector<2x128xf32>
    %216 = arith.mulf %211, %215 : vector<2x128xf32>
    %217 = vector.extract_strided_slice %216 {offsets = [0, 0], sizes = [1, 128], strides = [1, 1]} : vector<2x128xf32> to vector<1x128xf32>
    %c0_i32_75 = arith.constant 0 : i32
    %218 = arith.addi %c0_i32_75, %c4_i32 : i32
    %219 = arith.index_cast %218 : i32 to index
    %c0_76 = arith.constant 0 : index
    %220 = vector.load %arg11[%219, %c0_76] : memref<16x128xf32, #tpu.memory_space<vmem>>, vector<1x128xf32>
    tpu.vector_store %arg11[%219, %c0_76], %217 {strides = array<i32>} : memref<16x128xf32, #tpu.memory_space<vmem>>, vector<1x128xf32>,
    %221 = vector.extract_strided_slice %216 {offsets = [1, 0], sizes = [1, 128], strides = [1, 1]} : vector<2x128xf32> to vector<1x128xf32>
    %c8_i32_77 = arith.constant 8 : i32
    %222 = arith.addi %c8_i32_77, %c4_i32 : i32
    %223 = arith.index_cast %222 : i32 to index
    %c0_78 = arith.constant 0 : index
    %224 = vector.load %arg11[%223, %c0_78] : memref<16x128xf32, #tpu.memory_space<vmem>>, vector<1x128xf32>
    tpu.vector_store %arg11[%223, %c0_78], %221 {strides = array<i32>} : memref<16x128xf32, #tpu.memory_space<vmem>>, vector<1x128xf32>,
    %c5_i32 = arith.constant 5 : i32
    %c0_i32_79 = arith.constant 0 : i32
    %225 = arith.addi %c0_i32_79, %c5_i32 : i32
    %226 = arith.index_cast %225 : i32 to index
    %c0_80 = arith.constant 0 : index
    %227 = vector.load %arg10[%226, %c0_80] : memref<16x512xf32, #tpu.memory_space<vmem>>, vector<1x512xf32>
    %c8_i32_81 = arith.constant 8 : i32
    %228 = arith.addi %c8_i32_81, %c5_i32 : i32
    %229 = arith.index_cast %228 : i32 to index
    %c0_82 = arith.constant 0 : index
    %230 = vector.load %arg10[%229, %c0_82] : memref<16x512xf32, #tpu.memory_space<vmem>>, vector<1x512xf32>
    %231 = tpu.concatenate %227, %230 in 0 : vector<1x512xf32>, vector<1x512xf32> -> vector<2x512xf32>
    %c0_83 = arith.constant 0 : index
    %c0_84 = arith.constant 0 : index
    %232 = vector.load %arg2[%c0_83, %c0_84] : memref<128x512xf32, #tpu.memory_space<vmem>>, vector<128x512xf32>
    %cst_85 = arith.constant dense<0.000000e+00> : vector<2x512xf32>
    %233 = tpu.matmul %216, %232, %cst_85 {dimension_numbers = #tpu.dot_dimension_numbers<[1], [0], [0], [1], [0, 0, 1, 1], [], []>} : vector<2x128xf32>, vector<128x512xf32>, vector<2x512xf32> -> vector<2x512xf32>
    %234 = arith.addf %231, %233 : vector<2x512xf32>
    %235 = vector.extract_strided_slice %234 {offsets = [0, 0], sizes = [2, 128], strides = [1, 1]} : vector<2x512xf32> to vector<2x128xf32>
    %236 = arith.negf %235 : vector<2x128xf32>
    %237 = math.exp %236 : vector<2x128xf32>
    %cst_86 = arith.constant 1.000000e+00 : f32
    %238 = vector.broadcast %cst_86 : f32 to vector<2x128xf32>
    %239 = arith.addf %238, %237 : vector<2x128xf32>
    %240 = arith.divf %238, %239 : vector<2x128xf32>
    %241 = vector.extract_strided_slice %234 {offsets = [0, 128], sizes = [2, 128], strides = [1, 1]} : vector<2x512xf32> to vector<2x128xf32>
    %242 = arith.negf %241 : vector<2x128xf32>
    %243 = math.exp %242 : vector<2x128xf32>
    %cst_87 = arith.constant 1.000000e+00 : f32
    %244 = vector.broadcast %cst_87 : f32 to vector<2x128xf32>
    %245 = arith.addf %244, %243 : vector<2x128xf32>
    %246 = arith.divf %244, %245 : vector<2x128xf32>
    %247 = vector.extract_strided_slice %234 {offsets = [0, 256], sizes = [2, 128], strides = [1, 1]} : vector<2x512xf32> to vector<2x128xf32>
    %248 = math.tanh %247 : vector<2x128xf32>
    %249 = vector.extract_strided_slice %234 {offsets = [0, 384], sizes = [2, 128], strides = [1, 1]} : vector<2x512xf32> to vector<2x128xf32>
    %250 = arith.negf %249 : vector<2x128xf32>
    %251 = math.exp %250 : vector<2x128xf32>
    %cst_88 = arith.constant 1.000000e+00 : f32
    %252 = vector.broadcast %cst_88 : f32 to vector<2x128xf32>
    %253 = arith.addf %252, %251 : vector<2x128xf32>
    %254 = arith.divf %252, %253 : vector<2x128xf32>
    %255 = arith.mulf %246, %214 : vector<2x128xf32>
    %256 = arith.mulf %240, %248 : vector<2x128xf32>
    %257 = arith.addf %255, %256 : vector<2x128xf32>
    %258 = math.tanh %257 : vector<2x128xf32>
    %259 = arith.mulf %254, %258 : vector<2x128xf32>
    %260 = vector.extract_strided_slice %259 {offsets = [0, 0], sizes = [1, 128], strides = [1, 1]} : vector<2x128xf32> to vector<1x128xf32>
    %c0_i32_89 = arith.constant 0 : i32
    %261 = arith.addi %c0_i32_89, %c5_i32 : i32
    %262 = arith.index_cast %261 : i32 to index
    %c0_90 = arith.constant 0 : index
    %263 = vector.load %arg11[%262, %c0_90] : memref<16x128xf32, #tpu.memory_space<vmem>>, vector<1x128xf32>
    tpu.vector_store %arg11[%262, %c0_90], %260 {strides = array<i32>} : memref<16x128xf32, #tpu.memory_space<vmem>>, vector<1x128xf32>,
    %264 = vector.extract_strided_slice %259 {offsets = [1, 0], sizes = [1, 128], strides = [1, 1]} : vector<2x128xf32> to vector<1x128xf32>
    %c8_i32_91 = arith.constant 8 : i32
    %265 = arith.addi %c8_i32_91, %c5_i32 : i32
    %266 = arith.index_cast %265 : i32 to index
    %c0_92 = arith.constant 0 : index
    %267 = vector.load %arg11[%266, %c0_92] : memref<16x128xf32, #tpu.memory_space<vmem>>, vector<1x128xf32>
    tpu.vector_store %arg11[%266, %c0_92], %264 {strides = array<i32>} : memref<16x128xf32, #tpu.memory_space<vmem>>, vector<1x128xf32>,
    %c6_i32 = arith.constant 6 : i32
    %c0_i32_93 = arith.constant 0 : i32
    %268 = arith.addi %c0_i32_93, %c6_i32 : i32
    %269 = arith.index_cast %268 : i32 to index
    %c0_94 = arith.constant 0 : index
    %270 = vector.load %arg10[%269, %c0_94] : memref<16x512xf32, #tpu.memory_space<vmem>>, vector<1x512xf32>
    %c8_i32_95 = arith.constant 8 : i32
    %271 = arith.addi %c8_i32_95, %c6_i32 : i32
    %272 = arith.index_cast %271 : i32 to index
    %c0_96 = arith.constant 0 : index
    %273 = vector.load %arg10[%272, %c0_96] : memref<16x512xf32, #tpu.memory_space<vmem>>, vector<1x512xf32>
    %274 = tpu.concatenate %270, %273 in 0 : vector<1x512xf32>, vector<1x512xf32> -> vector<2x512xf32>
    %c0_97 = arith.constant 0 : index
    %c0_98 = arith.constant 0 : index
    %275 = vector.load %arg2[%c0_97, %c0_98] : memref<128x512xf32, #tpu.memory_space<vmem>>, vector<128x512xf32>
    %cst_99 = arith.constant dense<0.000000e+00> : vector<2x512xf32>
    %276 = tpu.matmul %259, %275, %cst_99 {dimension_numbers = #tpu.dot_dimension_numbers<[1], [0], [0], [1], [0, 0, 1, 1], [], []>} : vector<2x128xf32>, vector<128x512xf32>, vector<2x512xf32> -> vector<2x512xf32>
    %277 = arith.addf %274, %276 : vector<2x512xf32>
    %278 = vector.extract_strided_slice %277 {offsets = [0, 0], sizes = [2, 128], strides = [1, 1]} : vector<2x512xf32> to vector<2x128xf32>
    %279 = arith.negf %278 : vector<2x128xf32>
    %280 = math.exp %279 : vector<2x128xf32>
    %cst_100 = arith.constant 1.000000e+00 : f32
    %281 = vector.broadcast %cst_100 : f32 to vector<2x128xf32>
    %282 = arith.addf %281, %280 : vector<2x128xf32>
    %283 = arith.divf %281, %282 : vector<2x128xf32>
    %284 = vector.extract_strided_slice %277 {offsets = [0, 128], sizes = [2, 128], strides = [1, 1]} : vector<2x512xf32> to vector<2x128xf32>
    %285 = arith.negf %284 : vector<2x128xf32>
    %286 = math.exp %285 : vector<2x128xf32>
    %cst_101 = arith.constant 1.000000e+00 : f32
    %287 = vector.broadcast %cst_101 : f32 to vector<2x128xf32>
    %288 = arith.addf %287, %286 : vector<2x128xf32>
    %289 = arith.divf %287, %288 : vector<2x128xf32>
    %290 = vector.extract_strided_slice %277 {offsets = [0, 256], sizes = [2, 128], strides = [1, 1]} : vector<2x512xf32> to vector<2x128xf32>
    %291 = math.tanh %290 : vector<2x128xf32>
    %292 = vector.extract_strided_slice %277 {offsets = [0, 384], sizes = [2, 128], strides = [1, 1]} : vector<2x512xf32> to vector<2x128xf32>
    %293 = arith.negf %292 : vector<2x128xf32>
    %294 = math.exp %293 : vector<2x128xf32>
    %cst_102 = arith.constant 1.000000e+00 : f32
    %295 = vector.broadcast %cst_102 : f32 to vector<2x128xf32>
    %296 = arith.addf %295, %294 : vector<2x128xf32>
    %297 = arith.divf %295, %296 : vector<2x128xf32>
    %298 = arith.mulf %289, %257 : vector<2x128xf32>
    %299 = arith.mulf %283, %291 : vector<2x128xf32>
    %300 = arith.addf %298, %299 : vector<2x128xf32>
    %301 = math.tanh %300 : vector<2x128xf32>
    %302 = arith.mulf %297, %301 : vector<2x128xf32>
    %303 = vector.extract_strided_slice %302 {offsets = [0, 0], sizes = [1, 128], strides = [1, 1]} : vector<2x128xf32> to vector<1x128xf32>
    %c0_i32_103 = arith.constant 0 : i32
    %304 = arith.addi %c0_i32_103, %c6_i32 : i32
    %305 = arith.index_cast %304 : i32 to index
    %c0_104 = arith.constant 0 : index
    %306 = vector.load %arg11[%305, %c0_104] : memref<16x128xf32, #tpu.memory_space<vmem>>, vector<1x128xf32>
    tpu.vector_store %arg11[%305, %c0_104], %303 {strides = array<i32>} : memref<16x128xf32, #tpu.memory_space<vmem>>, vector<1x128xf32>,
    %307 = vector.extract_strided_slice %302 {offsets = [1, 0], sizes = [1, 128], strides = [1, 1]} : vector<2x128xf32> to vector<1x128xf32>
    %c8_i32_105 = arith.constant 8 : i32
    %308 = arith.addi %c8_i32_105, %c6_i32 : i32
    %309 = arith.index_cast %308 : i32 to index
    %c0_106 = arith.constant 0 : index
    %310 = vector.load %arg11[%309, %c0_106] : memref<16x128xf32, #tpu.memory_space<vmem>>, vector<1x128xf32>
    tpu.vector_store %arg11[%309, %c0_106], %307 {strides = array<i32>} : memref<16x128xf32, #tpu.memory_space<vmem>>, vector<1x128xf32>,
    %c7_i32 = arith.constant 7 : i32
    %c0_i32_107 = arith.constant 0 : i32
    %311 = arith.addi %c0_i32_107, %c7_i32 : i32
    %312 = arith.index_cast %311 : i32 to index
    %c0_108 = arith.constant 0 : index
    %313 = vector.load %arg10[%312, %c0_108] : memref<16x512xf32, #tpu.memory_space<vmem>>, vector<1x512xf32>
    %c8_i32_109 = arith.constant 8 : i32
    %314 = arith.addi %c8_i32_109, %c7_i32 : i32
    %315 = arith.index_cast %314 : i32 to index
    %c0_110 = arith.constant 0 : index
    %316 = vector.load %arg10[%315, %c0_110] : memref<16x512xf32, #tpu.memory_space<vmem>>, vector<1x512xf32>
    %317 = tpu.concatenate %313, %316 in 0 : vector<1x512xf32>, vector<1x512xf32> -> vector<2x512xf32>
    %c0_111 = arith.constant 0 : index
    %c0_112 = arith.constant 0 : index
    %318 = vector.load %arg2[%c0_111, %c0_112] : memref<128x512xf32, #tpu.memory_space<vmem>>, vector<128x512xf32>
    %cst_113 = arith.constant dense<0.000000e+00> : vector<2x512xf32>
    %319 = tpu.matmul %302, %318, %cst_113 {dimension_numbers = #tpu.dot_dimension_numbers<[1], [0], [0], [1], [0, 0, 1, 1], [], []>} : vector<2x128xf32>, vector<128x512xf32>, vector<2x512xf32> -> vector<2x512xf32>
    %320 = arith.addf %317, %319 : vector<2x512xf32>
    %321 = vector.extract_strided_slice %320 {offsets = [0, 0], sizes = [2, 128], strides = [1, 1]} : vector<2x512xf32> to vector<2x128xf32>
    %322 = arith.negf %321 : vector<2x128xf32>
    %323 = math.exp %322 : vector<2x128xf32>
    %cst_114 = arith.constant 1.000000e+00 : f32
    %324 = vector.broadcast %cst_114 : f32 to vector<2x128xf32>
    %325 = arith.addf %324, %323 : vector<2x128xf32>
    %326 = arith.divf %324, %325 : vector<2x128xf32>
    %327 = vector.extract_strided_slice %320 {offsets = [0, 128], sizes = [2, 128], strides = [1, 1]} : vector<2x512xf32> to vector<2x128xf32>
    %328 = arith.negf %327 : vector<2x128xf32>
    %329 = math.exp %328 : vector<2x128xf32>
    %cst_115 = arith.constant 1.000000e+00 : f32
    %330 = vector.broadcast %cst_115 : f32 to vector<2x128xf32>
    %331 = arith.addf %330, %329 : vector<2x128xf32>
    %332 = arith.divf %330, %331 : vector<2x128xf32>
    %333 = vector.extract_strided_slice %320 {offsets = [0, 256], sizes = [2, 128], strides = [1, 1]} : vector<2x512xf32> to vector<2x128xf32>
    %334 = math.tanh %333 : vector<2x128xf32>
    %335 = vector.extract_strided_slice %320 {offsets = [0, 384], sizes = [2, 128], strides = [1, 1]} : vector<2x512xf32> to vector<2x128xf32>
    %336 = arith.negf %335 : vector<2x128xf32>
    %337 = math.exp %336 : vector<2x128xf32>
    %cst_116 = arith.constant 1.000000e+00 : f32
    %338 = vector.broadcast %cst_116 : f32 to vector<2x128xf32>
    %339 = arith.addf %338, %337 : vector<2x128xf32>
    %340 = arith.divf %338, %339 : vector<2x128xf32>
    %341 = arith.mulf %332, %300 : vector<2x128xf32>
    %342 = arith.mulf %326, %334 : vector<2x128xf32>
    %343 = arith.addf %341, %342 : vector<2x128xf32>
    %344 = math.tanh %343 : vector<2x128xf32>
    %345 = arith.mulf %340, %344 : vector<2x128xf32>
    %346 = vector.extract_strided_slice %345 {offsets = [0, 0], sizes = [1, 128], strides = [1, 1]} : vector<2x128xf32> to vector<1x128xf32>
    %c0_i32_117 = arith.constant 0 : i32
    %347 = arith.addi %c0_i32_117, %c7_i32 : i32
    %348 = arith.index_cast %347 : i32 to index
    %c0_118 = arith.constant 0 : index
    %349 = vector.load %arg11[%348, %c0_118] : memref<16x128xf32, #tpu.memory_space<vmem>>, vector<1x128xf32>
    tpu.vector_store %arg11[%348, %c0_118], %346 {strides = array<i32>} : memref<16x128xf32, #tpu.memory_space<vmem>>, vector<1x128xf32>,
    %350 = vector.extract_strided_slice %345 {offsets = [1, 0], sizes = [1, 128], strides = [1, 1]} : vector<2x128xf32> to vector<1x128xf32>
    %c8_i32_119 = arith.constant 8 : i32
    %351 = arith.addi %c8_i32_119, %c7_i32 : i32
    %352 = arith.index_cast %351 : i32 to index
    %c0_120 = arith.constant 0 : index
    %353 = vector.load %arg11[%352, %c0_120] : memref<16x128xf32, #tpu.memory_space<vmem>>, vector<1x128xf32>
    tpu.vector_store %arg11[%352, %c0_120], %350 {strides = array<i32>} : memref<16x128xf32, #tpu.memory_space<vmem>>, vector<1x128xf32>,
    %c8_i32_121 = arith.constant 8 : i32
    %c0_122 = arith.constant 0 : index
    %c0_123 = arith.constant 0 : index
    %354 = vector.load %arg11[%c0_122, %c0_123] : memref<16x128xf32, #tpu.memory_space<vmem>>, vector<16x128xf32>
    %c0_124 = arith.constant 0 : index
    %c0_125 = arith.constant 0 : index
    %355 = vector.load %arg4[%c0_124, %c0_125] : memref<128x512xf32, #tpu.memory_space<vmem>>, vector<128x512xf32>
    %cst_126 = arith.constant dense<0.000000e+00> : vector<16x512xf32>
    %356 = tpu.matmul %354, %355, %cst_126 {dimension_numbers = #tpu.dot_dimension_numbers<[1], [0], [0], [1], [0, 0, 1, 1], [], []>} : vector<16x128xf32>, vector<128x512xf32>, vector<16x512xf32> -> vector<16x512xf32>
    %c0_127 = arith.constant 0 : index
    %c0_128 = arith.constant 0 : index
    %357 = vector.load %arg6[%c0_127, %c0_128] : memref<1x512xf32, #tpu.memory_space<vmem>>, vector<1x512xf32>
    %358 = vector.broadcast %357 : vector<1x512xf32> to vector<16x512xf32>
    %359 = arith.addf %356, %358 : vector<16x512xf32>
    %c0_129 = arith.constant 0 : index
    %c0_130 = arith.constant 0 : index
    %360 = vector.load %arg10[%c0_129, %c0_130] : memref<16x512xf32, #tpu.memory_space<vmem>>, vector<16x512xf32>
    tpu.vector_store %arg10[%c0_129, %c0_130], %359 {strides = array<i32>} : memref<16x512xf32, #tpu.memory_space<vmem>>, vector<16x512xf32>,
    %c0_i32_131 = arith.constant 0 : i32
    %c0_i32_132 = arith.constant 0 : i32
    %361 = arith.addi %c0_i32_132, %c0_i32_131 : i32
    %362 = arith.index_cast %361 : i32 to index
    %c0_133 = arith.constant 0 : index
    %363 = vector.load %arg10[%362, %c0_133] : memref<16x512xf32, #tpu.memory_space<vmem>>, vector<1x512xf32>
    %c8_i32_134 = arith.constant 8 : i32
    %364 = arith.addi %c8_i32_134, %c0_i32_131 : i32
    %365 = arith.index_cast %364 : i32 to index
    %c0_135 = arith.constant 0 : index
    %366 = vector.load %arg10[%365, %c0_135] : memref<16x512xf32, #tpu.memory_space<vmem>>, vector<1x512xf32>
    %367 = tpu.concatenate %363, %366 in 0 : vector<1x512xf32>, vector<1x512xf32> -> vector<2x512xf32>
    %c0_136 = arith.constant 0 : index
    %c0_137 = arith.constant 0 : index
    %368 = vector.load %arg5[%c0_136, %c0_137] : memref<128x512xf32, #tpu.memory_space<vmem>>, vector<128x512xf32>
    %cst_138 = arith.constant dense<0.000000e+00> : vector<2x512xf32>
    %369 = tpu.matmul %0, %368, %cst_138 {dimension_numbers = #tpu.dot_dimension_numbers<[1], [0], [0], [1], [0, 0, 1, 1], [], []>} : vector<2x128xf32>, vector<128x512xf32>, vector<2x512xf32> -> vector<2x512xf32>
    %370 = arith.addf %367, %369 : vector<2x512xf32>
    %371 = vector.extract_strided_slice %370 {offsets = [0, 0], sizes = [2, 128], strides = [1, 1]} : vector<2x512xf32> to vector<2x128xf32>
    %372 = arith.negf %371 : vector<2x128xf32>
    %373 = math.exp %372 : vector<2x128xf32>
    %cst_139 = arith.constant 1.000000e+00 : f32
    %374 = vector.broadcast %cst_139 : f32 to vector<2x128xf32>
    %375 = arith.addf %374, %373 : vector<2x128xf32>
    %376 = arith.divf %374, %375 : vector<2x128xf32>
    %377 = vector.extract_strided_slice %370 {offsets = [0, 128], sizes = [2, 128], strides = [1, 1]} : vector<2x512xf32> to vector<2x128xf32>
    %378 = arith.negf %377 : vector<2x128xf32>
    %379 = math.exp %378 : vector<2x128xf32>
    %cst_140 = arith.constant 1.000000e+00 : f32
    %380 = vector.broadcast %cst_140 : f32 to vector<2x128xf32>
    %381 = arith.addf %380, %379 : vector<2x128xf32>
    %382 = arith.divf %380, %381 : vector<2x128xf32>
    %383 = vector.extract_strided_slice %370 {offsets = [0, 256], sizes = [2, 128], strides = [1, 1]} : vector<2x512xf32> to vector<2x128xf32>
    %384 = math.tanh %383 : vector<2x128xf32>
    %385 = vector.extract_strided_slice %370 {offsets = [0, 384], sizes = [2, 128], strides = [1, 1]} : vector<2x512xf32> to vector<2x128xf32>
    %386 = arith.negf %385 : vector<2x128xf32>
    %387 = math.exp %386 : vector<2x128xf32>
    %cst_141 = arith.constant 1.000000e+00 : f32
    %388 = vector.broadcast %cst_141 : f32 to vector<2x128xf32>
    %389 = arith.addf %388, %387 : vector<2x128xf32>
    %390 = arith.divf %388, %389 : vector<2x128xf32>
    %391 = arith.mulf %382, %1 : vector<2x128xf32>
    %392 = arith.mulf %376, %384 : vector<2x128xf32>
    %393 = arith.addf %391, %392 : vector<2x128xf32>
    %394 = math.tanh %393 : vector<2x128xf32>
    %395 = arith.mulf %390, %394 : vector<2x128xf32>
    %c1_i32_142 = arith.constant 1 : i32
    %c0_i32_143 = arith.constant 0 : i32
    %396 = arith.addi %c0_i32_143, %c1_i32_142 : i32
    %397 = arith.index_cast %396 : i32 to index
    %c0_144 = arith.constant 0 : index
    %398 = vector.load %arg10[%397, %c0_144] : memref<16x512xf32, #tpu.memory_space<vmem>>, vector<1x512xf32>
    %c8_i32_145 = arith.constant 8 : i32
    %399 = arith.addi %c8_i32_145, %c1_i32_142 : i32
    %400 = arith.index_cast %399 : i32 to index
    %c0_146 = arith.constant 0 : index
    %401 = vector.load %arg10[%400, %c0_146] : memref<16x512xf32, #tpu.memory_space<vmem>>, vector<1x512xf32>
    %402 = tpu.concatenate %398, %401 in 0 : vector<1x512xf32>, vector<1x512xf32> -> vector<2x512xf32>
    %c0_147 = arith.constant 0 : index
    %c0_148 = arith.constant 0 : index
    %403 = vector.load %arg5[%c0_147, %c0_148] : memref<128x512xf32, #tpu.memory_space<vmem>>, vector<128x512xf32>
    %cst_149 = arith.constant dense<0.000000e+00> : vector<2x512xf32>
    %404 = tpu.matmul %395, %403, %cst_149 {dimension_numbers = #tpu.dot_dimension_numbers<[1], [0], [0], [1], [0, 0, 1, 1], [], []>} : vector<2x128xf32>, vector<128x512xf32>, vector<2x512xf32> -> vector<2x512xf32>
    %405 = arith.addf %402, %404 : vector<2x512xf32>
    %406 = vector.extract_strided_slice %405 {offsets = [0, 0], sizes = [2, 128], strides = [1, 1]} : vector<2x512xf32> to vector<2x128xf32>
    %407 = arith.negf %406 : vector<2x128xf32>
    %408 = math.exp %407 : vector<2x128xf32>
    %cst_150 = arith.constant 1.000000e+00 : f32
    %409 = vector.broadcast %cst_150 : f32 to vector<2x128xf32>
    %410 = arith.addf %409, %408 : vector<2x128xf32>
    %411 = arith.divf %409, %410 : vector<2x128xf32>
    %412 = vector.extract_strided_slice %405 {offsets = [0, 128], sizes = [2, 128], strides = [1, 1]} : vector<2x512xf32> to vector<2x128xf32>
    %413 = arith.negf %412 : vector<2x128xf32>
    %414 = math.exp %413 : vector<2x128xf32>
    %cst_151 = arith.constant 1.000000e+00 : f32
    %415 = vector.broadcast %cst_151 : f32 to vector<2x128xf32>
    %416 = arith.addf %415, %414 : vector<2x128xf32>
    %417 = arith.divf %415, %416 : vector<2x128xf32>
    %418 = vector.extract_strided_slice %405 {offsets = [0, 256], sizes = [2, 128], strides = [1, 1]} : vector<2x512xf32> to vector<2x128xf32>
    %419 = math.tanh %418 : vector<2x128xf32>
    %420 = vector.extract_strided_slice %405 {offsets = [0, 384], sizes = [2, 128], strides = [1, 1]} : vector<2x512xf32> to vector<2x128xf32>
    %421 = arith.negf %420 : vector<2x128xf32>
    %422 = math.exp %421 : vector<2x128xf32>
    %cst_152 = arith.constant 1.000000e+00 : f32
    %423 = vector.broadcast %cst_152 : f32 to vector<2x128xf32>
    %424 = arith.addf %423, %422 : vector<2x128xf32>
    %425 = arith.divf %423, %424 : vector<2x128xf32>
    %426 = arith.mulf %417, %393 : vector<2x128xf32>
    %427 = arith.mulf %411, %419 : vector<2x128xf32>
    %428 = arith.addf %426, %427 : vector<2x128xf32>
    %429 = math.tanh %428 : vector<2x128xf32>
    %430 = arith.mulf %425, %429 : vector<2x128xf32>
    %c2_i32_153 = arith.constant 2 : i32
    %c0_i32_154 = arith.constant 0 : i32
    %431 = arith.addi %c0_i32_154, %c2_i32_153 : i32
    %432 = arith.index_cast %431 : i32 to index
    %c0_155 = arith.constant 0 : index
    %433 = vector.load %arg10[%432, %c0_155] : memref<16x512xf32, #tpu.memory_space<vmem>>, vector<1x512xf32>
    %c8_i32_156 = arith.constant 8 : i32
    %434 = arith.addi %c8_i32_156, %c2_i32_153 : i32
    %435 = arith.index_cast %434 : i32 to index
    %c0_157 = arith.constant 0 : index
    %436 = vector.load %arg10[%435, %c0_157] : memref<16x512xf32, #tpu.memory_space<vmem>>, vector<1x512xf32>
    %437 = tpu.concatenate %433, %436 in 0 : vector<1x512xf32>, vector<1x512xf32> -> vector<2x512xf32>
    %c0_158 = arith.constant 0 : index
    %c0_159 = arith.constant 0 : index
    %438 = vector.load %arg5[%c0_158, %c0_159] : memref<128x512xf32, #tpu.memory_space<vmem>>, vector<128x512xf32>
    %cst_160 = arith.constant dense<0.000000e+00> : vector<2x512xf32>
    %439 = tpu.matmul %430, %438, %cst_160 {dimension_numbers = #tpu.dot_dimension_numbers<[1], [0], [0], [1], [0, 0, 1, 1], [], []>} : vector<2x128xf32>, vector<128x512xf32>, vector<2x512xf32> -> vector<2x512xf32>
    %440 = arith.addf %437, %439 : vector<2x512xf32>
    %441 = vector.extract_strided_slice %440 {offsets = [0, 0], sizes = [2, 128], strides = [1, 1]} : vector<2x512xf32> to vector<2x128xf32>
    %442 = arith.negf %441 : vector<2x128xf32>
    %443 = math.exp %442 : vector<2x128xf32>
    %cst_161 = arith.constant 1.000000e+00 : f32
    %444 = vector.broadcast %cst_161 : f32 to vector<2x128xf32>
    %445 = arith.addf %444, %443 : vector<2x128xf32>
    %446 = arith.divf %444, %445 : vector<2x128xf32>
    %447 = vector.extract_strided_slice %440 {offsets = [0, 128], sizes = [2, 128], strides = [1, 1]} : vector<2x512xf32> to vector<2x128xf32>
    %448 = arith.negf %447 : vector<2x128xf32>
    %449 = math.exp %448 : vector<2x128xf32>
    %cst_162 = arith.constant 1.000000e+00 : f32
    %450 = vector.broadcast %cst_162 : f32 to vector<2x128xf32>
    %451 = arith.addf %450, %449 : vector<2x128xf32>
    %452 = arith.divf %450, %451 : vector<2x128xf32>
    %453 = vector.extract_strided_slice %440 {offsets = [0, 256], sizes = [2, 128], strides = [1, 1]} : vector<2x512xf32> to vector<2x128xf32>
    %454 = math.tanh %453 : vector<2x128xf32>
    %455 = vector.extract_strided_slice %440 {offsets = [0, 384], sizes = [2, 128], strides = [1, 1]} : vector<2x512xf32> to vector<2x128xf32>
    %456 = arith.negf %455 : vector<2x128xf32>
    %457 = math.exp %456 : vector<2x128xf32>
    %cst_163 = arith.constant 1.000000e+00 : f32
    %458 = vector.broadcast %cst_163 : f32 to vector<2x128xf32>
    %459 = arith.addf %458, %457 : vector<2x128xf32>
    %460 = arith.divf %458, %459 : vector<2x128xf32>
    %461 = arith.mulf %452, %428 : vector<2x128xf32>
    %462 = arith.mulf %446, %454 : vector<2x128xf32>
    %463 = arith.addf %461, %462 : vector<2x128xf32>
    %464 = math.tanh %463 : vector<2x128xf32>
    %465 = arith.mulf %460, %464 : vector<2x128xf32>
    %c3_i32_164 = arith.constant 3 : i32
    %c0_i32_165 = arith.constant 0 : i32
    %466 = arith.addi %c0_i32_165, %c3_i32_164 : i32
    %467 = arith.index_cast %466 : i32 to index
    %c0_166 = arith.constant 0 : index
    %468 = vector.load %arg10[%467, %c0_166] : memref<16x512xf32, #tpu.memory_space<vmem>>, vector<1x512xf32>
    %c8_i32_167 = arith.constant 8 : i32
    %469 = arith.addi %c8_i32_167, %c3_i32_164 : i32
    %470 = arith.index_cast %469 : i32 to index
    %c0_168 = arith.constant 0 : index
    %471 = vector.load %arg10[%470, %c0_168] : memref<16x512xf32, #tpu.memory_space<vmem>>, vector<1x512xf32>
    %472 = tpu.concatenate %468, %471 in 0 : vector<1x512xf32>, vector<1x512xf32> -> vector<2x512xf32>
    %c0_169 = arith.constant 0 : index
    %c0_170 = arith.constant 0 : index
    %473 = vector.load %arg5[%c0_169, %c0_170] : memref<128x512xf32, #tpu.memory_space<vmem>>, vector<128x512xf32>
    %cst_171 = arith.constant dense<0.000000e+00> : vector<2x512xf32>
    %474 = tpu.matmul %465, %473, %cst_171 {dimension_numbers = #tpu.dot_dimension_numbers<[1], [0], [0], [1], [0, 0, 1, 1], [], []>} : vector<2x128xf32>, vector<128x512xf32>, vector<2x512xf32> -> vector<2x512xf32>
    %475 = arith.addf %472, %474 : vector<2x512xf32>
    %476 = vector.extract_strided_slice %475 {offsets = [0, 0], sizes = [2, 128], strides = [1, 1]} : vector<2x512xf32> to vector<2x128xf32>
    %477 = arith.negf %476 : vector<2x128xf32>
    %478 = math.exp %477 : vector<2x128xf32>
    %cst_172 = arith.constant 1.000000e+00 : f32
    %479 = vector.broadcast %cst_172 : f32 to vector<2x128xf32>
    %480 = arith.addf %479, %478 : vector<2x128xf32>
    %481 = arith.divf %479, %480 : vector<2x128xf32>
    %482 = vector.extract_strided_slice %475 {offsets = [0, 128], sizes = [2, 128], strides = [1, 1]} : vector<2x512xf32> to vector<2x128xf32>
    %483 = arith.negf %482 : vector<2x128xf32>
    %484 = math.exp %483 : vector<2x128xf32>
    %cst_173 = arith.constant 1.000000e+00 : f32
    %485 = vector.broadcast %cst_173 : f32 to vector<2x128xf32>
    %486 = arith.addf %485, %484 : vector<2x128xf32>
    %487 = arith.divf %485, %486 : vector<2x128xf32>
    %488 = vector.extract_strided_slice %475 {offsets = [0, 256], sizes = [2, 128], strides = [1, 1]} : vector<2x512xf32> to vector<2x128xf32>
    %489 = math.tanh %488 : vector<2x128xf32>
    %490 = vector.extract_strided_slice %475 {offsets = [0, 384], sizes = [2, 128], strides = [1, 1]} : vector<2x512xf32> to vector<2x128xf32>
    %491 = arith.negf %490 : vector<2x128xf32>
    %492 = math.exp %491 : vector<2x128xf32>
    %cst_174 = arith.constant 1.000000e+00 : f32
    %493 = vector.broadcast %cst_174 : f32 to vector<2x128xf32>
    %494 = arith.addf %493, %492 : vector<2x128xf32>
    %495 = arith.divf %493, %494 : vector<2x128xf32>
    %496 = arith.mulf %487, %463 : vector<2x128xf32>
    %497 = arith.mulf %481, %489 : vector<2x128xf32>
    %498 = arith.addf %496, %497 : vector<2x128xf32>
    %499 = math.tanh %498 : vector<2x128xf32>
    %500 = arith.mulf %495, %499 : vector<2x128xf32>
    %c4_i32_175 = arith.constant 4 : i32
    %c0_i32_176 = arith.constant 0 : i32
    %501 = arith.addi %c0_i32_176, %c4_i32_175 : i32
    %502 = arith.index_cast %501 : i32 to index
    %c0_177 = arith.constant 0 : index
    %503 = vector.load %arg10[%502, %c0_177] : memref<16x512xf32, #tpu.memory_space<vmem>>, vector<1x512xf32>
    %c8_i32_178 = arith.constant 8 : i32
    %504 = arith.addi %c8_i32_178, %c4_i32_175 : i32
    %505 = arith.index_cast %504 : i32 to index
    %c0_179 = arith.constant 0 : index
    %506 = vector.load %arg10[%505, %c0_179] : memref<16x512xf32, #tpu.memory_space<vmem>>, vector<1x512xf32>
    %507 = tpu.concatenate %503, %506 in 0 : vector<1x512xf32>, vector<1x512xf32> -> vector<2x512xf32>
    %c0_180 = arith.constant 0 : index
    %c0_181 = arith.constant 0 : index
    %508 = vector.load %arg5[%c0_180, %c0_181] : memref<128x512xf32, #tpu.memory_space<vmem>>, vector<128x512xf32>
    %cst_182 = arith.constant dense<0.000000e+00> : vector<2x512xf32>
    %509 = tpu.matmul %500, %508, %cst_182 {dimension_numbers = #tpu.dot_dimension_numbers<[1], [0], [0], [1], [0, 0, 1, 1], [], []>} : vector<2x128xf32>, vector<128x512xf32>, vector<2x512xf32> -> vector<2x512xf32>
    %510 = arith.addf %507, %509 : vector<2x512xf32>
    %511 = vector.extract_strided_slice %510 {offsets = [0, 0], sizes = [2, 128], strides = [1, 1]} : vector<2x512xf32> to vector<2x128xf32>
    %512 = arith.negf %511 : vector<2x128xf32>
    %513 = math.exp %512 : vector<2x128xf32>
    %cst_183 = arith.constant 1.000000e+00 : f32
    %514 = vector.broadcast %cst_183 : f32 to vector<2x128xf32>
    %515 = arith.addf %514, %513 : vector<2x128xf32>
    %516 = arith.divf %514, %515 : vector<2x128xf32>
    %517 = vector.extract_strided_slice %510 {offsets = [0, 128], sizes = [2, 128], strides = [1, 1]} : vector<2x512xf32> to vector<2x128xf32>
    %518 = arith.negf %517 : vector<2x128xf32>
    %519 = math.exp %518 : vector<2x128xf32>
    %cst_184 = arith.constant 1.000000e+00 : f32
    %520 = vector.broadcast %cst_184 : f32 to vector<2x128xf32>
    %521 = arith.addf %520, %519 : vector<2x128xf32>
    %522 = arith.divf %520, %521 : vector<2x128xf32>
    %523 = vector.extract_strided_slice %510 {offsets = [0, 256], sizes = [2, 128], strides = [1, 1]} : vector<2x512xf32> to vector<2x128xf32>
    %524 = math.tanh %523 : vector<2x128xf32>
    %525 = vector.extract_strided_slice %510 {offsets = [0, 384], sizes = [2, 128], strides = [1, 1]} : vector<2x512xf32> to vector<2x128xf32>
    %526 = arith.negf %525 : vector<2x128xf32>
    %527 = math.exp %526 : vector<2x128xf32>
    %cst_185 = arith.constant 1.000000e+00 : f32
    %528 = vector.broadcast %cst_185 : f32 to vector<2x128xf32>
    %529 = arith.addf %528, %527 : vector<2x128xf32>
    %530 = arith.divf %528, %529 : vector<2x128xf32>
    %531 = arith.mulf %522, %498 : vector<2x128xf32>
    %532 = arith.mulf %516, %524 : vector<2x128xf32>
    %533 = arith.addf %531, %532 : vector<2x128xf32>
    %534 = math.tanh %533 : vector<2x128xf32>
    %535 = arith.mulf %530, %534 : vector<2x128xf32>
    %c5_i32_186 = arith.constant 5 : i32
    %c0_i32_187 = arith.constant 0 : i32
    %536 = arith.addi %c0_i32_187, %c5_i32_186 : i32
    %537 = arith.index_cast %536 : i32 to index
    %c0_188 = arith.constant 0 : index
    %538 = vector.load %arg10[%537, %c0_188] : memref<16x512xf32, #tpu.memory_space<vmem>>, vector<1x512xf32>
    %c8_i32_189 = arith.constant 8 : i32
    %539 = arith.addi %c8_i32_189, %c5_i32_186 : i32
    %540 = arith.index_cast %539 : i32 to index
    %c0_190 = arith.constant 0 : index
    %541 = vector.load %arg10[%540, %c0_190] : memref<16x512xf32, #tpu.memory_space<vmem>>, vector<1x512xf32>
    %542 = tpu.concatenate %538, %541 in 0 : vector<1x512xf32>, vector<1x512xf32> -> vector<2x512xf32>
    %c0_191 = arith.constant 0 : index
    %c0_192 = arith.constant 0 : index
    %543 = vector.load %arg5[%c0_191, %c0_192] : memref<128x512xf32, #tpu.memory_space<vmem>>, vector<128x512xf32>
    %cst_193 = arith.constant dense<0.000000e+00> : vector<2x512xf32>
    %544 = tpu.matmul %535, %543, %cst_193 {dimension_numbers = #tpu.dot_dimension_numbers<[1], [0], [0], [1], [0, 0, 1, 1], [], []>} : vector<2x128xf32>, vector<128x512xf32>, vector<2x512xf32> -> vector<2x512xf32>
    %545 = arith.addf %542, %544 : vector<2x512xf32>
    %546 = vector.extract_strided_slice %545 {offsets = [0, 0], sizes = [2, 128], strides = [1, 1]} : vector<2x512xf32> to vector<2x128xf32>
    %547 = arith.negf %546 : vector<2x128xf32>
    %548 = math.exp %547 : vector<2x128xf32>
    %cst_194 = arith.constant 1.000000e+00 : f32
    %549 = vector.broadcast %cst_194 : f32 to vector<2x128xf32>
    %550 = arith.addf %549, %548 : vector<2x128xf32>
    %551 = arith.divf %549, %550 : vector<2x128xf32>
    %552 = vector.extract_strided_slice %545 {offsets = [0, 128], sizes = [2, 128], strides = [1, 1]} : vector<2x512xf32> to vector<2x128xf32>
    %553 = arith.negf %552 : vector<2x128xf32>
    %554 = math.exp %553 : vector<2x128xf32>
    %cst_195 = arith.constant 1.000000e+00 : f32
    %555 = vector.broadcast %cst_195 : f32 to vector<2x128xf32>
    %556 = arith.addf %555, %554 : vector<2x128xf32>
    %557 = arith.divf %555, %556 : vector<2x128xf32>
    %558 = vector.extract_strided_slice %545 {offsets = [0, 256], sizes = [2, 128], strides = [1, 1]} : vector<2x512xf32> to vector<2x128xf32>
    %559 = math.tanh %558 : vector<2x128xf32>
    %560 = vector.extract_strided_slice %545 {offsets = [0, 384], sizes = [2, 128], strides = [1, 1]} : vector<2x512xf32> to vector<2x128xf32>
    %561 = arith.negf %560 : vector<2x128xf32>
    %562 = math.exp %561 : vector<2x128xf32>
    %cst_196 = arith.constant 1.000000e+00 : f32
    %563 = vector.broadcast %cst_196 : f32 to vector<2x128xf32>
    %564 = arith.addf %563, %562 : vector<2x128xf32>
    %565 = arith.divf %563, %564 : vector<2x128xf32>
    %566 = arith.mulf %557, %533 : vector<2x128xf32>
    %567 = arith.mulf %551, %559 : vector<2x128xf32>
    %568 = arith.addf %566, %567 : vector<2x128xf32>
    %569 = math.tanh %568 : vector<2x128xf32>
    %570 = arith.mulf %565, %569 : vector<2x128xf32>
    %c6_i32_197 = arith.constant 6 : i32
    %c0_i32_198 = arith.constant 0 : i32
    %571 = arith.addi %c0_i32_198, %c6_i32_197 : i32
    %572 = arith.index_cast %571 : i32 to index
    %c0_199 = arith.constant 0 : index
    %573 = vector.load %arg10[%572, %c0_199] : memref<16x512xf32, #tpu.memory_space<vmem>>, vector<1x512xf32>
    %c8_i32_200 = arith.constant 8 : i32
    %574 = arith.addi %c8_i32_200, %c6_i32_197 : i32
    %575 = arith.index_cast %574 : i32 to index
    %c0_201 = arith.constant 0 : index
    %576 = vector.load %arg10[%575, %c0_201] : memref<16x512xf32, #tpu.memory_space<vmem>>, vector<1x512xf32>
    %577 = tpu.concatenate %573, %576 in 0 : vector<1x512xf32>, vector<1x512xf32> -> vector<2x512xf32>
    %c0_202 = arith.constant 0 : index
    %c0_203 = arith.constant 0 : index
    %578 = vector.load %arg5[%c0_202, %c0_203] : memref<128x512xf32, #tpu.memory_space<vmem>>, vector<128x512xf32>
    %cst_204 = arith.constant dense<0.000000e+00> : vector<2x512xf32>
    %579 = tpu.matmul %570, %578, %cst_204 {dimension_numbers = #tpu.dot_dimension_numbers<[1], [0], [0], [1], [0, 0, 1, 1], [], []>} : vector<2x128xf32>, vector<128x512xf32>, vector<2x512xf32> -> vector<2x512xf32>
    %580 = arith.addf %577, %579 : vector<2x512xf32>
    %581 = vector.extract_strided_slice %580 {offsets = [0, 0], sizes = [2, 128], strides = [1, 1]} : vector<2x512xf32> to vector<2x128xf32>
    %582 = arith.negf %581 : vector<2x128xf32>
    %583 = math.exp %582 : vector<2x128xf32>
    %cst_205 = arith.constant 1.000000e+00 : f32
    %584 = vector.broadcast %cst_205 : f32 to vector<2x128xf32>
    %585 = arith.addf %584, %583 : vector<2x128xf32>
    %586 = arith.divf %584, %585 : vector<2x128xf32>
    %587 = vector.extract_strided_slice %580 {offsets = [0, 128], sizes = [2, 128], strides = [1, 1]} : vector<2x512xf32> to vector<2x128xf32>
    %588 = arith.negf %587 : vector<2x128xf32>
    %589 = math.exp %588 : vector<2x128xf32>
    %cst_206 = arith.constant 1.000000e+00 : f32
    %590 = vector.broadcast %cst_206 : f32 to vector<2x128xf32>
    %591 = arith.addf %590, %589 : vector<2x128xf32>
    %592 = arith.divf %590, %591 : vector<2x128xf32>
    %593 = vector.extract_strided_slice %580 {offsets = [0, 256], sizes = [2, 128], strides = [1, 1]} : vector<2x512xf32> to vector<2x128xf32>
    %594 = math.tanh %593 : vector<2x128xf32>
    %595 = vector.extract_strided_slice %580 {offsets = [0, 384], sizes = [2, 128], strides = [1, 1]} : vector<2x512xf32> to vector<2x128xf32>
    %596 = arith.negf %595 : vector<2x128xf32>
    %597 = math.exp %596 : vector<2x128xf32>
    %cst_207 = arith.constant 1.000000e+00 : f32
    %598 = vector.broadcast %cst_207 : f32 to vector<2x128xf32>
    %599 = arith.addf %598, %597 : vector<2x128xf32>
    %600 = arith.divf %598, %599 : vector<2x128xf32>
    %601 = arith.mulf %592, %568 : vector<2x128xf32>
    %602 = arith.mulf %586, %594 : vector<2x128xf32>
    %603 = arith.addf %601, %602 : vector<2x128xf32>
    %604 = math.tanh %603 : vector<2x128xf32>
    %605 = arith.mulf %600, %604 : vector<2x128xf32>
    %c7_i32_208 = arith.constant 7 : i32
    %c0_i32_209 = arith.constant 0 : i32
    %606 = arith.addi %c0_i32_209, %c7_i32_208 : i32
    %607 = arith.index_cast %606 : i32 to index
    %c0_210 = arith.constant 0 : index
    %608 = vector.load %arg10[%607, %c0_210] : memref<16x512xf32, #tpu.memory_space<vmem>>, vector<1x512xf32>
    %c8_i32_211 = arith.constant 8 : i32
    %609 = arith.addi %c8_i32_211, %c7_i32_208 : i32
    %610 = arith.index_cast %609 : i32 to index
    %c0_212 = arith.constant 0 : index
    %611 = vector.load %arg10[%610, %c0_212] : memref<16x512xf32, #tpu.memory_space<vmem>>, vector<1x512xf32>
    %612 = tpu.concatenate %608, %611 in 0 : vector<1x512xf32>, vector<1x512xf32> -> vector<2x512xf32>
    %c0_213 = arith.constant 0 : index
    %c0_214 = arith.constant 0 : index
    %613 = vector.load %arg5[%c0_213, %c0_214] : memref<128x512xf32, #tpu.memory_space<vmem>>, vector<128x512xf32>
    %cst_215 = arith.constant dense<0.000000e+00> : vector<2x512xf32>
    %614 = tpu.matmul %605, %613, %cst_215 {dimension_numbers = #tpu.dot_dimension_numbers<[1], [0], [0], [1], [0, 0, 1, 1], [], []>} : vector<2x128xf32>, vector<128x512xf32>, vector<2x512xf32> -> vector<2x512xf32>
    %615 = arith.addf %612, %614 : vector<2x512xf32>
    %616 = vector.extract_strided_slice %615 {offsets = [0, 0], sizes = [2, 128], strides = [1, 1]} : vector<2x512xf32> to vector<2x128xf32>
    %617 = arith.negf %616 : vector<2x128xf32>
    %618 = math.exp %617 : vector<2x128xf32>
    %cst_216 = arith.constant 1.000000e+00 : f32
    %619 = vector.broadcast %cst_216 : f32 to vector<2x128xf32>
    %620 = arith.addf %619, %618 : vector<2x128xf32>
    %621 = arith.divf %619, %620 : vector<2x128xf32>
    %622 = vector.extract_strided_slice %615 {offsets = [0, 128], sizes = [2, 128], strides = [1, 1]} : vector<2x512xf32> to vector<2x128xf32>
    %623 = arith.negf %622 : vector<2x128xf32>
    %624 = math.exp %623 : vector<2x128xf32>
    %cst_217 = arith.constant 1.000000e+00 : f32
    %625 = vector.broadcast %cst_217 : f32 to vector<2x128xf32>
    %626 = arith.addf %625, %624 : vector<2x128xf32>
    %627 = arith.divf %625, %626 : vector<2x128xf32>
    %628 = vector.extract_strided_slice %615 {offsets = [0, 256], sizes = [2, 128], strides = [1, 1]} : vector<2x512xf32> to vector<2x128xf32>
    %629 = math.tanh %628 : vector<2x128xf32>
    %630 = vector.extract_strided_slice %615 {offsets = [0, 384], sizes = [2, 128], strides = [1, 1]} : vector<2x512xf32> to vector<2x128xf32>
    %631 = arith.negf %630 : vector<2x128xf32>
    %632 = math.exp %631 : vector<2x128xf32>
    %cst_218 = arith.constant 1.000000e+00 : f32
    %633 = vector.broadcast %cst_218 : f32 to vector<2x128xf32>
    %634 = arith.addf %633, %632 : vector<2x128xf32>
    %635 = arith.divf %633, %634 : vector<2x128xf32>
    %636 = arith.mulf %627, %603 : vector<2x128xf32>
    %637 = arith.mulf %621, %629 : vector<2x128xf32>
    %638 = arith.addf %636, %637 : vector<2x128xf32>
    %639 = math.tanh %638 : vector<2x128xf32>
    %640 = arith.mulf %635, %639 : vector<2x128xf32>
    %c8_i32_219 = arith.constant 8 : i32
    %c0_220 = arith.constant 0 : index
    %c0_221 = arith.constant 0 : index
    %641 = vector.load %arg7[%c0_220, %c0_221] : memref<128x6xf32, #tpu.memory_space<vmem>>, vector<128x6xf32>
    %cst_222 = arith.constant dense<0.000000e+00> : vector<2x6xf32>
    %642 = tpu.matmul %640, %641, %cst_222 {dimension_numbers = #tpu.dot_dimension_numbers<[1], [0], [0], [1], [0, 0, 1, 1], [], []>} : vector<2x128xf32>, vector<128x6xf32>, vector<2x6xf32> -> vector<2x6xf32>
    %c0_223 = arith.constant 0 : index
    %c0_224 = arith.constant 0 : index
    %643 = vector.load %arg8[%c0_223, %c0_224] : memref<1x6xf32, #tpu.memory_space<vmem>>, vector<1x6xf32>
    %644 = vector.broadcast %643 : vector<1x6xf32> to vector<2x6xf32>
    %645 = arith.addf %642, %644 : vector<2x6xf32>
    %c0_225 = arith.constant 0 : index
    %c0_226 = arith.constant 0 : index
    %646 = vector.load %arg9[%c0_225, %c0_226] : memref<2x6xf32, #tpu.memory_space<vmem>>, vector<2x6xf32>
    tpu.vector_store %arg9[%c0_225, %c0_226], %645 {strides = array<i32>} : memref<2x6xf32, #tpu.memory_space<vmem>>, vector<2x6xf32>,
    return
  }
}

</mosaic_0001>

<bundles_post_ra>
// kernel: pose_estimation_lstm_forward.1
= control target key start
LH: loop header
LB: loop body
LE: loop exit
PB: predicated region body
PF: predicated region fallthrough
CT: control target
= control target key end

     0   :  { %14 = vsyncpa [#allocation5], 0  ;;  %s6455_s0 = inlined_call_operand.vmem [shape: f32[2,8,128], index: 0, kind: input, shape index: {}]   ;;  %s6456_s1 = inlined_call_operand.hbm [shape: f32[128,512], index: 1, kind: input, shape index: {}]   ;;  %s6457_s2 = inlined_call_operand.hbm [shape: f32[128,512], index: 2, kind: input, shape index: {}]   ;;  %s6458_s3 = inlined_call_operand.vmem [shape: f32[1,512], index: 3, kind: input, shape index: {}]   ;;  %s6459_s4 = inlined_call_operand.hbm [shape: f32[128,512], index: 4, kind: input, shape index: {}]   ;;  %s6460_s5 = inlined_call_operand.hbm [shape: f32[128,512], index: 5, kind: input, shape index: {}]   ;;  %s6461_s6 = inlined_call_operand.vmem [shape: f32[1,512], index: 6, kind: input, shape index: {}]   ;;  %s6462_s7 = inlined_call_operand.vmem [shape: f32[128,6], index: 7, kind: input, shape index: {}]   ;;  %s6463_s8 = inlined_call_operand.vmem [shape: f32[1,6], index: 8, kind: input, shape index: {}]   ;;  %s6464_s9 = inlined_call_operand.hbm [shape: f32[2,6], index: 9, kind: output, shape index: {}]  }
   0x1   :  { %15 = vsyncpa [#allocation8], 0 }
   0x2   :  { %16 = vsyncpa [#allocation11], 0 }
   0x3   :  { %17 = vsyncpa [#allocation6], 0  ;;  %s37_s11 = sshll.u32 %s6457_s2, 4  ;;  %s4358_s12 = smov [#allocation7]   ;;  %s38_s11 = int_to_ptr.hbm [resolvable:$true] %s37_s11 }
   0x4   :  { %s39_s13 = sshll.u32 %s4358_s12, 4  ;;  %s24_s16 = sshll.u32 %s6456_s1, 4  ;;  %s40_s13 = int_to_ptr.vmem [resolvable:$true] %s39_s13  ;;  %s25_s16 = int_to_ptr.hbm [resolvable:$true] %s24_s16 }
   0x5   :  { %s4359_s17 = smov 512   ;;  %s4360_s18 = smov 32  }
   0x6   :  { %45 = dma.hbm_to_vmem [thread:$0]  %s38_s11, 8192, %s40_s13, [#allocation8], %s4359_s17, %s4359_s17, %s4360_s18  }
   0x7   :  { %s4361_s19 = smov [#allocation4]   ;;  %s52_s23 = sshll.u32 %s6459_s4, 4  ;;  %s53_s23 = int_to_ptr.hbm [resolvable:$true] %s52_s23 }
   0x8   :  { %s26_s20 = sshll.u32 %s4361_s19, 4  ;;  %s65_s25 = sshll.u32 %s6460_s5, 4  ;;  %s27_s20 = int_to_ptr.vmem [resolvable:$true] %s26_s20  ;;  %s66_s25 = int_to_ptr.hbm [resolvable:$true] %s65_s25 }
   0x9   :  { %32 = dma.hbm_to_vmem [thread:$0]  %s25_s16, 8192, %s27_s20, [#allocation5], %s4359_s17, %s4359_s17, %s4360_s18  }
   0xa   :  { %s4362_s26 = smov [#allocation9]   ;;  %s4363_s1 = smov [#allocation10]  }
   0xb   :  { %s54_s27 = sshll.u32 %s4362_s26, 4  ;;  %s67_s28 = sshll.u32 %s4363_s1, 4  ;;  %s55_s27 = int_to_ptr.vmem [resolvable:$true] %s54_s27  ;;  %s68_s28 = int_to_ptr.vmem [resolvable:$true] %s67_s28 }
   0xc   :  { %60 = dma.hbm_to_vmem [thread:$0]  %s53_s23, 8192, %s55_s27, [#allocation8], %s4359_s17, %s4359_s17, %s4360_s18  }
   0xd   :  { %73 = dma.hbm_to_vmem [thread:$0]  %s66_s25, 8192, %s68_s28, [#allocation11], %s4359_s17, %s4359_s17, %s4360_s18  }
   0xe   :  { %4350 = dma.done.wait [#allocation5], 8192  }
   0xf   :  { %4351 = vsyncadd [#allocation5], 4294959104 }
  0x10   :  { %4352 = dma.done.wait [#allocation8], 16384  }
  0x11   :  { %4353 = vsyncadd [#allocation8], 4294950912 }
  0x12   :  { %4354 = dma.done.wait [#allocation11], 8192  }
  0x13   :  { %4355 = vsyncadd [#allocation11], 4294959104  ;;  %v158_v0 = vld [vmem:[#allocation4 + $0x1e0] sm:$0xff]  ;;  %v159_v1 = vld [vmem:[#allocation4 + $0x1e8] sm:$0xff]  ;;  %vm293_vm0 = vcmask 1040384   ;;  %s4365_s16 = smov [#allocation12]  }
  0x14   :  { %v160_v2 = vld [vmem:[#allocation4 + $0x1f0] sm:$0xff]  ;;  %172 = vmatpush.msra.mxu0 %v158_v0  ;;  %195 = vmatpush.msra.mxu1 %v159_v1  ;;  %v161_v3 = vld [vmem:[#allocation4 + $0x1f8] sm:$0xff]  ;;  %v154_v4 = vld [vmem:[#allocation4 + $0x1c0] sm:$0xff]  ;;  %s3839_s17 = sshll.u32 %s4365_s16, 4  ;;  %s3841_s20 = sshll.u32 %s6464_s9, 4  ;;  %s3840_s17 = int_to_ptr.vmem [resolvable:$true] %s3839_s17  ;;  %s3842_s20 = int_to_ptr.hbm [resolvable:$true] %s3841_s20 }
  0x15   :  { %v155_v5 = vld [vmem:[#allocation4 + $0x1c8] sm:$0xff]  ;;  %218 = vmatpush.msra.mxu2 %v160_v2  ;;  %241 = vmatpush.msra.mxu3 %v161_v3  ;;  %v156_v6 = vld [vmem:[#allocation4 + $0x1d0] sm:$0xff]  ;;  %v157_v7 = vld [vmem:[#allocation4 + $0x1d8] sm:$0xff] }
  0x16   :  { %v150_v8 = vld [vmem:[#allocation4 + $0x1a0] sm:$0xff]  ;;  %173 = vmatpush.msra.mxu0 %v154_v4  ;;  %196 = vmatpush.msra.mxu1 %v155_v5  ;;  %v151_v9 = vld [vmem:[#allocation4 + $0x1a8] sm:$0xff]  ;;  %v152_v10 = vld [vmem:[#allocation4 + $0x1b0] sm:$0xff] }
  0x17   :  { %v153_v11 = vld [vmem:[#allocation4 + $0x1b8] sm:$0xff]  ;;  %219 = vmatpush.msra.mxu2 %v156_v6  ;;  %242 = vmatpush.msra.mxu3 %v157_v7  ;;  %v146_v12 = vld [vmem:[#allocation4 + $0x180] sm:$0xff]  ;;  %v147_v13 = vld [vmem:[#allocation4 + $0x188] sm:$0xff] }
  0x18   :  { %174 = vmatpush.msra.mxu0 %v150_v8  ;;  %197 = vmatpush.msra.mxu1 %v151_v9  ;;  %v148_v14 = vld [vmem:[#allocation4 + $0x190] sm:$0xff]  ;;  %v149_v15 = vld [vmem:[#allocation4 + $0x198] sm:$0xff]  ;;  %v142_v16 = vld [vmem:[#allocation4 + $0x160] sm:$0xff] }
  0x19   :  { %220 = vmatpush.msra.mxu2 %v152_v10  ;;  %243 = vmatpush.msra.mxu3 %v153_v11  ;;  %v143_v17 = vld [vmem:[#allocation4 + $0x168] sm:$0xff]  ;;  %v144_v18 = vld [vmem:[#allocation4 + $0x170] sm:$0xff]  ;;  %v145_v19 = vld [vmem:[#allocation4 + $0x178] sm:$0xff] }
  0x1a   :  { %175 = vmatpush.msra.mxu0 %v146_v12  ;;  %198 = vmatpush.msra.mxu1 %v147_v13  ;;  %v138_v20 = vld [vmem:[#allocation4 + $0x140] sm:$0xff]  ;;  %v139_v21 = vld [vmem:[#allocation4 + $0x148] sm:$0xff]  ;;  %v140_v22 = vld [vmem:[#allocation4 + $0x150] sm:$0xff] }
  0x1b   :  { %221 = vmatpush.msra.mxu2 %v148_v14  ;;  %244 = vmatpush.msra.mxu3 %v149_v15  ;;  %v141_v23 = vld [vmem:[#allocation4 + $0x158] sm:$0xff]  ;;  %v134_v24 = vld [vmem:[#allocation4 + $0x120] sm:$0xff]  ;;  %v135_v25 = vld [vmem:[#allocation4 + $0x128] sm:$0xff] }
  0x1c   :  { %176 = vmatpush.msra.mxu0 %v142_v16  ;;  %199 = vmatpush.msra.mxu1 %v143_v17  ;;  %v136_v26 = vld [vmem:[#allocation4 + $0x130] sm:$0xff]  ;;  %v137_v27 = vld [vmem:[#allocation4 + $0x138] sm:$0xff]  ;;  %v130_v28 = vld [vmem:[#allocation4 + $0x100] sm:$0xff] }
  0x1d   :  { %222 = vmatpush.msra.mxu2 %v144_v18  ;;  %245 = vmatpush.msra.mxu3 %v145_v19  ;;  %v131_v29 = vld [vmem:[#allocation4 + $0x108] sm:$0xff]  ;;  %v132_v30 = vld [vmem:[#allocation4 + $0x110] sm:$0xff]  ;;  %v133_v31 = vld [vmem:[#allocation4 + $0x118] sm:$0xff] }
  0x1e   :  { %177 = vmatpush.msra.mxu0 %v138_v20  ;;  %200 = vmatpush.msra.mxu1 %v139_v21  ;;  %v126_v32 = vld [vmem:[#allocation4 + $0xe0] sm:$0xff]  ;;  %v127_v33 = vld [vmem:[#allocation4 + $0xe8] sm:$0xff]  ;;  %v128_v34 = vld [vmem:[#allocation4 + $0xf0] sm:$0xff] }
  0x1f   :  { %223 = vmatpush.msra.mxu2 %v140_v22  ;;  %246 = vmatpush.msra.mxu3 %v141_v23  ;;  %v129_v35 = vld [vmem:[#allocation4 + $0xf8] sm:$0xff]  ;;  %v122_v36 = vld [vmem:[#allocation4 + $0xc0] sm:$0xff]  ;;  %v123_v37 = vld [vmem:[#allocation4 + $0xc8] sm:$0xff] }
  0x20   :  { %178 = vmatpush.msra.mxu0 %v134_v24  ;;  %201 = vmatpush.msra.mxu1 %v135_v25  ;;  %v124_v38 = vld [vmem:[#allocation4 + $0xd0] sm:$0xff]  ;;  %v125_v39 = vld [vmem:[#allocation4 + $0xd8] sm:$0xff]  ;;  %v118_v40 = vld [vmem:[#allocation4 + $0xa0] sm:$0xff] }
  0x21   :  { %224 = vmatpush.msra.mxu2 %v136_v26  ;;  %247 = vmatpush.msra.mxu3 %v137_v27  ;;  %v119_v41 = vld [vmem:[#allocation4 + $0xa8] sm:$0xff]  ;;  %v120_v42 = vld [vmem:[#allocation4 + $0xb0] sm:$0xff]  ;;  %v121_v43 = vld [vmem:[#allocation4 + $0xb8] sm:$0xff] }
  0x22   :  { %179 = vmatpush.msra.mxu0 %v130_v28  ;;  %202 = vmatpush.msra.mxu1 %v131_v29  ;;  %v114_v44 = vld [vmem:[#allocation4 + $0x80] sm:$0xff]  ;;  %v115_v45 = vld [vmem:[#allocation4 + $0x88] sm:$0xff]  ;;  %v116_v46 = vld [vmem:[#allocation4 + $0x90] sm:$0xff] }
  0x23   :  { %225 = vmatpush.msra.mxu2 %v132_v30  ;;  %248 = vmatpush.msra.mxu3 %v133_v31  ;;  %v117_v47 = vld [vmem:[#allocation4 + $0x98] sm:$0xff]  ;;  %v110_v48 = vld [vmem:[#allocation4 + $0x60] sm:$0xff]  ;;  %v111_v49 = vld [vmem:[#allocation4 + $0x68] sm:$0xff] }
  0x24   :  { %180 = vmatpush.msra.mxu0 %v126_v32  ;;  %203 = vmatpush.msra.mxu1 %v127_v33  ;;  %v112_v50 = vld [vmem:[#allocation4 + $0x70] sm:$0xff]  ;;  %v113_v51 = vld [vmem:[#allocation4 + $0x78] sm:$0xff]  ;;  %v106_v52 = vld [vmem:[#allocation4 + $0x40] sm:$0xff] }
  0x25   :  { %226 = vmatpush.msra.mxu2 %v128_v34  ;;  %249 = vmatpush.msra.mxu3 %v129_v35  ;;  %v107_v53 = vld [vmem:[#allocation4 + $0x48] sm:$0xff]  ;;  %v108_v54 = vld [vmem:[#allocation4 + $0x50] sm:$0xff]  ;;  %v109_v55 = vld [vmem:[#allocation4 + $0x58] sm:$0xff] }
  0x26   :  { %181 = vmatpush.msra.mxu0 %v122_v36  ;;  %204 = vmatpush.msra.mxu1 %v123_v37  ;;  %v102_v56 = vld [vmem:[#allocation4 + $0x20] sm:$0xff]  ;;  %v103_v57 = vld [vmem:[#allocation4 + $0x28] sm:$0xff]  ;;  %v104_v58 = vld [vmem:[#allocation4 + $0x30] sm:$0xff] }
  0x27   :  { %227 = vmatpush.msra.mxu2 %v124_v38  ;;  %250 = vmatpush.msra.mxu3 %v125_v39  ;;  %v105_v59 = vld [vmem:[#allocation4 + $0x38] sm:$0xff]  ;;  %v98_v60 = vld [vmem:[#allocation4] sm:$0xff]  ;;  %v99_v61 = vld [vmem:[#allocation4 + $0x8] sm:$0xff] }
  0x28   :  { %182 = vmatpush.msra.mxu0 %v118_v40  ;;  %205 = vmatpush.msra.mxu1 %v119_v41  ;;  %v100_v62 = vld [vmem:[#allocation4 + $0x10] sm:$0xff]  ;;  %v101_v63 = vld [vmem:[#allocation4 + $0x18] sm:$0xff]  ;;  %v4431_v1 = vld [vmem:[#allocation7 + $0x1e0] sm:$0xff] }
  0x29   :  { %228 = vmatpush.msra.mxu2 %v120_v42  ;;  %251 = vmatpush.msra.mxu3 %v121_v43  ;;  %v96_v0 = vld [vmem:[%s6455_s0] sm:$0xff]  ;;  %v4433_v2 = vld [vmem:[#allocation7 + $0x1e8] sm:$0xff]  ;;  %v4437_v4 = vld [vmem:[#allocation7 + $0x1f8] sm:$0xff] }
  0x2a   :  { %183 = vmatpush.msra.mxu0 %v114_v44  ;;  %206 = vmatpush.msra.mxu1 %v115_v45  ;;  %v4435_v3 = vld [vmem:[#allocation7 + $0x1f0] sm:$0xff]  ;;  %v4439_v5 = vld [vmem:[#allocation7 + $0x1c0] sm:$0xff]  ;;  %v4441_v6 = vld [vmem:[#allocation7 + $0x1c8] sm:$0xff] }
  0x2b   :  { %229 = vmatpush.msra.mxu2 %v116_v46  ;;  %252 = vmatpush.msra.mxu3 %v117_v47  ;;  %v4445_v7 = vld [vmem:[#allocation7 + $0x1d0] sm:$0xff]  ;;  %v4447_v8 = vld [vmem:[#allocation7 + $0x1d8] sm:$0xff]  ;;  %v4451_v9 = vld [vmem:[#allocation7 + $0x1a0] sm:$0xff] }
  0x2c   :  { %184 = vmatpush.msra.mxu0 %v110_v48  ;;  %207 = vmatpush.msra.mxu1 %v111_v49  ;;  %v4453_v10 = vld [vmem:[#allocation7 + $0x1a8] sm:$0xff]  ;;  %v4457_v11 = vld [vmem:[#allocation7 + $0x1b0] sm:$0xff]  ;;  %v4459_v12 = vld [vmem:[#allocation7 + $0x1b8] sm:$0xff] }
  0x2d   :  { %230 = vmatpush.msra.mxu2 %v112_v50  ;;  %253 = vmatpush.msra.mxu3 %v113_v51  ;;  %v4465_v13 = vld [vmem:[#allocation7 + $0x180] sm:$0xff]  ;;  %v4467_v14 = vld [vmem:[#allocation7 + $0x188] sm:$0xff]  ;;  %v4471_v15 = vld [vmem:[#allocation7 + $0x190] sm:$0xff] }
  0x2e   :  { %185 = vmatpush.msra.mxu0 %v106_v52  ;;  %208 = vmatpush.msra.mxu1 %v107_v53  ;;  %v4473_v16 = vld [vmem:[#allocation7 + $0x198] sm:$0xff]  ;;  %v4480_v18 = vld [vmem:[#allocation7 + $0x160] sm:$0xff]  ;;  %v4482_v19 = vld [vmem:[#allocation7 + $0x168] sm:$0xff] }
  0x2f   :  { %231 = vmatpush.msra.mxu2 %v108_v54  ;;  %254 = vmatpush.msra.mxu3 %v109_v55  ;;  %v97_v17 = vld [vmem:[%s6455_s0 + $0x8] sm:$0xff]  ;;  %v4486_v20 = vld [vmem:[#allocation7 + $0x170] sm:$0xff]  ;;  %v4490_v22 = vld [vmem:[#allocation7 + $0x140] sm:$0xff] }
  0x30   :  { %186 = vmatpush.msra.mxu0 %v102_v56  ;;  %209 = vmatpush.msra.mxu1 %v103_v57  ;;  %v4488_v21 = vld [vmem:[#allocation7 + $0x178] sm:$0xff]  ;;  %v4492_v23 = vld [vmem:[#allocation7 + $0x148] sm:$0xff]  ;;  %v4496_v24 = vld [vmem:[#allocation7 + $0x150] sm:$0xff] }
  0x31   :  { %232 = vmatpush.msra.mxu2 %v104_v58  ;;  %255 = vmatpush.msra.mxu3 %v105_v59  ;;  %v4498_v25 = vld [vmem:[#allocation7 + $0x158] sm:$0xff]  ;;  %v4502_v26 = vld [vmem:[#allocation7 + $0x120] sm:$0xff]  ;;  %v4504_v27 = vld [vmem:[#allocation7 + $0x128] sm:$0xff] }
  0x32   :  { %187 = vmatpush.msra.mxu0 %v98_v60  ;;  %210 = vmatpush.msra.mxu1 %v99_v61  ;;  %v4508_v28 = vld [vmem:[#allocation7 + $0x130] sm:$0xff]  ;;  %v4510_v29 = vld [vmem:[#allocation7 + $0x138] sm:$0xff]  ;;  %v4516_v30 = vld [vmem:[#allocation7 + $0x100] sm:$0xff] }
  0x33   :  { %233 = vmatpush.msra.mxu2 %v100_v62  ;;  %256 = vmatpush.msra.mxu3 %v101_v63  ;;  %v4518_v31 = vld [vmem:[#allocation7 + $0x108] sm:$0xff]  ;;  %v4522_v32 = vld [vmem:[#allocation7 + $0x110] sm:$0xff]  ;;  %v4524_v33 = vld [vmem:[#allocation7 + $0x118] sm:$0xff] }
  0x34   :  { %234 = vmatmul.f32.vlgmr.msra.gmra.mxu2 %v96_v0  ;;  %257 = vmatmul.f32.vlgmr.msra.gmra.mxu3 %v96_v0  ;;  %v4526_v34 = vld [vmem:[#allocation7 + $0xe0] sm:$0xff]  ;;  %v4528_v35 = vld [vmem:[#allocation7 + $0xe8] sm:$0xff]  ;;  %v4532_v36 = vld [vmem:[#allocation7 + $0xf0] sm:$0xff] }
  0x35   :  { %362 = vmatpush.msrb.mxu0 %v4431_v1  ;;  %382 = vmatpush.msrb.mxu1 %v4433_v2  ;;  %v4534_v37 = vld [vmem:[#allocation7 + $0xf8] sm:$0xff]  ;;  %v4538_v38 = vld [vmem:[#allocation7 + $0xc0] sm:$0xff]  ;;  %v4540_v39 = vld [vmem:[#allocation7 + $0xc8] sm:$0xff] }
  0x36   :  { %402 = vmatpush.msrb.mxu2 %v4435_v3  ;;  %422 = vmatpush.msrb.mxu3 %v4437_v4  ;;  %v4544_v40 = vld [vmem:[#allocation7 + $0xd0] sm:$0xff]  ;;  %v4546_v41 = vld [vmem:[#allocation7 + $0xd8] sm:$0xff]  ;;  %v4550_v42 = vld [vmem:[#allocation7 + $0xa0] sm:$0xff] }
  0x37   :  { %363 = vmatpush.msrb.mxu0 %v4439_v5  ;;  %383 = vmatpush.msrb.mxu1 %v4441_v6  ;;  %v4552_v43 = vld [vmem:[#allocation7 + $0xa8] sm:$0xff]  ;;  %v4556_v44 = vld [vmem:[#allocation7 + $0xb0] sm:$0xff]  ;;  %v4558_v45 = vld [vmem:[#allocation7 + $0xb8] sm:$0xff] }
  0x38   :  { %403 = vmatpush.msrb.mxu2 %v4445_v7  ;;  %423 = vmatpush.msrb.mxu3 %v4447_v8  ;;  %v4562_v46 = vld [vmem:[#allocation7 + $0x80] sm:$0xff]  ;;  %v4564_v47 = vld [vmem:[#allocation7 + $0x88] sm:$0xff]  ;;  %v4568_v48 = vld [vmem:[#allocation7 + $0x90] sm:$0xff] }
  0x39   :  { %364 = vmatpush.msrb.mxu0 %v4451_v9  ;;  %384 = vmatpush.msrb.mxu1 %v4453_v10  ;;  %v4570_v49 = vld [vmem:[#allocation7 + $0x98] sm:$0xff]  ;;  %v4574_v50 = vld [vmem:[#allocation7 + $0x60] sm:$0xff]  ;;  %v4576_v51 = vld [vmem:[#allocation7 + $0x68] sm:$0xff] }
  0x3a   :  { %404 = vmatpush.msrb.mxu2 %v4457_v11  ;;  %424 = vmatpush.msrb.mxu3 %v4459_v12  ;;  %v4580_v52 = vld [vmem:[#allocation7 + $0x70] sm:$0xff]  ;;  %v4582_v53 = vld [vmem:[#allocation7 + $0x78] sm:$0xff]  ;;  %v4586_v54 = vld [vmem:[#allocation7 + $0x40] sm:$0xff] }
  0x3b   :  { %188 = vmatmul.f32.vlgmr.msra.gmra.mxu0 %v96_v0  ;;  %211 = vmatmul.f32.vlgmr.msra.gmra.mxu1 %v96_v0  ;;  %v4588_v55 = vld [vmem:[#allocation7 + $0x48] sm:$0xff]  ;;  %v4592_v56 = vld [vmem:[#allocation7 + $0x50] sm:$0xff]  ;;  %v4594_v57 = vld [vmem:[#allocation7 + $0x58] sm:$0xff] }
  0x3c   :  { %365 = vmatpush.msrb.mxu0 %v4465_v13  ;;  %385 = vmatpush.msrb.mxu1 %v4467_v14  ;;  %6614 = vst [vmem:[#allocation17_spill] sm:$0xff] %v4594_v57  ;;  %v4598_v58 = vld [vmem:[#allocation7 + $0x20] sm:$0xff]  ;;  %v4600_v59 = vld [vmem:[#allocation7 + $0x28] sm:$0xff]  ;;  %v4604_v60 = vld [vmem:[#allocation7 + $0x30] sm:$0xff] }
  0x3d   :  { %405 = vmatpush.msrb.mxu2 %v4471_v15  ;;  %425 = vmatpush.msrb.mxu3 %v4473_v16  ;;  %v4606_v61 = vld [vmem:[#allocation7 + $0x38] sm:$0xff]  ;;  %v4610_v62 = vld [vmem:[#allocation7] sm:$0xff]  ;;  %v4612_v63 = vld [vmem:[#allocation7 + $0x8] sm:$0xff] }
  0x3e   :  { %237 = vmatmul.f32.gmra.mxu2 %v97_v17  ;;  %260 = vmatmul.f32.gmra.mxu3 %v97_v17  ;;  %v4616_v0 = vld [vmem:[#allocation7 + $0x10] sm:$0xff] }
  0x3f   :  { %366 = vmatpush.msrb.mxu0 %v4480_v18  ;;  %386 = vmatpush.msrb.mxu1 %v4482_v19 }
  0x40   :  { %406 = vmatpush.msrb.mxu2 %v4486_v20  ;;  %426 = vmatpush.msrb.mxu3 %v4488_v21 }
  0x41   :  { %367 = vmatpush.msrb.mxu0 %v4490_v22  ;;  %387 = vmatpush.msrb.mxu1 %v4492_v23 }
  0x42   :  { %407 = vmatpush.msrb.mxu2 %v4496_v24  ;;  %427 = vmatpush.msrb.mxu3 %v4498_v25 }
  0x43   :  { %368 = vmatpush.msrb.mxu0 %v4502_v26  ;;  %388 = vmatpush.msrb.mxu1 %v4504_v27 }
  0x44   :  { %408 = vmatpush.msrb.mxu2 %v4508_v28  ;;  %428 = vmatpush.msrb.mxu3 %v4510_v29 }
  0x45   :  { %191 = vmatmul.f32.gmra.mxu0 %v97_v17  ;;  %214 = vmatmul.f32.gmra.mxu1 %v97_v17  ;;  %v4618_v17 = vld [vmem:[#allocation7 + $0x18] sm:$0xff] }
  0x46   :  { %369 = vmatpush.msrb.mxu0 %v4516_v30  ;;  %389 = vmatpush.msrb.mxu1 %v4518_v31 }
  0x47   :  { %409 = vmatpush.msrb.mxu2 %v4522_v32  ;;  %429 = vmatpush.msrb.mxu3 %v4524_v33 }
  0x48   :  { %370 = vmatpush.msrb.mxu0 %v4526_v34  ;;  %390 = vmatpush.msrb.mxu1 %v4528_v35 }
  0x49   :  { %410 = vmatpush.msrb.mxu2 %v4532_v36  ;;  %430 = vmatpush.msrb.mxu3 %v4534_v37 }
  0x4a   :  { %371 = vmatpush.msrb.mxu0 %v4538_v38  ;;  %391 = vmatpush.msrb.mxu1 %v4540_v39 }
  0x4b   :  { %411 = vmatpush.msrb.mxu2 %v4544_v40  ;;  %431 = vmatpush.msrb.mxu3 %v4546_v41 }
  0x4c   :  { %372 = vmatpush.msrb.mxu0 %v4550_v42  ;;  %392 = vmatpush.msrb.mxu1 %v4552_v43 }
  0x4d   :  { %412 = vmatpush.msrb.mxu2 %v4556_v44  ;;  %432 = vmatpush.msrb.mxu3 %v4558_v45 }
  0x4e   :  { %373 = vmatpush.msrb.mxu0 %v4562_v46  ;;  %393 = vmatpush.msrb.mxu1 %v4564_v47 }
  0x4f   :  { %413 = vmatpush.msrb.mxu2 %v4568_v48  ;;  %433 = vmatpush.msrb.mxu3 %v4570_v49 }
  0x50   :  { %374 = vmatpush.msrb.mxu0 %v4574_v50  ;;  %394 = vmatpush.msrb.mxu1 %v4576_v51 }
  0x51   :  { %414 = vmatpush.msrb.mxu2 %v4580_v52  ;;  %434 = vmatpush.msrb.mxu3 %v4582_v53 }
  0x52   :  { %375 = vmatpush.msrb.mxu0 %v4586_v54  ;;  %395 = vmatpush.msrb.mxu1 %v4588_v55 }
  0x53   :  { %415 = vmatpush.msrb.mxu2 %v4592_v56  ;;  %435 = vmatpush.msrb.mxu3 %v4594_v57  ;;  %v6467_v57 = vmov 0.0  }
  0x54   :  { %376 = vmatpush.msrb.mxu0 %v4598_v58  ;;  %396 = vmatpush.msrb.mxu1 %v4600_v59 }
  0x55   :  { %416 = vmatpush.msrb.mxu2 %v4604_v60  ;;  %436 = vmatpush.msrb.mxu3 %v4606_v61 }
  0x56   :  { %377 = vmatpush.msrb.mxu0 %v4610_v62  ;;  %397 = vmatpush.msrb.mxu1 %v4612_v63 }
  0x57   :  { %417 = vmatpush.msrb.mxu2 %v4616_v0  ;;  %437 = vmatpush.msrb.mxu3 %v4618_v17 }
  0x58   :  { %378 = vmatmul.f32.vlgmr.msrb.gmra.mxu0 %v6467_v57  ;;  %398 = vmatmul.f32.vlgmr.msrb.gmra.mxu1 %v6467_v57 }
  0x59   :  { %418 = vmatmul.f32.vlgmr.msrb.gmra.mxu2 %v6467_v57  ;;  %438 = vmatmul.f32.vlgmr.msrb.gmra.mxu3 %v6467_v57  ;;  %v6615_v57 = vld [vmem:[#allocation17_spill] sm:$0xff] }
  0x5a   :  { %601 = vmatpush.msra.mxu0 %v4431_v1  ;;  %621 = vmatpush.msra.mxu1 %v4433_v2 }
  0x5b   :  { %641 = vmatpush.msra.mxu2 %v4435_v3  ;;  %661 = vmatpush.msra.mxu3 %v4437_v4 }
  0x5c   :  { %602 = vmatpush.msra.mxu0 %v4439_v5  ;;  %622 = vmatpush.msra.mxu1 %v4441_v6 }
  0x5d   :  { %642 = vmatpush.msra.mxu2 %v4445_v7  ;;  %662 = vmatpush.msra.mxu3 %v4447_v8 }
  0x5e   :  { %603 = vmatpush.msra.mxu0 %v4451_v9  ;;  %623 = vmatpush.msra.mxu1 %v4453_v10 }
  0x5f   :  { %643 = vmatpush.msra.mxu2 %v4457_v11  ;;  %663 = vmatpush.msra.mxu3 %v4459_v12 }
  0x60   :  { %604 = vmatpush.msra.mxu0 %v4465_v13  ;;  %624 = vmatpush.msra.mxu1 %v4467_v14 }
  0x61   :  { %644 = vmatpush.msra.mxu2 %v4471_v15  ;;  %664 = vmatpush.msra.mxu3 %v4473_v16 }
  0x62   :  { %605 = vmatpush.msra.mxu0 %v4480_v18  ;;  %625 = vmatpush.msra.mxu1 %v4482_v19 }
  0x63   :  { %645 = vmatpush.msra.mxu2 %v4486_v20  ;;  %665 = vmatpush.msra.mxu3 %v4488_v21 }
  0x64   :  { %606 = vmatpush.msra.mxu0 %v4490_v22  ;;  %626 = vmatpush.msra.mxu1 %v4492_v23 }
  0x65   :  { %646 = vmatpush.msra.mxu2 %v4496_v24  ;;  %666 = vmatpush.msra.mxu3 %v4498_v25 }
  0x66   :  { %607 = vmatpush.msra.mxu0 %v4502_v26  ;;  %627 = vmatpush.msra.mxu1 %v4504_v27 }
  0x67   :  { %647 = vmatpush.msra.mxu2 %v4508_v28  ;;  %667 = vmatpush.msra.mxu3 %v4510_v29 }
  0x68   :  { %608 = vmatpush.msra.mxu0 %v4516_v30  ;;  %628 = vmatpush.msra.mxu1 %v4518_v31 }
  0x69   :  { %648 = vmatpush.msra.mxu2 %v4522_v32  ;;  %668 = vmatpush.msra.mxu3 %v4524_v33 }
  0x6a   :  { %609 = vmatpush.msra.mxu0 %v4526_v34  ;;  %629 = vmatpush.msra.mxu1 %v4528_v35 }
  0x6b   :  { %649 = vmatpush.msra.mxu2 %v4532_v36  ;;  %669 = vmatpush.msra.mxu3 %v4534_v37 }
  0x6c   :  { %610 = vmatpush.msra.mxu0 %v4538_v38  ;;  %630 = vmatpush.msra.mxu1 %v4540_v39 }
  0x6d   :  { %650 = vmatpush.msra.mxu2 %v4544_v40  ;;  %670 = vmatpush.msra.mxu3 %v4546_v41 }
  0x6e   :  { %611 = vmatpush.msra.mxu0 %v4550_v42  ;;  %631 = vmatpush.msra.mxu1 %v4552_v43 }
  0x6f   :  { %651 = vmatpush.msra.mxu2 %v4556_v44  ;;  %671 = vmatpush.msra.mxu3 %v4558_v45 }
  0x70   :  { %612 = vmatpush.msra.mxu0 %v4562_v46  ;;  %632 = vmatpush.msra.mxu1 %v4564_v47 }
  0x71   :  { %652 = vmatpush.msra.mxu2 %v4568_v48  ;;  %672 = vmatpush.msra.mxu3 %v4570_v49 }
  0x72   :  { %613 = vmatpush.msra.mxu0 %v4574_v50  ;;  %633 = vmatpush.msra.mxu1 %v4576_v51 }
  0x73   :  { %653 = vmatpush.msra.mxu2 %v4580_v52  ;;  %673 = vmatpush.msra.mxu3 %v4582_v53 }
  0x74   :  { %614 = vmatpush.msra.mxu0 %v4586_v54  ;;  %634 = vmatpush.msra.mxu1 %v4588_v55 }
  0x75   :  { %654 = vmatpush.msra.mxu2 %v4592_v56  ;;  %674 = vmatpush.msra.mxu3 %v6615_v57 }
  0x76   :  { %615 = vmatpush.msra.mxu0 %v4598_v58  ;;  %635 = vmatpush.msra.mxu1 %v4600_v59 }
  0x77   :  { %655 = vmatpush.msra.mxu2 %v4604_v60  ;;  %675 = vmatpush.msra.mxu3 %v4606_v61 }
  0x78   :  { %616 = vmatpush.msra.mxu0 %v4610_v62  ;;  %636 = vmatpush.msra.mxu1 %v4612_v63 }
  0x79   :  { %656 = vmatpush.msra.mxu2 %v4616_v0  ;;  %676 = vmatpush.msra.mxu3 %v4618_v17 }
  0x7a   :  { %840 = vmatpush.msrb.mxu0 %v4431_v1  ;;  %860 = vmatpush.msrb.mxu1 %v4433_v2  ;;  %v162_v1 = vld [vmem:[%s6458_s3] sm:$0xf] }
  0x7b   :  { %880 = vmatpush.msrb.mxu2 %v4435_v3  ;;  %900 = vmatpush.msrb.mxu3 %v4437_v4  ;;  %v166_v2 = vperm.slane %v162_v1, 2  ;;  %v164_v3 = vperm.slane %v162_v1, 0  ;;  %v165_v4 = vperm.slane %v162_v1, 1 }
  0x7c   :  { %841 = vmatpush.msrb.mxu0 %v4439_v5  ;;  %861 = vmatpush.msrb.mxu1 %v4441_v6  ;;  %v167_v5 = vperm.slane %v162_v1, 3 }
  0x7d   :  { %881 = vmatpush.msrb.mxu2 %v4445_v7  ;;  %901 = vmatpush.msrb.mxu3 %v4447_v8 }
  0x7e   :  { %842 = vmatpush.msrb.mxu0 %v4451_v9  ;;  %862 = vmatpush.msrb.mxu1 %v4453_v10 }
  0x7f   :  { %882 = vmatpush.msrb.mxu2 %v4457_v11  ;;  %902 = vmatpush.msrb.mxu3 %v4459_v12 }
  0x80   :  { %843 = vmatpush.msrb.mxu0 %v4465_v13  ;;  %863 = vmatpush.msrb.mxu1 %v4467_v14 }
  0x81   :  { %883 = vmatpush.msrb.mxu2 %v4471_v15  ;;  %903 = vmatpush.msrb.mxu3 %v4473_v16 }
  0x82   :  { %844 = vmatpush.msrb.mxu0 %v4480_v18  ;;  %864 = vmatpush.msrb.mxu1 %v4482_v19 }
  0x83   :  { %884 = vmatpush.msrb.mxu2 %v4486_v20  ;;  %904 = vmatpush.msrb.mxu3 %v4488_v21 }
  0x84   :  { %845 = vmatpush.msrb.mxu0 %v4490_v22  ;;  %865 = vmatpush.msrb.mxu1 %v4492_v23 }
  0x85   :  { %885 = vmatpush.msrb.mxu2 %v4496_v24  ;;  %905 = vmatpush.msrb.mxu3 %v4498_v25 }
  0x86   :  { %846 = vmatpush.msrb.mxu0 %v4502_v26  ;;  %866 = vmatpush.msrb.mxu1 %v4504_v27 }
  0x87   :  { %886 = vmatpush.msrb.mxu2 %v4508_v28  ;;  %906 = vmatpush.msrb.mxu3 %v4510_v29 }
  0x88   :  { %847 = vmatpush.msrb.mxu0 %v4516_v30  ;;  %867 = vmatpush.msrb.mxu1 %v4518_v31 }
  0x89   :  { %887 = vmatpush.msrb.mxu2 %v4522_v32  ;;  %907 = vmatpush.msrb.mxu3 %v4524_v33 }
  0x8a   :  { %848 = vmatpush.msrb.mxu0 %v4526_v34  ;;  %868 = vmatpush.msrb.mxu1 %v4528_v35 }
  0x8b   :  { %888 = vmatpush.msrb.mxu2 %v4532_v36  ;;  %908 = vmatpush.msrb.mxu3 %v4534_v37 }
  0x8c   :  { %849 = vmatpush.msrb.mxu0 %v4538_v38  ;;  %869 = vmatpush.msrb.mxu1 %v4540_v39 }
  0x8d   :  { %889 = vmatpush.msrb.mxu2 %v4544_v40  ;;  %909 = vmatpush.msrb.mxu3 %v4546_v41 }
  0x8e   :  { %850 = vmatpush.msrb.mxu0 %v4550_v42  ;;  %870 = vmatpush.msrb.mxu1 %v4552_v43 }
  0x8f   :  { %890 = vmatpush.msrb.mxu2 %v4556_v44  ;;  %910 = vmatpush.msrb.mxu3 %v4558_v45 }
  0x90   :  { %851 = vmatpush.msrb.mxu0 %v4562_v46  ;;  %871 = vmatpush.msrb.mxu1 %v4564_v47 }
  0x91   :  { %891 = vmatpush.msrb.mxu2 %v4568_v48  ;;  %911 = vmatpush.msrb.mxu3 %v4570_v49 }
  0x92   :  { %852 = vmatpush.msrb.mxu0 %v4574_v50  ;;  %872 = vmatpush.msrb.mxu1 %v4576_v51 }
  0x93   :  { %892 = vmatpush.msrb.mxu2 %v4580_v52  ;;  %912 = vmatpush.msrb.mxu3 %v4582_v53 }
  0x94   :  { %853 = vmatpush.msrb.mxu0 %v4586_v54  ;;  %873 = vmatpush.msrb.mxu1 %v4588_v55 }
  0x95   :  { %893 = vmatpush.msrb.mxu2 %v4592_v56  ;;  %913 = vmatpush.msrb.mxu3 %v6615_v57 }
  0x96   :  { %854 = vmatpush.msrb.mxu0 %v4598_v58  ;;  %874 = vmatpush.msrb.mxu1 %v4600_v59 }
  0x97   :  { %894 = vmatpush.msrb.mxu2 %v4604_v60  ;;  %914 = vmatpush.msrb.mxu3 %v4606_v61 }
  0x98   :  { %855 = vmatpush.msrb.mxu0 %v4610_v62  ;;  %875 = vmatpush.msrb.mxu1 %v4612_v63 }
  0x99   :  { %895 = vmatpush.msrb.mxu2 %v4616_v0  ;;  %915 = vmatpush.msrb.mxu3 %v4618_v17 }
  0xb7   :  { %v235_v6 = vpop.f32.mrf.mxu2  ;;  %v258_v7 = vpop.f32.mrf.mxu3 }
  0xb8   :  { %v189_v8 = vpop.f32.mrf.mxu0  ;;  %v212_v9 = vpop.f32.mrf.mxu1  ;;  %v236_v10 = vadd.f32 %v235_v6, %v166_v2  ;;  %v259_v13 = vadd.f32 %v258_v7, %v167_v5 }
  0xb9   :  { %v190_v11 = vadd.f32 %v189_v8, %v164_v3  ;;  %v213_v12 = vadd.f32 %v212_v9, %v165_v4 }
  0xba   :  { %266 = vst [vmem:[#allocation2 + $0x10] sm:$0xff] %v236_v10 }
  0xbb   :  { %264 = vst [vmem:[#allocation2] sm:$0xff] %v190_v11 }
  0xbc   :  { %265 = vst [vmem:[#allocation2 + $0x8] sm:$0xff] %v213_v12 }
  0xbd   :  { %267 = vst [vmem:[#allocation2 + $0x18] sm:$0xff] %v259_v13 }
  0xc1   :  { %v238_v14 = vpop.f32.mrf.mxu2  ;;  %v261_v15 = vpop.f32.mrf.mxu3 }
  0xc2   :  { %v192_v16 = vpop.f32.mrf.mxu0  ;;  %v215_v18 = vpop.f32.mrf.mxu1  ;;  %v239_v19 = vadd.f32 %v238_v14, %v166_v2  ;;  %v262_v22 = vadd.f32 %v261_v15, %v167_v5 }
  0xc3   :  { %v193_v20 = vadd.f32 %v192_v16, %v164_v3  ;;  %v216_v21 = vadd.f32 %v215_v18, %v165_v4 }
  0xc4   :  { %270 = vst [vmem:[#allocation2 + $0x30] sm:$0xff] %v239_v19  ;;  %v272_v24 = vld [vmem:[#allocation2] ss:$8 sm:$0xf] }
  0xc5   :  { %268 = vst [vmem:[#allocation2 + $0x20] sm:$0xff] %v193_v20  ;;  %v276_v27 = vperm.slane %v272_v24, 0  ;;  %v277_v28 = vperm.slane %v272_v24, 1  ;;  %v279_v38 = vperm.slane %v272_v24, 3  ;;  %v278_v48 = vperm.slane %v272_v24, 2 }
  0xc6   :  { %269 = vst [vmem:[#allocation2 + $0x28] sm:$0xff] %v216_v21 }
  0xc7   :  { %271 = vst [vmem:[#allocation2 + $0x38] sm:$0xff] %v262_v22 }
  0xce   :  { %v274_v23 = vld [vmem:[#allocation2 + $0x20] ss:$8 sm:$0xf] }
  0xcf   :  { %v285_v25 = vperm.slane %v274_v23, 0  ;;  %v286_v26 = vperm.slane %v274_v23, 1  ;;  %v288_v37 = vperm.slane %v274_v23, 3  ;;  %v287_v47 = vperm.slane %v274_v23, 2 }
  0xd1   :  { %v294_v29 = vsel %vm293_vm0, %v276_v27, %v285_v25  ;;  %v295_v31 = vsel %vm293_vm0, %v277_v28, %v286_v26  ;;  %v297_v39 = vsel %vm293_vm0, %v279_v38, %v288_v37  ;;  %v296_v51 = vsel %vm293_vm0, %v278_v48, %v287_v47  ;;  %v514_v26 = vld [vmem:[#allocation2 + $0x21] ss:$8 sm:$0xf] }
  0xd2   :  { %v512_v27 = vld [vmem:[#allocation2 + $0x1] ss:$8 sm:$0xf]  ;;  %v525_v28 = vperm.slane %v514_v26, 0 }
  0xd5   :  { %v379_v30 = vpop.f32.mrf.mxu0  ;;  %v399_v32 = vpop.f32.mrf.mxu1 }
  0xd6   :  { %v442_v33 = vadd.f32 %v379_v30, %v294_v29  ;;  %v443_v34 = vadd.f32 %v399_v32, %v295_v31  ;;  %v526_v29 = vperm.slane %v514_v26, 1  ;;  %v516_v30 = vperm.slane %v512_v27, 0 }
  0xd7   :  { %v517_v31 = vperm.slane %v512_v27, 1 }
  0xd8   :  { %v3853_v35 = vmul.f32 -1.442695, %v442_v33  ;;  %v3854_v36 = vmul.f32 -1.442695, %v443_v34  ;;  %v533_v32 = vsel %vm293_vm0, %v516_v30, %v525_v28  ;;  %v4778_v30 = vld [vmem:[#allocation7 + $0x1e8] sm:$0xff] }
  0xd9   :  { %v534_v34 = vsel %vm293_vm0, %v517_v31, %v526_v29  ;;  %v4780_v31 = vld [vmem:[#allocation7 + $0x1f0] sm:$0xff] }
  0xda   :  { %3910 = vpow2.f32 %v3853_v35 }
  0xdb   :  { %3912 = vpow2.f32 %v3854_v36 }
  0xdc   :  { %v439_v40 = vpop.f32.mrf.mxu3  ;;  %v419_v49 = vpop.f32.mrf.mxu2 }
  0xdd   :  { %v445_v41 = vadd.f32 %v439_v40, %v297_v39  ;;  %v444_v54 = vadd.f32 %v419_v49, %v296_v51  ;;  %v528_v40 = vperm.slane %v514_v26, 3  ;;  %v518_v51 = vperm.slane %v512_v27, 2 }
  0xdf   :  { %v3855_v42 = vmul.f32 -1.442695, %v445_v41  ;;  %v519_v41 = vperm.slane %v512_v27, 3 }
  0xe0   :  { %v3911_v43 = vpop.eup %3910 }
  0xe1   :  { %v3913_v44 = vpop.eup %3912  ;;  %v449_v45 = vadd.f32 1.0, %v3911_v43  ;;  %3914 = vpow2.f32 %v3855_v42  ;;  %v536_v42 = vsel %vm293_vm0, %v519_v41, %v528_v40  ;;  %v4808_v40 = vld [vmem:[#allocation7 + $0x1b8] sm:$0xff]  ;;  %v4812_v41 = vld [vmem:[#allocation7 + $0x180] sm:$0xff] }
  0xe2   :  { %v468_v46 = vadd.f32 1.0, %v3913_v44 }
  0xe3   :  { %3916 = vrcp.f32 %v449_v45  ;;  %v461_v60 = vand.u32 2147483648, %v449_v45  ;;  %v459_v63 = vand.u32 2147483647, %v449_v45  ;;  %vm455_vm3 = vweird.f32 %v449_v45 }
  0xe4   :  { %3918 = vrcp.f32 %v468_v46  ;;  %v480_v61 = vand.u32 2147483648, %v468_v46  ;;  %v478_v17 = vand.u32 2147483647, %v468_v46  ;;  %vm474_vm4 = vweird.f32 %v468_v46 }
  0xe5   :  { %v462_v3 = vor.u32 1.1754944e-38, %v461_v60  ;;  %vm460_vm6 = vcmp.eq.f32.partialorder %v459_v63, 8.507059e+37 }
  0xe6   :  { %v481_v6 = vor.u32 1.1754944e-38, %v480_v61  ;;  %vm479_vm8 = vcmp.eq.f32.partialorder %v478_v17, 8.507059e+37 }
  0xe7   :  { %v3915_v50 = vpop.eup %3914 }
  0xe8   :  { %v488_v52 = vadd.f32 1.0, %v3915_v50  ;;  %v527_v50 = vperm.slane %v514_v26, 2 }
  0xe9   :  { %v3917_v53 = vpop.eup %3916 }
  0xea   :  { %v3919_v55 = vpop.eup %3918  ;;  %v451_v56 = vmul.f32 %v3917_v53, %v449_v45  ;;  %3920 = vrcp.f32 %v488_v52  ;;  %vm456_vm1 = vweird.f32 %v3917_v53  ;;  %v500_v19 = vand.u32 2147483648, %v488_v52 }
  0xeb   :  { %v470_v57 = vmul.f32 %v3919_v55, %v468_v46  ;;  %3922 = vtanh.f32 %v444_v54  ;;  %vm475_vm2 = vweird.f32 %v3919_v55  ;;  %vm457_vm5 = vmor %vm455_vm3, %vm456_vm1  ;;  %vm494_vm10 = vweird.f32 %v488_v52 }
  0xec   :  { %v452_v58 = vsub.f32 1.0, %v451_v56  ;;  %vm476_vm7 = vmor %vm474_vm4, %vm475_vm2  ;;  %v498_v20 = vand.u32 2147483647, %v488_v52  ;;  %v501_v22 = vor.u32 1.1754944e-38, %v500_v19  ;;  %v535_v54 = vsel %vm293_vm0, %v518_v51, %v527_v50  ;;  %v4838_v50 = vld [vmem:[#allocation7 + $0x148] sm:$0xff]  ;;  %v4840_v51 = vld [vmem:[#allocation7 + $0x150] sm:$0xff] }
  0xed   :  { %v471_v59 = vsub.f32 1.0, %v470_v57  ;;  %6623 = vst [vmem:[#allocation24_spill] sm:$0xff] %v4840_v51 }
  0xee   :  { %v453_v62 = vmul.f32 %v3917_v53, %v452_v58  ;;  %vm499_vm12 = vcmp.eq.f32.partialorder %v498_v20, 8.507059e+37 }
  0xef   :  { %v472_v0 = vmul.f32 %v3919_v55, %v471_v59 }
  0xf0   :  { %v3921_v1 = vpop.eup %3920  ;;  %v454_v2 = vadd.f32 %v3917_v53, %v453_v62 }
  0xf1   :  { %v473_v4 = vadd.f32 %v3919_v55, %v472_v0  ;;  %v490_v5 = vmul.f32 %v3921_v1, %v488_v52  ;;  %v3923_v8 = vpop.eup %3922  ;;  %vm495_vm9 = vweird.f32 %v3921_v1 }
  0xf2   :  { %v458_v7 = vsel %vm457_vm5, %v3917_v53, %v454_v2  ;;  %vm496_vm11 = vmor %vm494_vm10, %vm495_vm9 }
  0xf3   :  { %v463_v9 = vsel %vm460_vm6, %v462_v3, %v458_v7  ;;  %v477_v10 = vsel %vm476_vm7, %v3919_v55, %v473_v4  ;;  %v491_v11 = vsub.f32 1.0, %v490_v5 }
  0xf4   :  { %v482_v12 = vsel %vm479_vm8, %v481_v6, %v477_v10  ;;  %v505_v13 = vmul.f32 %v3923_v8, %v463_v9 }
  0xf5   :  { %v504_v14 = vmul.f32 0.0, %v482_v12  ;;  %v492_v15 = vmul.f32 %v3921_v1, %v491_v11 }
  0xf7   :  { %v4765_v16 = vadd.f32 %v505_v13, %v504_v14  ;;  %v493_v18 = vadd.f32 %v3921_v1, %v492_v15 }
  0xf9   :  { %3924 = vtanh.f32 %v4765_v16  ;;  %v497_v21 = vsel %vm496_vm11, %v3921_v1, %v493_v18 }
  0xfa   :  { %v502_v24 = vsel %vm499_vm12, %v501_v22, %v497_v21 }
  0xff   :  { %v3925_v23 = vpop.eup %3924 }
 0x100   :  { %v508_v25 = vmul.f32 %v3925_v23, %v502_v24 }
 0x102   :  { %617 = vmatmul.f32.vlgmr.msra.gmra.mxu0 %v508_v25  ;;  %509 = vst [vmem:[#allocation3] sm:$0x1] %v508_v25  ;;  %637 = vmatmul.f32.vlgmr.msra.gmra.mxu1 %v508_v25 }
 0x103   :  { %510 = vst [vmem:[#allocation3 + $0x7] sm:$0x2] %v508_v25  ;;  %657 = vmatmul.f32.vlgmr.msra.gmra.mxu2 %v508_v25  ;;  %677 = vmatmul.f32.vlgmr.msra.gmra.mxu3 %v508_v25 }
 0x104   :  { %1099 = vmatpush.msra.mxu1 %v4778_v30  ;;  %1119 = vmatpush.msra.mxu2 %v4780_v31 }
 0x17f   :  { %v618_v33 = vpop.f32.mrf.mxu0  ;;  %v638_v35 = vpop.f32.mrf.mxu1 }
 0x180   :  { %v681_v36 = vadd.f32 %v618_v33, %v533_v32  ;;  %v682_v37 = vadd.f32 %v638_v35, %v534_v34  ;;  %v4784_v32 = vld [vmem:[#allocation7 + $0x1f8] sm:$0xff]  ;;  %v4788_v33 = vld [vmem:[#allocation7 + $0x1c0] sm:$0xff]  ;;  %v4790_v34 = vld [vmem:[#allocation7 + $0x1c8] sm:$0xff] }
 0x181   :  { %6617 = vst [vmem:[#allocation18_spill] sm:$0xff] %v4784_v32  ;;  %1139 = vmatpush.msra.mxu3 %v4784_v32  ;;  %v4792_v35 = vld [vmem:[#allocation7 + $0x1d0] sm:$0xff]  ;;  %1100 = vmatpush.msra.mxu1 %v4790_v34 }
 0x182   :  { %v3856_v38 = vmul.f32 -1.442695, %v681_v36  ;;  %v3857_v39 = vmul.f32 -1.442695, %v682_v37  ;;  %6618 = vst [vmem:[#allocation19_spill] sm:$0xff] %v4788_v33  ;;  %v4796_v36 = vld [vmem:[#allocation7 + $0x1d8] sm:$0xff]  ;;  %1120 = vmatpush.msra.mxu2 %v4792_v35 }
 0x183   :  { %6619 = vst [vmem:[#allocation20_spill] sm:$0xff] %v4790_v34  ;;  %1140 = vmatpush.msra.mxu3 %v4796_v36  ;;  %v4800_v37 = vld [vmem:[#allocation7 + $0x1a0] sm:$0xff] }
 0x184   :  { %3926 = vpow2.f32 %v3856_v38  ;;  %v4802_v38 = vld [vmem:[#allocation7 + $0x1a8] sm:$0xff] }
 0x185   :  { %3928 = vpow2.f32 %v3857_v39  ;;  %v4804_v39 = vld [vmem:[#allocation7 + $0x1b0] sm:$0xff]  ;;  %1101 = vmatpush.msra.mxu1 %v4802_v38  ;;  %1141 = vmatpush.msra.mxu3 %v4808_v40 }
 0x186   :  { %v678_v43 = vpop.f32.mrf.mxu3  ;;  %v658_v52 = vpop.f32.mrf.mxu2  ;;  %1121 = vmatpush.msra.mxu2 %v4804_v39 }
 0x187   :  { %v684_v44 = vadd.f32 %v678_v43, %v536_v42  ;;  %v683_v57 = vadd.f32 %v658_v52, %v535_v54  ;;  %v4814_v42 = vld [vmem:[#allocation7 + $0x188] sm:$0xff]  ;;  %v4816_v43 = vld [vmem:[#allocation7 + $0x190] sm:$0xff]  ;;  %v4850_v54 = vld [vmem:[#allocation7 + $0x120] sm:$0xff] }
 0x188   :  { %6620 = vst [vmem:[#allocation21_spill] sm:$0xff] %v4814_v42  ;;  %1102 = vmatpush.msra.mxu1 %v4814_v42  ;;  %1122 = vmatpush.msra.mxu2 %v4816_v43  ;;  %v4842_v52 = vld [vmem:[#allocation2 + $0x22] ss:$8 sm:$0xf] }
 0x189   :  { %v3858_v45 = vmul.f32 -1.442695, %v684_v44  ;;  %6621 = vst [vmem:[#allocation22_spill] sm:$0xff] %v4816_v43  ;;  %v4820_v44 = vld [vmem:[#allocation7 + $0x198] sm:$0xff] }
 0x18a   :  { %v3927_v46 = vpop.eup %3926  ;;  %1142 = vmatpush.msra.mxu3 %v4820_v44 }
 0x18b   :  { %v3929_v47 = vpop.eup %3928  ;;  %v688_v48 = vadd.f32 1.0, %v3927_v46  ;;  %3930 = vpow2.f32 %v3858_v45  ;;  %v4824_v45 = vld [vmem:[#allocation7 + $0x160] sm:$0xff]  ;;  %v4826_v46 = vld [vmem:[#allocation7 + $0x168] sm:$0xff] }
 0x18c   :  { %v707_v49 = vadd.f32 1.0, %v3929_v47  ;;  %v4828_v47 = vld [vmem:[#allocation7 + $0x170] sm:$0xff]  ;;  %1103 = vmatpush.msra.mxu1 %v4826_v46 }
 0x18d   :  { %3932 = vrcp.f32 %v688_v48  ;;  %v700_v63 = vand.u32 2147483648, %v688_v48  ;;  %v698_v1 = vand.u32 2147483647, %v688_v48  ;;  %vm694_vm15 = vweird.f32 %v688_v48  ;;  %1123 = vmatpush.msra.mxu2 %v4828_v47 }
 0x18e   :  { %3934 = vrcp.f32 %v707_v49  ;;  %v719_v0 = vand.u32 2147483648, %v707_v49  ;;  %v717_v3 = vand.u32 2147483647, %v707_v49  ;;  %vm713_vm1 = vweird.f32 %v707_v49  ;;  %1104 = vmatpush.msra.mxu1 %v4838_v50 }
 0x18f   :  { %v701_v6 = vor.u32 1.1754944e-38, %v700_v63  ;;  %vm699_vm4 = vcmp.eq.f32.partialorder %v698_v1, 8.507059e+37  ;;  %1124 = vmatpush.msra.mxu2 %v4840_v51  ;;  %v4870_v63 = vld [vmem:[#allocation7 + $0x110] sm:$0xff] }
 0x190   :  { %v720_v9 = vor.u32 1.1754944e-38, %v719_v0  ;;  %vm718_vm5 = vcmp.eq.f32.partialorder %v717_v3, 8.507059e+37  ;;  %v4874_v0 = vld [vmem:[#allocation7 + $0x118] sm:$0xff]  ;;  %v4882_v3 = vld [vmem:[#allocation7 + $0xe8] sm:$0xff] }
 0x191   :  { %v3931_v53 = vpop.eup %3930 }
 0x192   :  { %v727_v55 = vadd.f32 1.0, %v3931_v53  ;;  %v4846_v53 = vld [vmem:[#allocation7 + $0x158] sm:$0xff] }
 0x193   :  { %v3933_v56 = vpop.eup %3932 }
 0x194   :  { %v3935_v58 = vpop.eup %3934  ;;  %v690_v59 = vmul.f32 %v3933_v56, %v688_v48  ;;  %3936 = vrcp.f32 %v727_v55  ;;  %vm695_vm13 = vweird.f32 %v3933_v56  ;;  %v739_v23 = vand.u32 2147483648, %v727_v55  ;;  %v4832_v48 = vld [vmem:[#allocation7 + $0x178] sm:$0xff] }
 0x195   :  { %v709_v60 = vmul.f32 %v3935_v58, %v707_v49  ;;  %3938 = vtanh.f32 %v683_v57  ;;  %vm714_vm14 = vweird.f32 %v3935_v58  ;;  %vm696_vm2 = vmor %vm694_vm15, %vm695_vm13  ;;  %vm733_vm7 = vweird.f32 %v727_v55  ;;  %6622 = vst [vmem:[#allocation23_spill] sm:$0xff] %v4832_v48  ;;  %1143 = vmatpush.msra.mxu3 %v4832_v48  ;;  %v4836_v49 = vld [vmem:[#allocation7 + $0x140] sm:$0xff] }
 0x196   :  { %v691_v61 = vsub.f32 1.0, %v690_v59  ;;  %vm715_vm3 = vmor %vm713_vm1, %vm714_vm14  ;;  %v737_v24 = vand.u32 2147483647, %v727_v55  ;;  %v740_v26 = vor.u32 1.1754944e-38, %v739_v23  ;;  %v764_v59 = vperm.slane %v4842_v52, 0 }
 0x197   :  { %v710_v62 = vsub.f32 1.0, %v709_v60  ;;  %1144 = vmatpush.msra.mxu3 %v4846_v53  ;;  %v4856_v57 = vld [vmem:[#allocation2 + $0x2] ss:$8 sm:$0xf]  ;;  %v765_v60 = vperm.slane %v4842_v52, 1 }
 0x198   :  { %v692_v17 = vmul.f32 %v3933_v56, %v691_v61  ;;  %vm738_vm9 = vcmp.eq.f32.partialorder %v737_v24, 8.507059e+37  ;;  %v4866_v61 = vld [vmem:[#allocation7 + $0x100] sm:$0xff]  ;;  %v756_v1 = vperm.slane %v4856_v57, 1  ;;  %v767_v24 = vperm.slane %v4842_v52, 3 }
 0x199   :  { %v711_v2 = vmul.f32 %v3935_v58, %v710_v62  ;;  %v4868_v62 = vld [vmem:[#allocation7 + $0x108] sm:$0xff] }
 0x19a   :  { %v3937_v4 = vpop.eup %3936  ;;  %v693_v5 = vadd.f32 %v3933_v56, %v692_v17  ;;  %v755_v17 = vperm.slane %v4856_v57, 0 }
 0x19b   :  { %v712_v7 = vadd.f32 %v3935_v58, %v711_v2  ;;  %v729_v8 = vmul.f32 %v3937_v4, %v727_v55  ;;  %v3939_v11 = vpop.eup %3938  ;;  %vm734_vm6 = vweird.f32 %v3937_v4  ;;  %v4852_v55 = vld [vmem:[#allocation7 + $0x128] sm:$0xff]  ;;  %v4880_v2 = vld [vmem:[#allocation7 + $0xe0] sm:$0xff] }
 0x19c   :  { %v697_v10 = vsel %vm696_vm2, %v3933_v56, %v693_v5  ;;  %vm735_vm8 = vmor %vm733_vm7, %vm734_vm6  ;;  %6624 = vst [vmem:[#allocation25_spill] sm:$0xff] %v4852_v55  ;;  %v4854_v56 = vld [vmem:[#allocation7 + $0x130] sm:$0xff]  ;;  %1105 = vmatpush.msra.mxu1 %v4852_v55  ;;  %v4888_v5 = vld [vmem:[#allocation7 + $0xf8] sm:$0xff] }
 0x19d   :  { %v702_v12 = vsel %vm699_vm4, %v701_v6, %v697_v10  ;;  %v716_v13 = vsel %vm715_vm3, %v3935_v58, %v712_v7  ;;  %v730_v14 = vsub.f32 1.0, %v729_v8  ;;  %6625 = vst [vmem:[#allocation26_spill] sm:$0xff] %v4854_v56  ;;  %v4860_v58 = vld [vmem:[#allocation7 + $0x138] sm:$0xff]  ;;  %1125 = vmatpush.msra.mxu2 %v4854_v56  ;;  %v772_v6 = vsel %vm293_vm0, %v755_v17, %v764_v59  ;;  %v4894_v10 = vld [vmem:[#allocation7 + $0xc0] sm:$0xff]  ;;  %v4932_v17 = vld [vmem:[#allocation7 + $0x68] sm:$0xff] }
 0x19e   :  { %v721_v15 = vsel %vm718_vm5, %v720_v9, %v716_v13  ;;  %v744_v18 = vmul.f32 %v3939_v11, %v702_v12  ;;  %6626 = vst [vmem:[#allocation27_spill] sm:$0xff] %v4860_v58  ;;  %1145 = vmatpush.msra.mxu3 %v4860_v58  ;;  %1106 = vmatpush.msra.mxu1 %v4868_v62  ;;  %v4896_v11 = vld [vmem:[#allocation7 + $0xc8] sm:$0xff]  ;;  %v4898_v12 = vld [vmem:[#allocation7 + $0xd0] sm:$0xff]  ;;  %v4928_v59 = vld [vmem:[#allocation7 + $0x98] sm:$0xff] }
 0x19f   :  { %v743_v19 = vmul.f32 %v721_v15, %v4765_v16  ;;  %v731_v20 = vmul.f32 %v3937_v4, %v730_v14  ;;  %v4776_v16 = vld [vmem:[#allocation7 + $0x1e0] sm:$0xff]  ;;  %1126 = vmatpush.msra.mxu2 %v4870_v63  ;;  %v773_v8 = vsel %vm293_vm0, %v756_v1, %v765_v60  ;;  %v4902_v15 = vld [vmem:[#allocation7 + $0xd8] sm:$0xff]  ;;  %6628 = vst [vmem:[#allocation29_spill] sm:$0xff] %v4928_v59  ;;  %v4936_v1 = vld [vmem:[#allocation7 + $0x70] sm:$0xff] }
 0x1a0   :  { %6616 = vst [vmem:[#allocation17_spill] sm:$0xff] %v4776_v16  ;;  %1079 = vmatpush.msra.mxu0 %v4776_v16  ;;  %1146 = vmatpush.msra.mxu3 %v4874_v0  ;;  %v4930_v60 = vld [vmem:[#allocation7 + $0x60] sm:$0xff] }
 0x1a1   :  { %v4773_v21 = vadd.f32 %v744_v18, %v743_v19  ;;  %v732_v22 = vadd.f32 %v3937_v4, %v731_v20  ;;  %1107 = vmatpush.msra.mxu1 %v4882_v3  ;;  %v4906_v18 = vld [vmem:[#allocation7 + $0xa0] sm:$0xff]  ;;  %v4908_v19 = vld [vmem:[#allocation7 + $0xa8] sm:$0xff]  ;;  %v4910_v20 = vld [vmem:[#allocation7 + $0xb0] sm:$0xff]  ;;  %6629 = vst [vmem:[#allocation30_spill] sm:$0xff] %v4930_v60 }
 0x1a2   :  { %1080 = vmatpush.msra.mxu0 %v4788_v33  ;;  %1147 = vmatpush.msra.mxu3 %v4888_v5  ;;  %6630 = vst [vmem:[#allocation31_spill] sm:$0xff] %v4932_v17 }
 0x1a3   :  { %3940 = vtanh.f32 %v4773_v21  ;;  %v736_v25 = vsel %vm735_vm8, %v3937_v4, %v732_v22  ;;  %v4884_v4 = vld [vmem:[#allocation7 + $0xf0] sm:$0xff]  ;;  %1108 = vmatpush.msra.mxu1 %v4896_v11  ;;  %6631 = vst [vmem:[#allocation32_spill] sm:$0xff] %v4936_v1 }
 0x1a4   :  { %v741_v28 = vsel %vm738_vm9, %v740_v26, %v736_v25  ;;  %1081 = vmatpush.msra.mxu0 %v4800_v37  ;;  %1127 = vmatpush.msra.mxu2 %v4884_v4  ;;  %v4915_v25 = vld [vmem:[#allocation7 + $0xb8] sm:$0xff]  ;;  %v4919_v26 = vld [vmem:[#allocation7 + $0x80] sm:$0xff] }
 0x1a5   :  { %1148 = vmatpush.msra.mxu3 %v4902_v15  ;;  %1109 = vmatpush.msra.mxu1 %v4908_v19 }
 0x1a6   :  { %1082 = vmatpush.msra.mxu0 %v4812_v41  ;;  %1128 = vmatpush.msra.mxu2 %v4898_v12 }
 0x1a7   :  { %1149 = vmatpush.msra.mxu3 %v4915_v25 }
 0x1a8   :  { %1083 = vmatpush.msra.mxu0 %v4824_v45  ;;  %1129 = vmatpush.msra.mxu2 %v4910_v20 }
 0x1a9   :  { %v3941_v27 = vpop.eup %3940  ;;  %1150 = vmatpush.msra.mxu3 %v4928_v59  ;;  %v4953_v59 = vld [vmem:[#allocation7 + $0x20] sm:$0xff] }
 0x1aa   :  { %v747_v29 = vmul.f32 %v3941_v27, %v741_v28  ;;  %1084 = vmatpush.msra.mxu0 %v4836_v49  ;;  %v4921_v27 = vld [vmem:[#allocation7 + $0x88] sm:$0xff]  ;;  %v4923_v28 = vld [vmem:[#allocation7 + $0x90] sm:$0xff] }
 0x1ab   :  { %6627 = vst [vmem:[#allocation28_spill] sm:$0xff] %v4923_v28  ;;  %1110 = vmatpush.msra.mxu1 %v4921_v27  ;;  %1130 = vmatpush.msra.mxu2 %v4923_v28  ;;  %v4955_v28 = vld [vmem:[#allocation7 + $0x28] sm:$0xff] }
 0x1ac   :  { %856 = vmatmul.f32.vlgmr.msrb.gmra.mxu0 %v747_v29  ;;  %748 = vst [vmem:[#allocation3 + $0x1] sm:$0x1] %v747_v29  ;;  %876 = vmatmul.f32.vlgmr.msrb.gmra.mxu1 %v747_v29 }
 0x1ad   :  { %749 = vst [vmem:[#allocation3 + $0x8] sm:$0x2] %v747_v29  ;;  %896 = vmatmul.f32.vlgmr.msrb.gmra.mxu2 %v747_v29  ;;  %916 = vmatmul.f32.vlgmr.msrb.gmra.mxu3 %v747_v29  ;;  %v758_v29 = vperm.slane %v4856_v57, 3 }
 0x1ae   :  { %1085 = vmatpush.msra.mxu0 %v4850_v54  ;;  %1111 = vmatpush.msra.mxu1 %v4932_v17 }
 0x1af   :  { %1131 = vmatpush.msra.mxu2 %v4936_v1 }
 0x1b0   :  { %1086 = vmatpush.msra.mxu0 %v4866_v61 }
 0x1b2   :  { %1087 = vmatpush.msra.mxu0 %v4880_v2 }
 0x1b4   :  { %1088 = vmatpush.msra.mxu0 %v4894_v10 }
 0x1b6   :  { %1089 = vmatpush.msra.mxu0 %v4906_v18 }
 0x1b8   :  { %1090 = vmatpush.msra.mxu0 %v4919_v26 }
 0x1ba   :  { %1091 = vmatpush.msra.mxu0 %v4930_v60 }
 0x229   :  { %v857_v7 = vpop.f32.mrf.mxu0  ;;  %v877_v9 = vpop.f32.mrf.mxu1 }
 0x22a   :  { %v920_v13 = vadd.f32 %v857_v7, %v772_v6  ;;  %v921_v14 = vadd.f32 %v877_v9, %v773_v8  ;;  %v4938_v6 = vld [vmem:[#allocation7 + $0x78] sm:$0xff]  ;;  %v4940_v7 = vld [vmem:[#allocation7 + $0x40] sm:$0xff]  ;;  %v775_v8 = vsel %vm293_vm0, %v758_v29, %v767_v24  ;;  %v4959_v24 = vld [vmem:[#allocation7 + $0x30] sm:$0xff] }
 0x22b   :  { %6632 = vst [vmem:[#allocation33_spill] sm:$0xff] %v4938_v6  ;;  %1151 = vmatpush.msra.mxu3 %v4938_v6  ;;  %1092 = vmatpush.msra.mxu0 %v4940_v7  ;;  %v4961_v29 = vld [vmem:[#allocation7 + $0x38] sm:$0xff] }
 0x22c   :  { %v3859_v22 = vmul.f32 -1.442695, %v920_v13  ;;  %v3860_v23 = vmul.f32 -1.442695, %v921_v14  ;;  %6633 = vst [vmem:[#allocation34_spill] sm:$0xff] %v4940_v7  ;;  %v4945_v13 = vld [vmem:[#allocation7 + $0x48] sm:$0xff] }
 0x22d   :  { %6634 = vst [vmem:[#allocation35_spill] sm:$0xff] %v4945_v13  ;;  %v4947_v14 = vld [vmem:[#allocation7 + $0x50] sm:$0xff]  ;;  %1112 = vmatpush.msra.mxu1 %v4945_v13  ;;  %1093 = vmatpush.msra.mxu0 %v4953_v59  ;;  %v4973_v13 = vld [vmem:[#allocation7 + $0x18] sm:$0xff] }
 0x22e   :  { %3942 = vpow2.f32 %v3859_v22  ;;  %v4949_v22 = vld [vmem:[#allocation7 + $0x58] sm:$0xff]  ;;  %1132 = vmatpush.msra.mxu2 %v4947_v14  ;;  %v4971_v7 = vld [vmem:[#allocation7 + $0x10] sm:$0xff]  ;;  %6635 = vst [vmem:[#allocation36_spill] sm:$0xff] %v4973_v13 }
 0x22f   :  { %3944 = vpow2.f32 %v3860_v23  ;;  %1152 = vmatpush.msra.mxu3 %v4949_v22  ;;  %1113 = vmatpush.msra.mxu1 %v4955_v28 }
 0x230   :  { %v917_v9 = vpop.f32.mrf.mxu3  ;;  %1133 = vmatpush.msra.mxu2 %v4959_v24 }
 0x231   :  { %v923_v23 = vadd.f32 %v917_v9, %v775_v8  ;;  %v4965_v8 = vld [vmem:[#allocation7] sm:$0xff]  ;;  %v4967_v9 = vld [vmem:[#allocation7 + $0x8] sm:$0xff]  ;;  %1153 = vmatpush.msra.mxu3 %v4961_v29 }
 0x232   :  { %1094 = vmatpush.msra.mxu0 %v4965_v8  ;;  %1114 = vmatpush.msra.mxu1 %v4967_v9 }
 0x233   :  { %v3861_v17 = vmul.f32 -1.442695, %v923_v23  ;;  %1134 = vmatpush.msra.mxu2 %v4971_v7  ;;  %1154 = vmatpush.msra.mxu3 %v4973_v13 }
 0x234   :  { %v3943_v6 = vpop.eup %3942  ;;  %1318 = vmatpush.msrb.mxu0 %v4776_v16  ;;  %1338 = vmatpush.msrb.mxu1 %v4778_v30 }
 0x235   :  { %v3945_v1 = vpop.eup %3944  ;;  %v4975_v60 = vadd.f32 1.0, %v3943_v6  ;;  %3946 = vpow2.f32 %v3861_v17  ;;  %v766_v17 = vperm.slane %v4842_v52, 2  ;;  %1358 = vmatpush.msrb.mxu2 %v4780_v31  ;;  %1378 = vmatpush.msrb.mxu3 %v4784_v32  ;;  %v897_v6 = vpop.f32.mrf.mxu2 }
 0x236   :  { %v4979_v23 = vadd.f32 1.0, %v3945_v1  ;;  %v757_v1 = vperm.slane %v4856_v57, 2  ;;  %1319 = vmatpush.msrb.mxu0 %v4788_v33  ;;  %1339 = vmatpush.msrb.mxu1 %v4790_v34 }
 0x237   :  { %3948 = vrcp.f32 %v4975_v60  ;;  %1359 = vmatpush.msrb.mxu2 %v4792_v35  ;;  %1379 = vmatpush.msrb.mxu3 %v4796_v36  ;;  %vm933_vm12 = vweird.f32 %v4975_v60 }
 0x238   :  { %3950 = vrcp.f32 %v4979_v23  ;;  %v774_v52 = vsel %vm293_vm0, %v757_v1, %v766_v17  ;;  %1320 = vmatpush.msrb.mxu0 %v4800_v37  ;;  %1340 = vmatpush.msrb.mxu1 %v4802_v38  ;;  %vm952_vm13 = vweird.f32 %v4979_v23 }
 0x239   :  { %v922_v57 = vadd.f32 %v897_v6, %v774_v52  ;;  %1360 = vmatpush.msrb.mxu2 %v4804_v39  ;;  %1380 = vmatpush.msrb.mxu3 %v4808_v40  ;;  %v939_v6 = vand.u32 2147483648, %v4975_v60  ;;  %v958_v52 = vand.u32 2147483648, %v4979_v23 }
 0x23a   :  { %1321 = vmatpush.msrb.mxu0 %v4812_v41  ;;  %1341 = vmatpush.msrb.mxu1 %v4814_v42 }
 0x23b   :  { %v3947_v13 = vpop.eup %3946  ;;  %1361 = vmatpush.msrb.mxu2 %v4816_v43  ;;  %1381 = vmatpush.msrb.mxu3 %v4820_v44  ;;  %v937_v43 = vand.u32 2147483647, %v4975_v60 }
 0x23c   :  { %v4998_v16 = vadd.f32 1.0, %v3947_v13  ;;  %1322 = vmatpush.msrb.mxu0 %v4824_v45  ;;  %1342 = vmatpush.msrb.mxu1 %v4826_v46 }
 0x23d   :  { %v3949_v32 = vpop.eup %3948  ;;  %1362 = vmatpush.msrb.mxu2 %v4828_v47  ;;  %1382 = vmatpush.msrb.mxu3 %v4832_v48  ;;  %vm938_vm1 = vcmp.eq.f32.partialorder %v937_v43, 8.507059e+37 }
 0x23e   :  { %v3951_v34 = vpop.eup %3950  ;;  %v929_v33 = vmul.f32 %v3949_v32, %v4975_v60  ;;  %3952 = vrcp.f32 %v4998_v16  ;;  %vm934_vm10 = vweird.f32 %v3949_v32  ;;  %1323 = vmatpush.msrb.mxu0 %v4836_v49  ;;  %1343 = vmatpush.msrb.mxu1 %v4838_v50  ;;  %vm972_vm4 = vweird.f32 %v4998_v16 }
 0x23f   :  { %v948_v13 = vmul.f32 %v3951_v34, %v4979_v23  ;;  %3954 = vtanh.f32 %v922_v57  ;;  %vm953_vm11 = vweird.f32 %v3951_v34  ;;  %1363 = vmatpush.msrb.mxu2 %v4840_v51  ;;  %1383 = vmatpush.msrb.mxu3 %v4846_v53  ;;  %vm935_vm14 = vmor %vm933_vm12, %vm934_vm10 }
 0x240   :  { %v930_v17 = vsub.f32 1.0, %v929_v33  ;;  %1324 = vmatpush.msrb.mxu0 %v4850_v54  ;;  %1344 = vmatpush.msrb.mxu1 %v4852_v55  ;;  %vm954_vm15 = vmor %vm952_vm13, %vm953_vm11 }
 0x241   :  { %v949_v1 = vsub.f32 1.0, %v948_v13  ;;  %v956_v13 = vand.u32 2147483647, %v4979_v23  ;;  %1364 = vmatpush.msrb.mxu2 %v4854_v56  ;;  %1384 = vmatpush.msrb.mxu3 %v4860_v58 }
 0x242   :  { %v931_v42 = vmul.f32 %v3949_v32, %v930_v17  ;;  %v940_v17 = vor.u32 1.1754944e-38, %v939_v6  ;;  %1325 = vmatpush.msrb.mxu0 %v4866_v61  ;;  %1345 = vmatpush.msrb.mxu1 %v4868_v62 }
 0x243   :  { %v950_v33 = vmul.f32 %v3951_v34, %v949_v1  ;;  %vm957_vm2 = vcmp.eq.f32.partialorder %v956_v13, 8.507059e+37  ;;  %1365 = vmatpush.msrb.mxu2 %v4870_v63  ;;  %1385 = vmatpush.msrb.mxu3 %v4874_v0  ;;  %v6639_v13 = vld [vmem:[#allocation31_spill] sm:$0xff] }
 0x244   :  { %v5023_v57 = vpop.eup %3952  ;;  %v932_v48 = vadd.f32 %v3949_v32, %v931_v42  ;;  %v959_v42 = vor.u32 1.1754944e-38, %v958_v52  ;;  %1326 = vmatpush.msrb.mxu0 %v4880_v2  ;;  %1346 = vmatpush.msrb.mxu1 %v4882_v3  ;;  %v6638_v52 = vld [vmem:[#allocation30_spill] sm:$0xff] }
 0x245   :  { %v951_v1 = vadd.f32 %v3951_v34, %v950_v33  ;;  %v968_v51 = vmul.f32 %v5023_v57, %v4998_v16  ;;  %v3955_v23 = vpop.eup %3954  ;;  %1366 = vmatpush.msrb.mxu2 %v4884_v4  ;;  %1386 = vmatpush.msrb.mxu3 %v4888_v5  ;;  %vm973_vm3 = vweird.f32 %v5023_v57 }
 0x246   :  { %v936_v60 = vsel %vm935_vm14, %v3949_v32, %v932_v48  ;;  %1327 = vmatpush.msrb.mxu0 %v4894_v10  ;;  %1347 = vmatpush.msrb.mxu1 %v4896_v11  ;;  %vm974_vm5 = vmor %vm972_vm4, %vm973_vm3 }
 0x247   :  { %v941_v55 = vsel %vm938_vm1, %v940_v17, %v936_v60  ;;  %v955_v6 = vsel %vm954_vm15, %v3951_v34, %v951_v1  ;;  %v969_v33 = vsub.f32 1.0, %v968_v51  ;;  %1367 = vmatpush.msrb.mxu2 %v4898_v12  ;;  %1387 = vmatpush.msrb.mxu3 %v4902_v15  ;;  %v976_v51 = vand.u32 2147483647, %v4998_v16  ;;  %v6640_v1 = vld [vmem:[#allocation32_spill] sm:$0xff]  ;;  %v6643_v60 = vld [vmem:[#allocation35_spill] sm:$0xff] }
 0x248   :  { %v960_v56 = vsel %vm957_vm2, %v959_v42, %v955_v6  ;;  %v983_v58 = vmul.f32 %v3955_v23, %v941_v55  ;;  %1328 = vmatpush.msrb.mxu0 %v4906_v18  ;;  %1348 = vmatpush.msrb.mxu1 %v4908_v19  ;;  %v6636_v55 = vld [vmem:[#allocation28_spill] sm:$0xff]  ;;  %v6641_v42 = vld [vmem:[#allocation33_spill] sm:$0xff] }
 0x249   :  { %v982_v32 = vmul.f32 %v960_v56, %v4773_v21  ;;  %v970_v43 = vmul.f32 %v5023_v57, %v969_v33  ;;  %v978_v21 = vand.u32 2147483648, %v4998_v16  ;;  %1368 = vmatpush.msrb.mxu2 %v4910_v20  ;;  %1388 = vmatpush.msrb.mxu3 %v4915_v25  ;;  %v6637_v56 = vld [vmem:[#allocation29_spill] sm:$0xff]  ;;  %vm977_vm6 = vcmp.eq.f32.partialorder %v976_v51, 8.507059e+37  ;;  %v6642_v16 = vld [vmem:[#allocation34_spill] sm:$0xff]  ;;  %v6644_v33 = vld [vmem:[#allocation36_spill] sm:$0xff] }
 0x24a   :  { %1329 = vmatpush.msrb.mxu0 %v4919_v26  ;;  %1349 = vmatpush.msrb.mxu1 %v4921_v27 }
 0x24b   :  { %v5047_v34 = vadd.f32 %v983_v58, %v982_v32  ;;  %v971_v48 = vadd.f32 %v5023_v57, %v970_v43  ;;  %1369 = vmatpush.msrb.mxu2 %v6636_v55  ;;  %1389 = vmatpush.msrb.mxu3 %v6637_v56  ;;  %v979_v17 = vor.u32 1.1754944e-38, %v978_v21  ;;  %v6645_v32 = vld [vmem:[#allocation17_spill] sm:$0xff]  ;;  %v6646_v43 = vld [vmem:[#allocation18_spill] sm:$0xff]  ;;  %v6648_v21 = vld [vmem:[#allocation20_spill] sm:$0xff] }
 0x24c   :  { %1330 = vmatpush.msrb.mxu0 %v6638_v52  ;;  %1350 = vmatpush.msrb.mxu1 %v6639_v13 }
 0x24d   :  { %3956 = vtanh.f32 %v5047_v34  ;;  %v975_v58 = vsel %vm974_vm5, %v5023_v57, %v971_v48  ;;  %1370 = vmatpush.msrb.mxu2 %v6640_v1  ;;  %1390 = vmatpush.msrb.mxu3 %v6641_v42  ;;  %v6647_v48 = vld [vmem:[#allocation19_spill] sm:$0xff] }
 0x24e   :  { %1331 = vmatpush.msrb.mxu0 %v6642_v16  ;;  %1351 = vmatpush.msrb.mxu1 %v6643_v60  ;;  %v980_v6 = vsel %vm977_vm6, %v979_v17, %v975_v58 }
 0x24f   :  { %1371 = vmatpush.msrb.mxu2 %v4947_v14  ;;  %1391 = vmatpush.msrb.mxu3 %v4949_v22 }
 0x250   :  { %1332 = vmatpush.msrb.mxu0 %v4953_v59  ;;  %1352 = vmatpush.msrb.mxu1 %v4955_v28 }
 0x251   :  { %1372 = vmatpush.msrb.mxu2 %v4959_v24  ;;  %1392 = vmatpush.msrb.mxu3 %v4961_v29 }
 0x252   :  { %1333 = vmatpush.msrb.mxu0 %v4965_v8  ;;  %1353 = vmatpush.msrb.mxu1 %v4967_v9 }
 0x253   :  { %v3957_v23 = vpop.eup %3956  ;;  %1373 = vmatpush.msrb.mxu2 %v4971_v7  ;;  %1393 = vmatpush.msrb.mxu3 %v6644_v33 }
 0x254   :  { %v986_v57 = vmul.f32 %v3957_v23, %v980_v6 }
 0x256   :  { %1095 = vmatmul.f32.vlgmr.msra.gmra.mxu0 %v986_v57  ;;  %987 = vst [vmem:[#allocation3 + $0x2] sm:$0x1] %v986_v57  ;;  %1115 = vmatmul.f32.vlgmr.msra.gmra.mxu1 %v986_v57 }
 0x257   :  { %988 = vst [vmem:[#allocation3 + $0x9] sm:$0x2] %v986_v57  ;;  %1135 = vmatmul.f32.vlgmr.msra.gmra.mxu2 %v986_v57  ;;  %1155 = vmatmul.f32.vlgmr.msra.gmra.mxu3 %v986_v57 }
 0x258   :  { %1557 = vmatpush.msra.mxu0 %v6645_v32  ;;  %1577 = vmatpush.msra.mxu1 %v4778_v30  ;;  %v6649_v30 = vld [vmem:[#allocation21_spill] sm:$0xff] }
 0x259   :  { %1597 = vmatpush.msra.mxu2 %v4780_v31  ;;  %1617 = vmatpush.msra.mxu3 %v6646_v43  ;;  %v6650_v31 = vld [vmem:[#allocation22_spill] sm:$0xff] }
 0x25a   :  { %1558 = vmatpush.msra.mxu0 %v6647_v48  ;;  %1578 = vmatpush.msra.mxu1 %v6648_v21 }
 0x25b   :  { %1598 = vmatpush.msra.mxu2 %v4792_v35  ;;  %1618 = vmatpush.msra.mxu3 %v4796_v36  ;;  %v6651_v35 = vld [vmem:[#allocation23_spill] sm:$0xff]  ;;  %v6652_v36 = vld [vmem:[#allocation24_spill] sm:$0xff] }
 0x25c   :  { %1559 = vmatpush.msra.mxu0 %v4800_v37  ;;  %1579 = vmatpush.msra.mxu1 %v4802_v38  ;;  %v6653_v37 = vld [vmem:[#allocation25_spill] sm:$0xff]  ;;  %v6654_v38 = vld [vmem:[#allocation26_spill] sm:$0xff] }
 0x25d   :  { %1599 = vmatpush.msra.mxu2 %v4804_v39  ;;  %1619 = vmatpush.msra.mxu3 %v4808_v40  ;;  %v6655_v39 = vld [vmem:[#allocation27_spill] sm:$0xff] }
 0x25e   :  { %1560 = vmatpush.msra.mxu0 %v4812_v41  ;;  %1580 = vmatpush.msra.mxu1 %v6649_v30  ;;  %v992_v40 = vld [vmem:[#allocation2 + $0x23] ss:$8 sm:$0xf] }
 0x25f   :  { %1600 = vmatpush.msra.mxu2 %v6650_v31  ;;  %1620 = vmatpush.msra.mxu3 %v4820_v44  ;;  %v990_v41 = vld [vmem:[#allocation2 + $0x3] ss:$8 sm:$0xf]  ;;  %v1003_v44 = vperm.slane %v992_v40, 0 }
 0x260   :  { %1561 = vmatpush.msra.mxu0 %v4824_v45  ;;  %1581 = vmatpush.msra.mxu1 %v4826_v46  ;;  %v1004_v45 = vperm.slane %v992_v40, 1  ;;  %v994_v46 = vperm.slane %v990_v41, 0 }
 0x261   :  { %1601 = vmatpush.msra.mxu2 %v4828_v47  ;;  %1621 = vmatpush.msra.mxu3 %v6651_v35  ;;  %v995_v47 = vperm.slane %v990_v41, 1 }
 0x262   :  { %1562 = vmatpush.msra.mxu0 %v4836_v49  ;;  %1582 = vmatpush.msra.mxu1 %v4838_v50  ;;  %v1011_v49 = vsel %vm293_vm0, %v994_v46, %v1003_v44  ;;  %v1229_v46 = vld [vmem:[#allocation2 + $0x4] ss:$8 sm:$0xf] }
 0x263   :  { %1602 = vmatpush.msra.mxu2 %v6652_v36  ;;  %1622 = vmatpush.msra.mxu3 %v4846_v53  ;;  %v1012_v53 = vsel %vm293_vm0, %v995_v47, %v1004_v45 }
 0x264   :  { %1563 = vmatpush.msra.mxu0 %v4850_v54  ;;  %1583 = vmatpush.msra.mxu1 %v6653_v37 }
 0x265   :  { %1603 = vmatpush.msra.mxu2 %v6654_v38  ;;  %1623 = vmatpush.msra.mxu3 %v6655_v39 }
 0x266   :  { %1564 = vmatpush.msra.mxu0 %v4866_v61  ;;  %1584 = vmatpush.msra.mxu1 %v4868_v62 }
 0x267   :  { %1604 = vmatpush.msra.mxu2 %v4870_v63  ;;  %1624 = vmatpush.msra.mxu3 %v4874_v0 }
 0x268   :  { %1565 = vmatpush.msra.mxu0 %v4880_v2  ;;  %1585 = vmatpush.msra.mxu1 %v4882_v3  ;;  %v1006_v2 = vperm.slane %v992_v40, 3  ;;  %v997_v3 = vperm.slane %v990_v41, 3 }
 0x269   :  { %1605 = vmatpush.msra.mxu2 %v4884_v4  ;;  %1625 = vmatpush.msra.mxu3 %v4888_v5 }
 0x26a   :  { %1566 = vmatpush.msra.mxu0 %v4894_v10  ;;  %1586 = vmatpush.msra.mxu1 %v4896_v11  ;;  %v1014_v4 = vsel %vm293_vm0, %v997_v3, %v1006_v2 }
 0x26b   :  { %1606 = vmatpush.msra.mxu2 %v4898_v12  ;;  %1626 = vmatpush.msra.mxu3 %v4902_v15 }
 0x26c   :  { %1567 = vmatpush.msra.mxu0 %v4906_v18  ;;  %1587 = vmatpush.msra.mxu1 %v4908_v19 }
 0x26d   :  { %1607 = vmatpush.msra.mxu2 %v4910_v20  ;;  %1627 = vmatpush.msra.mxu3 %v4915_v25  ;;  %v1005_v20 = vperm.slane %v992_v40, 2  ;;  %v996_v25 = vperm.slane %v990_v41, 2 }
 0x26e   :  { %1568 = vmatpush.msra.mxu0 %v4919_v26  ;;  %1588 = vmatpush.msra.mxu1 %v4921_v27 }
 0x26f   :  { %1608 = vmatpush.msra.mxu2 %v6636_v55  ;;  %1628 = vmatpush.msra.mxu3 %v6637_v56 }
 0x270   :  { %1569 = vmatpush.msra.mxu0 %v6638_v52  ;;  %1589 = vmatpush.msra.mxu1 %v6639_v13 }
 0x271   :  { %1609 = vmatpush.msra.mxu2 %v6640_v1  ;;  %1629 = vmatpush.msra.mxu3 %v6641_v42 }
 0x272   :  { %1570 = vmatpush.msra.mxu0 %v6642_v16  ;;  %1590 = vmatpush.msra.mxu1 %v6643_v60 }
 0x273   :  { %1610 = vmatpush.msra.mxu2 %v4947_v14  ;;  %1630 = vmatpush.msra.mxu3 %v4949_v22 }
 0x274   :  { %1571 = vmatpush.msra.mxu0 %v4953_v59  ;;  %1591 = vmatpush.msra.mxu1 %v4955_v28  ;;  %v1013_v28 = vsel %vm293_vm0, %v996_v25, %v1005_v20 }
 0x275   :  { %1611 = vmatpush.msra.mxu2 %v4959_v24  ;;  %1631 = vmatpush.msra.mxu3 %v4961_v29 }
 0x276   :  { %1572 = vmatpush.msra.mxu0 %v4965_v8  ;;  %1592 = vmatpush.msra.mxu1 %v4967_v9 }
 0x277   :  { %1612 = vmatpush.msra.mxu2 %v4971_v7  ;;  %1632 = vmatpush.msra.mxu3 %v6644_v33 }
 0x2d3   :  { %v1096_v50 = vpop.f32.mrf.mxu0  ;;  %v1116_v54 = vpop.f32.mrf.mxu1 }
 0x2d4   :  { %v1159_v61 = vadd.f32 %v1096_v50, %v1011_v49  ;;  %v1160_v62 = vadd.f32 %v1116_v54, %v1012_v53  ;;  %v1233_v50 = vperm.slane %v1229_v46, 0  ;;  %v1234_v53 = vperm.slane %v1229_v46, 1 }
 0x2d6   :  { %v3862_v63 = vmul.f32 -1.442695, %v1159_v61  ;;  %v3863_v0 = vmul.f32 -1.442695, %v1160_v62 }
 0x2d8   :  { %3958 = vpow2.f32 %v3862_v63 }
 0x2d9   :  { %3960 = vpow2.f32 %v3863_v0 }
 0x2da   :  { %v1156_v5 = vpop.f32.mrf.mxu3  ;;  %v1136_v26 = vpop.f32.mrf.mxu2 }
 0x2db   :  { %v1162_v10 = vadd.f32 %v1156_v5, %v1014_v4  ;;  %v1161_v14 = vadd.f32 %v1136_v26, %v1013_v28  ;;  %v1235_v28 = vperm.slane %v1229_v46, 2 }
 0x2dd   :  { %v3864_v11 = vmul.f32 -1.442695, %v1162_v10  ;;  %v1236_v10 = vperm.slane %v1229_v46, 3 }
 0x2de   :  { %v3959_v12 = vpop.eup %3958 }
 0x2df   :  { %v3961_v15 = vpop.eup %3960  ;;  %v1166_v18 = vadd.f32 1.0, %v3959_v12  ;;  %3962 = vpow2.f32 %v3864_v11 }
 0x2e0   :  { %v1185_v19 = vadd.f32 1.0, %v3961_v15 }
 0x2e1   :  { %3964 = vrcp.f32 %v1166_v18  ;;  %v1178_v51 = vand.u32 2147483648, %v1166_v18  ;;  %v1176_v58 = vand.u32 2147483647, %v1166_v18  ;;  %vm1172_vm9 = vweird.f32 %v1166_v18 }
 0x2e2   :  { %3966 = vrcp.f32 %v1185_v19  ;;  %v1197_v55 = vand.u32 2147483648, %v1185_v19  ;;  %v1195_v13 = vand.u32 2147483647, %v1185_v19  ;;  %vm1191_vm10 = vweird.f32 %v1185_v19 }
 0x2e3   :  { %v1179_v42 = vor.u32 1.1754944e-38, %v1178_v51  ;;  %vm1177_vm13 = vcmp.eq.f32.partialorder %v1176_v58, 8.507059e+37 }
 0x2e4   :  { %v1198_v23 = vor.u32 1.1754944e-38, %v1197_v55  ;;  %vm1196_vm14 = vcmp.eq.f32.partialorder %v1195_v13, 8.507059e+37 }
 0x2e5   :  { %v3963_v27 = vpop.eup %3962 }
 0x2e6   :  { %v1205_v59 = vadd.f32 1.0, %v3963_v27 }
 0x2e7   :  { %v3965_v7 = vpop.eup %3964 }
 0x2e8   :  { %v3967_v22 = vpop.eup %3966  ;;  %v1168_v24 = vmul.f32 %v3965_v7, %v1166_v18  ;;  %3968 = vrcp.f32 %v1205_v59  ;;  %vm1173_vm7 = vweird.f32 %v3965_v7  ;;  %v1217_v37 = vand.u32 2147483648, %v1205_v59 }
 0x2e9   :  { %v1187_v29 = vmul.f32 %v3967_v22, %v1185_v19  ;;  %3970 = vtanh.f32 %v1161_v14  ;;  %vm1192_vm8 = vweird.f32 %v3967_v22  ;;  %vm1174_vm11 = vmor %vm1172_vm9, %vm1173_vm7  ;;  %vm1211_vm1 = vweird.f32 %v1205_v59 }
 0x2ea   :  { %v1169_v8 = vsub.f32 1.0, %v1168_v24  ;;  %vm1193_vm12 = vmor %vm1191_vm10, %vm1192_vm8  ;;  %v1215_v38 = vand.u32 2147483647, %v1205_v59  ;;  %v1218_v40 = vor.u32 1.1754944e-38, %v1217_v37 }
 0x2eb   :  { %v1188_v9 = vsub.f32 1.0, %v1187_v29 }
 0x2ec   :  { %v1170_v56 = vmul.f32 %v3965_v7, %v1169_v8  ;;  %vm1216_vm3 = vcmp.eq.f32.partialorder %v1215_v38, 8.507059e+37 }
 0x2ed   :  { %v1189_v52 = vmul.f32 %v3967_v22, %v1188_v9 }
 0x2ee   :  { %v3969_v17 = vpop.eup %3968  ;;  %v1171_v1 = vadd.f32 %v3965_v7, %v1170_v56 }
 0x2ef   :  { %v1190_v16 = vadd.f32 %v3967_v22, %v1189_v52  ;;  %v1207_v60 = vmul.f32 %v3969_v17, %v1205_v59  ;;  %v3971_v57 = vpop.eup %3970  ;;  %vm1212_vm15 = vweird.f32 %v3969_v17 }
 0x2f0   :  { %v1175_v6 = vsel %vm1174_vm11, %v3965_v7, %v1171_v1  ;;  %vm1213_vm2 = vmor %vm1211_vm1, %vm1212_vm15 }
 0x2f1   :  { %v1180_v33 = vsel %vm1177_vm13, %v1179_v42, %v1175_v6  ;;  %v1194_v32 = vsel %vm1193_vm12, %v3967_v22, %v1190_v16  ;;  %v1208_v43 = vsub.f32 1.0, %v1207_v60 }
 0x2f2   :  { %v1199_v48 = vsel %vm1196_vm14, %v1198_v23, %v1194_v32  ;;  %v1222_v21 = vmul.f32 %v3971_v57, %v1180_v33 }
 0x2f3   :  { %v1221_v30 = vmul.f32 %v1199_v48, %v5047_v34  ;;  %v1209_v31 = vmul.f32 %v3969_v17, %v1208_v43  ;;  %v1231_v34 = vld [vmem:[#allocation2 + $0x24] ss:$8 sm:$0xf] }
 0x2f4   :  { %v1242_v47 = vperm.slane %v1231_v34, 0  ;;  %v1243_v49 = vperm.slane %v1231_v34, 1  ;;  %v1245_v5 = vperm.slane %v1231_v34, 3  ;;  %v1244_v27 = vperm.slane %v1231_v34, 2 }
 0x2f5   :  { %v5151_v35 = vadd.f32 %v1222_v21, %v1221_v30  ;;  %v1210_v36 = vadd.f32 %v3969_v17, %v1209_v31 }
 0x2f6   :  { %v1250_v54 = vsel %vm293_vm0, %v1233_v50, %v1242_v47  ;;  %v1251_v62 = vsel %vm293_vm0, %v1234_v53, %v1243_v49  ;;  %v1253_v11 = vsel %vm293_vm0, %v1236_v10, %v1245_v5  ;;  %v1252_v14 = vsel %vm293_vm0, %v1235_v28, %v1244_v27  ;;  %v5164_v50 = vld [vmem:[#allocation7 + $0x1e8] sm:$0xff]  ;;  %v5166_v53 = vld [vmem:[#allocation7 + $0x1f0] sm:$0xff]  ;;  %v5196_v10 = vld [vmem:[#allocation7 + $0x1b8] sm:$0xff] }
 0x2f7   :  { %3972 = vtanh.f32 %v5151_v35  ;;  %v1214_v39 = vsel %vm1213_vm2, %v3969_v17, %v1210_v36  ;;  %v5192_v5 = vld [vmem:[#allocation2 + $0x25] ss:$8 sm:$0xf] }
 0x2f8   :  { %v1219_v44 = vsel %vm1216_vm3, %v1218_v40, %v1214_v39  ;;  %v1481_v27 = vperm.slane %v5192_v5, 0  ;;  %v1482_v28 = vperm.slane %v5192_v5, 1 }
 0x2fd   :  { %v3973_v41 = vpop.eup %3972 }
 0x2fe   :  { %v1225_v45 = vmul.f32 %v3973_v41, %v1219_v44 }
 0x300   :  { %1334 = vmatmul.f32.vlgmr.msrb.gmra.mxu0 %v1225_v45  ;;  %1226 = vst [vmem:[#allocation3 + $0x3] sm:$0x1] %v1225_v45  ;;  %1354 = vmatmul.f32.vlgmr.msrb.gmra.mxu1 %v1225_v45 }
 0x301   :  { %1227 = vst [vmem:[#allocation3 + $0xa] sm:$0x2] %v1225_v45  ;;  %1374 = vmatmul.f32.vlgmr.msrb.gmra.mxu2 %v1225_v45  ;;  %1394 = vmatmul.f32.vlgmr.msrb.gmra.mxu3 %v1225_v45 }
 0x302   :  { %1816 = vmatpush.msrb.mxu1 %v5164_v50  ;;  %1836 = vmatpush.msrb.mxu2 %v5166_v53 }
 0x37d   :  { %v1335_v61 = vpop.f32.mrf.mxu0  ;;  %v1355_v63 = vpop.f32.mrf.mxu1 }
 0x37e   :  { %v1398_v0 = vadd.f32 %v1335_v61, %v1250_v54  ;;  %v1399_v2 = vadd.f32 %v1355_v63, %v1251_v62  ;;  %v5170_v54 = vld [vmem:[#allocation7 + $0x1f8] sm:$0xff]  ;;  %v5174_v61 = vld [vmem:[#allocation7 + $0x1c0] sm:$0xff]  ;;  %v5176_v62 = vld [vmem:[#allocation7 + $0x1c8] sm:$0xff] }
 0x37f   :  { %1856 = vmatpush.msrb.mxu3 %v5170_v54  ;;  %v5178_v63 = vld [vmem:[#allocation7 + $0x1d0] sm:$0xff]  ;;  %1817 = vmatpush.msrb.mxu1 %v5176_v62 }
 0x380   :  { %v3865_v3 = vmul.f32 -1.442695, %v1398_v0  ;;  %v3866_v4 = vmul.f32 -1.442695, %v1399_v2  ;;  %v5182_v0 = vld [vmem:[#allocation7 + $0x1d8] sm:$0xff]  ;;  %1837 = vmatpush.msrb.mxu2 %v5178_v63  ;;  %v5186_v2 = vld [vmem:[#allocation7 + $0x1a0] sm:$0xff] }
 0x381   :  { %1857 = vmatpush.msrb.mxu3 %v5182_v0 }
 0x382   :  { %3974 = vpow2.f32 %v3865_v3  ;;  %v5188_v3 = vld [vmem:[#allocation7 + $0x1a8] sm:$0xff] }
 0x383   :  { %3976 = vpow2.f32 %v3866_v4  ;;  %v5190_v4 = vld [vmem:[#allocation7 + $0x1b0] sm:$0xff]  ;;  %1818 = vmatpush.msrb.mxu1 %v5188_v3  ;;  %1858 = vmatpush.msrb.mxu3 %v5196_v10 }
 0x384   :  { %v1395_v12 = vpop.f32.mrf.mxu3  ;;  %v1375_v59 = vpop.f32.mrf.mxu2  ;;  %1838 = vmatpush.msrb.mxu2 %v5190_v4 }
 0x385   :  { %v1401_v15 = vadd.f32 %v1395_v12, %v1253_v11  ;;  %v1400_v29 = vadd.f32 %v1375_v59, %v1252_v14  ;;  %v5200_v11 = vld [vmem:[#allocation7 + $0x180] sm:$0xff]  ;;  %v5202_v12 = vld [vmem:[#allocation7 + $0x188] sm:$0xff]  ;;  %v5224_v59 = vld [vmem:[#allocation7 + $0x178] sm:$0xff] }
 0x386   :  { %1819 = vmatpush.msrb.mxu1 %v5202_v12  ;;  %v5230_v14 = vld [vmem:[#allocation7 + $0x148] sm:$0xff] }
 0x387   :  { %v3867_v18 = vmul.f32 -1.442695, %v1401_v15  ;;  %v5204_v15 = vld [vmem:[#allocation7 + $0x190] sm:$0xff] }
 0x388   :  { %v3975_v19 = vpop.eup %3974  ;;  %1839 = vmatpush.msrb.mxu2 %v5204_v15 }
 0x389   :  { %v3977_v20 = vpop.eup %3976  ;;  %v1405_v25 = vadd.f32 1.0, %v3975_v19  ;;  %3978 = vpow2.f32 %v3867_v18  ;;  %v5206_v18 = vld [vmem:[#allocation2 + $0x5] ss:$8 sm:$0xf] }
 0x38a   :  { %v1424_v26 = vadd.f32 1.0, %v3977_v20  ;;  %v5210_v19 = vld [vmem:[#allocation7 + $0x198] sm:$0xff]  ;;  %v5214_v20 = vld [vmem:[#allocation7 + $0x160] sm:$0xff] }
 0x38b   :  { %3980 = vrcp.f32 %v1405_v25  ;;  %v1417_v58 = vand.u32 2147483648, %v1405_v25  ;;  %v1415_v17 = vand.u32 2147483647, %v1405_v25  ;;  %vm1411_vm6 = vweird.f32 %v1405_v25  ;;  %1859 = vmatpush.msrb.mxu3 %v5210_v19 }
 0x38c   :  { %3982 = vrcp.f32 %v1424_v26  ;;  %v1436_v52 = vand.u32 2147483648, %v1424_v26  ;;  %v1434_v42 = vand.u32 2147483647, %v1424_v26  ;;  %vm1430_vm7 = vweird.f32 %v1424_v26 }
 0x38d   :  { %v1418_v23 = vor.u32 1.1754944e-38, %v1417_v58  ;;  %vm1416_vm10 = vcmp.eq.f32.partialorder %v1415_v17, 8.507059e+37  ;;  %1860 = vmatpush.msrb.mxu3 %v5224_v59  ;;  %v5252_v17 = vld [vmem:[#allocation7 + $0x138] sm:$0xff] }
 0x38e   :  { %v1437_v33 = vor.u32 1.1754944e-38, %v1436_v52  ;;  %vm1435_vm11 = vcmp.eq.f32.partialorder %v1434_v42, 8.507059e+37 }
 0x38f   :  { %v3979_v7 = vpop.eup %3978 }
 0x390   :  { %v1444_v22 = vadd.f32 1.0, %v3979_v7  ;;  %v5228_v7 = vld [vmem:[#allocation7 + $0x140] sm:$0xff] }
 0x391   :  { %v3981_v24 = vpop.eup %3980 }
 0x392   :  { %v3983_v8 = vpop.eup %3982  ;;  %v1407_v9 = vmul.f32 %v3981_v24, %v1405_v25  ;;  %3984 = vrcp.f32 %v1444_v22  ;;  %vm1412_vm4 = vweird.f32 %v3981_v24  ;;  %v1456_v41 = vand.u32 2147483648, %v1444_v22  ;;  %v5216_v25 = vld [vmem:[#allocation7 + $0x168] sm:$0xff] }
 0x393   :  { %v1426_v51 = vmul.f32 %v3983_v8, %v1424_v26  ;;  %3986 = vtanh.f32 %v1400_v29  ;;  %vm1431_vm5 = vweird.f32 %v3983_v8  ;;  %vm1413_vm8 = vmor %vm1411_vm6, %vm1412_vm4  ;;  %vm1450_vm13 = vweird.f32 %v1444_v22  ;;  %v5218_v26 = vld [vmem:[#allocation7 + $0x170] sm:$0xff]  ;;  %1820 = vmatpush.msrb.mxu1 %v5216_v25 }
 0x394   :  { %v1408_v55 = vsub.f32 1.0, %v1407_v9  ;;  %vm1432_vm9 = vmor %vm1430_vm7, %vm1431_vm5  ;;  %v1454_v44 = vand.u32 2147483647, %v1444_v22  ;;  %v1457_v34 = vor.u32 1.1754944e-38, %v1456_v41  ;;  %1840 = vmatpush.msrb.mxu2 %v5218_v26  ;;  %v1473_v29 = vperm.slane %v5206_v18, 1  ;;  %v5242_v9 = vld [vmem:[#allocation7 + $0x120] sm:$0xff] }
 0x395   :  { %v1427_v56 = vsub.f32 1.0, %v1426_v51  ;;  %1821 = vmatpush.msrb.mxu1 %v5230_v14  ;;  %v5244_v51 = vld [vmem:[#allocation7 + $0x128] sm:$0xff]  ;;  %v5292_v41 = vld [vmem:[#allocation7 + $0xa0] sm:$0xff] }
 0x396   :  { %v1409_v13 = vmul.f32 %v3981_v24, %v1408_v55  ;;  %vm1455_vm15 = vcmp.eq.f32.partialorder %v1454_v44, 8.507059e+37  ;;  %v5246_v55 = vld [vmem:[#allocation7 + $0x130] sm:$0xff]  ;;  %v1490_v52 = vsel %vm293_vm0, %v1473_v29, %v1482_v28  ;;  %v5294_v44 = vld [vmem:[#allocation7 + $0xa8] sm:$0xff]  ;;  %v5311_v29 = vld [vmem:[#allocation7 + $0x98] sm:$0xff] }
 0x397   :  { %v1428_v1 = vmul.f32 %v3983_v8, %v1427_v56  ;;  %1822 = vmatpush.msrb.mxu1 %v5244_v51  ;;  %6657 = vst [vmem:[#allocation29_spill] sm:$0xff] %v5311_v29 }
 0x398   :  { %v3985_v16 = vpop.eup %3984  ;;  %v1410_v60 = vadd.f32 %v3981_v24, %v1409_v13 }
 0x399   :  { %v1429_v6 = vadd.f32 %v3983_v8, %v1428_v1  ;;  %v1446_v57 = vmul.f32 %v3985_v16, %v1444_v22  ;;  %v3987_v43 = vpop.eup %3986  ;;  %vm1451_vm12 = vweird.f32 %v3985_v16  ;;  %v5232_v22 = vld [vmem:[#allocation7 + $0x150] sm:$0xff] }
 0x39a   :  { %v1414_v32 = vsel %vm1413_vm8, %v3981_v24, %v1410_v60  ;;  %vm1452_vm14 = vmor %vm1450_vm13, %vm1451_vm12  ;;  %v1472_v24 = vperm.slane %v5206_v18, 0  ;;  %1841 = vmatpush.msrb.mxu2 %v5232_v22  ;;  %v5258_v60 = vld [vmem:[#allocation7 + $0x108] sm:$0xff] }
 0x39b   :  { %v1419_v48 = vsel %vm1416_vm10, %v1418_v23, %v1414_v32  ;;  %v1433_v21 = vsel %vm1432_vm9, %v3983_v8, %v1429_v6  ;;  %v1447_v30 = vsub.f32 1.0, %v1446_v57  ;;  %v5238_v8 = vld [vmem:[#allocation7 + $0x158] sm:$0xff]  ;;  %v5260_v23 = vld [vmem:[#allocation7 + $0x110] sm:$0xff]  ;;  %v1484_v6 = vperm.slane %v5192_v5, 3  ;;  %1823 = vmatpush.msrb.mxu1 %v5258_v60 }
 0x39c   :  { %v1438_v31 = vsel %vm1435_vm11, %v1437_v33, %v1433_v21  ;;  %v1461_v36 = vmul.f32 %v3987_v43, %v1419_v48  ;;  %1861 = vmatpush.msrb.mxu3 %v5238_v8  ;;  %v1489_v56 = vsel %vm293_vm0, %v1472_v24, %v1481_v27  ;;  %1842 = vmatpush.msrb.mxu2 %v5246_v55  ;;  %v5265_v57 = vld [vmem:[#allocation7 + $0x118] sm:$0xff]  ;;  %v5269_v43 = vld [vmem:[#allocation7 + $0xe0] sm:$0xff]  ;;  %v5271_v48 = vld [vmem:[#allocation7 + $0xe8] sm:$0xff] }
 0x39d   :  { %v1460_v37 = vmul.f32 %v1438_v31, %v5151_v35  ;;  %v1448_v38 = vmul.f32 %v3985_v16, %v1447_v30  ;;  %v5162_v35 = vld [vmem:[#allocation7 + $0x1e0] sm:$0xff]  ;;  %1824 = vmatpush.msrb.mxu1 %v5271_v48  ;;  %v5275_v21 = vld [vmem:[#allocation7 + $0xf0] sm:$0xff]  ;;  %v5277_v30 = vld [vmem:[#allocation7 + $0xf8] sm:$0xff] }
 0x39e   :  { %1796 = vmatpush.msrb.mxu0 %v5162_v35  ;;  %1862 = vmatpush.msrb.mxu3 %v5252_v17  ;;  %v5279_v31 = vld [vmem:[#allocation7 + $0xc0] sm:$0xff]  ;;  %v5305_v27 = vld [vmem:[#allocation7 + $0x88] sm:$0xff]  ;;  %v5309_v24 = vld [vmem:[#allocation7 + $0x90] sm:$0xff] }
 0x39f   :  { %v5159_v39 = vadd.f32 %v1461_v36, %v1460_v37  ;;  %v1449_v40 = vadd.f32 %v3985_v16, %v1448_v38  ;;  %1843 = vmatpush.msrb.mxu2 %v5260_v23  ;;  %v1475_v36 = vperm.slane %v5206_v18, 3  ;;  %v5284_v37 = vld [vmem:[#allocation7 + $0xc8] sm:$0xff]  ;;  %v5286_v38 = vld [vmem:[#allocation7 + $0xd0] sm:$0xff]  ;;  %6656 = vst [vmem:[#allocation28_spill] sm:$0xff] %v5309_v24 }
 0x3a0   :  { %1797 = vmatpush.msrb.mxu0 %v5174_v61  ;;  %1863 = vmatpush.msrb.mxu3 %v5265_v57 }
 0x3a1   :  { %3988 = vtanh.f32 %v5159_v39  ;;  %v1453_v45 = vsel %vm1452_vm14, %v3985_v16, %v1449_v40  ;;  %v5256_v16 = vld [vmem:[#allocation7 + $0x100] sm:$0xff]  ;;  %1844 = vmatpush.msrb.mxu2 %v5275_v21  ;;  %v5288_v40 = vld [vmem:[#allocation7 + $0xd8] sm:$0xff]  ;;  %1825 = vmatpush.msrb.mxu1 %v5284_v37 }
 0x3a2   :  { %v1458_v47 = vsel %vm1455_vm15, %v1457_v34, %v1453_v45  ;;  %1798 = vmatpush.msrb.mxu0 %v5186_v2  ;;  %1864 = vmatpush.msrb.mxu3 %v5277_v30  ;;  %v5296_v45 = vld [vmem:[#allocation7 + $0xb0] sm:$0xff]  ;;  %v1492_v34 = vsel %vm293_vm0, %v1475_v36, %v1484_v6  ;;  %v5327_v6 = vld [vmem:[#allocation7 + $0x40] sm:$0xff] }
 0x3a3   :  { %1845 = vmatpush.msrb.mxu2 %v5286_v38  ;;  %1826 = vmatpush.msrb.mxu1 %v5294_v44  ;;  %6662 = vst [vmem:[#allocation34_spill] sm:$0xff] %v5327_v6 }
 0x3a4   :  { %1799 = vmatpush.msrb.mxu0 %v5200_v11  ;;  %1865 = vmatpush.msrb.mxu3 %v5288_v40 }
 0x3a5   :  { %1846 = vmatpush.msrb.mxu2 %v5296_v45  ;;  %1827 = vmatpush.msrb.mxu1 %v5305_v27 }
 0x3a6   :  { %1800 = vmatpush.msrb.mxu0 %v5214_v20 }
 0x3a7   :  { %v3989_v46 = vpop.eup %3988  ;;  %1847 = vmatpush.msrb.mxu2 %v5309_v24  ;;  %v5345_v24 = vld [vmem:[#allocation7 + $0x28] sm:$0xff] }
 0x3a8   :  { %v1464_v49 = vmul.f32 %v3989_v46, %v1458_v47  ;;  %1801 = vmatpush.msrb.mxu0 %v5228_v7  ;;  %v5301_v47 = vld [vmem:[#allocation7 + $0xb8] sm:$0xff]  ;;  %6666 = vst [vmem:[#allocation18_spill] sm:$0xff] %v5345_v24 }
 0x3a9   :  { %1866 = vmatpush.msrb.mxu3 %v5301_v47 }
 0x3aa   :  { %1573 = vmatmul.f32.vlgmr.msra.gmra.mxu0 %v1464_v49  ;;  %1465 = vst [vmem:[#allocation3 + $0x4] sm:$0x1] %v1464_v49  ;;  %1593 = vmatmul.f32.vlgmr.msra.gmra.mxu1 %v1464_v49 }
 0x3ab   :  { %1466 = vst [vmem:[#allocation3 + $0xb] sm:$0x2] %v1464_v49  ;;  %1613 = vmatmul.f32.vlgmr.msra.gmra.mxu2 %v1464_v49  ;;  %1633 = vmatmul.f32.vlgmr.msra.gmra.mxu3 %v1464_v49  ;;  %v5303_v49 = vld [vmem:[#allocation7 + $0x80] sm:$0xff] }
 0x3ac   :  { %1802 = vmatpush.msrb.mxu0 %v5242_v9  ;;  %1867 = vmatpush.msrb.mxu3 %v5311_v29  ;;  %v5343_v29 = vld [vmem:[#allocation7 + $0x20] sm:$0xff] }
 0x3ad   :  { %6665 = vst [vmem:[#allocation17_spill] sm:$0xff] %v5343_v29 }
 0x3ae   :  { %1803 = vmatpush.msrb.mxu0 %v5256_v16 }
 0x3b0   :  { %1804 = vmatpush.msrb.mxu0 %v5269_v43 }
 0x3b2   :  { %1805 = vmatpush.msrb.mxu0 %v5279_v31 }
 0x3b4   :  { %1806 = vmatpush.msrb.mxu0 %v5292_v41 }
 0x3b6   :  { %1807 = vmatpush.msrb.mxu0 %v5303_v49 }
 0x427   :  { %v1574_v58 = vpop.f32.mrf.mxu0  ;;  %v1594_v13 = vpop.f32.mrf.mxu1 }
 0x428   :  { %v1637_v1 = vadd.f32 %v1574_v58, %v1489_v56  ;;  %v1638_v42 = vadd.f32 %v1594_v13, %v1490_v52  ;;  %v5315_v56 = vld [vmem:[#allocation7 + $0x60] sm:$0xff]  ;;  %v5317_v58 = vld [vmem:[#allocation7 + $0x68] sm:$0xff]  ;;  %v5321_v13 = vld [vmem:[#allocation7 + $0x70] sm:$0xff] }
 0x429   :  { %6658 = vst [vmem:[#allocation30_spill] sm:$0xff] %v5315_v56  ;;  %1808 = vmatpush.msrb.mxu0 %v5315_v56  ;;  %1828 = vmatpush.msrb.mxu1 %v5317_v58 }
 0x42a   :  { %v3868_v33 = vmul.f32 -1.442695, %v1637_v1  ;;  %v3869_v32 = vmul.f32 -1.442695, %v1638_v42  ;;  %6659 = vst [vmem:[#allocation31_spill] sm:$0xff] %v5317_v58  ;;  %v5323_v1 = vld [vmem:[#allocation7 + $0x78] sm:$0xff]  ;;  %1848 = vmatpush.msrb.mxu2 %v5321_v13 }
 0x42b   :  { %6660 = vst [vmem:[#allocation32_spill] sm:$0xff] %v5321_v13  ;;  %1868 = vmatpush.msrb.mxu3 %v5323_v1  ;;  %1809 = vmatpush.msrb.mxu0 %v5327_v6  ;;  %v5360_v13 = vld [vmem:[#allocation7 + $0x8] sm:$0xff]  ;;  %v5366_v6 = vld [vmem:[#allocation7 + $0x18] sm:$0xff]  ;;  %v1474_v58 = vperm.slane %v5206_v18, 2 }
 0x42c   :  { %3990 = vpow2.f32 %v3868_v33  ;;  %6661 = vst [vmem:[#allocation33_spill] sm:$0xff] %v5323_v1  ;;  %v5329_v33 = vld [vmem:[#allocation7 + $0x48] sm:$0xff]  ;;  %v5358_v1 = vld [vmem:[#allocation7] sm:$0xff] }
 0x42d   :  { %3992 = vpow2.f32 %v3869_v32  ;;  %6663 = vst [vmem:[#allocation35_spill] sm:$0xff] %v5329_v33  ;;  %1829 = vmatpush.msrb.mxu1 %v5329_v33  ;;  %1810 = vmatpush.msrb.mxu0 %v5343_v29  ;;  %v5364_v33 = vld [vmem:[#allocation7 + $0x10] sm:$0xff] }
 0x42e   :  { %v1634_v46 = vpop.f32.mrf.mxu3  ;;  %v1614_v56 = vpop.f32.mrf.mxu2 }
 0x42f   :  { %v1640_v28 = vadd.f32 %v1634_v46, %v1492_v34  ;;  %v5335_v34 = vld [vmem:[#allocation7 + $0x50] sm:$0xff]  ;;  %v5337_v46 = vld [vmem:[#allocation7 + $0x58] sm:$0xff]  ;;  %1830 = vmatpush.msrb.mxu1 %v5345_v24  ;;  %1811 = vmatpush.msrb.mxu0 %v5358_v1 }
 0x430   :  { %6664 = vst [vmem:[#allocation36_spill] sm:$0xff] %v5337_v46  ;;  %1849 = vmatpush.msrb.mxu2 %v5335_v34  ;;  %1869 = vmatpush.msrb.mxu3 %v5337_v46 }
 0x431   :  { %v3870_v52 = vmul.f32 -1.442695, %v1640_v28  ;;  %1831 = vmatpush.msrb.mxu1 %v5360_v13  ;;  %2035 = vmatpush.msra.mxu0 %v5162_v35 }
 0x432   :  { %v3991_v42 = vpop.eup %3990 }
 0x433   :  { %v3993_v32 = vpop.eup %3992  ;;  %v5331_v36 = vadd.f32 1.0, %v3991_v42  ;;  %3994 = vpow2.f32 %v3870_v52  ;;  %v5350_v52 = vld [vmem:[#allocation7 + $0x30] sm:$0xff]  ;;  %v5352_v42 = vld [vmem:[#allocation7 + $0x38] sm:$0xff]  ;;  %2055 = vmatpush.msra.mxu1 %v5164_v50  ;;  %2036 = vmatpush.msra.mxu0 %v5174_v61 }
 0x434   :  { %v5339_v28 = vadd.f32 1.0, %v3993_v32  ;;  %6667 = vst [vmem:[#allocation19_spill] sm:$0xff] %v5350_v52  ;;  %v1483_v32 = vperm.slane %v5192_v5, 2  ;;  %1850 = vmatpush.msrb.mxu2 %v5350_v52  ;;  %1870 = vmatpush.msrb.mxu3 %v5352_v42 }
 0x435   :  { %3996 = vrcp.f32 %v5331_v36  ;;  %6668 = vst [vmem:[#allocation20_spill] sm:$0xff] %v5352_v42  ;;  %2056 = vmatpush.msra.mxu1 %v5176_v62  ;;  %v1656_v50 = vand.u32 2147483648, %v5331_v36  ;;  %2037 = vmatpush.msra.mxu0 %v5186_v2  ;;  %v1654_v61 = vand.u32 2147483647, %v5331_v36  ;;  %vm1650_vm3 = vweird.f32 %v5331_v36 }
 0x436   :  { %3998 = vrcp.f32 %v5339_v28  ;;  %v1491_v29 = vsel %vm293_vm0, %v1474_v58, %v1483_v32  ;;  %1851 = vmatpush.msrb.mxu2 %v5364_v33  ;;  %1871 = vmatpush.msrb.mxu3 %v5366_v6  ;;  %vm1669_vm4 = vweird.f32 %v5339_v28 }
 0x437   :  { %v1639_v18 = vadd.f32 %v1614_v56, %v1491_v29  ;;  %2057 = vmatpush.msra.mxu1 %v5188_v3  ;;  %2038 = vmatpush.msra.mxu0 %v5200_v11  ;;  %v1657_v3 = vor.u32 1.1754944e-38, %v1656_v50  ;;  %vm1655_vm7 = vcmp.eq.f32.partialorder %v1654_v61, 8.507059e+37 }
 0x438   :  { %2075 = vmatpush.msra.mxu2 %v5166_v53  ;;  %2095 = vmatpush.msra.mxu3 %v5170_v54  ;;  %v1675_v53 = vand.u32 2147483648, %v5339_v28 }
 0x439   :  { %v3995_v5 = vpop.eup %3994  ;;  %2058 = vmatpush.msra.mxu1 %v5202_v12  ;;  %2039 = vmatpush.msra.mxu0 %v5214_v20 }
 0x43a   :  { %v5374_v46 = vadd.f32 1.0, %v3995_v5  ;;  %2076 = vmatpush.msra.mxu2 %v5178_v63  ;;  %2096 = vmatpush.msra.mxu3 %v5182_v0  ;;  %v1673_v63 = vand.u32 2147483647, %v5339_v28  ;;  %v1676_v11 = vor.u32 1.1754944e-38, %v1675_v53 }
 0x43b   :  { %v3997_v24 = vpop.eup %3996  ;;  %2059 = vmatpush.msra.mxu1 %v5216_v25  ;;  %2040 = vmatpush.msra.mxu0 %v5228_v7 }
 0x43c   :  { %v3999_v42 = vpop.eup %3998  ;;  %v1646_v52 = vmul.f32 %v3997_v24, %v5331_v36  ;;  %4000 = vrcp.f32 %v5374_v46  ;;  %vm1651_vm1 = vweird.f32 %v3997_v24  ;;  %2077 = vmatpush.msra.mxu2 %v5190_v4  ;;  %2097 = vmatpush.msra.mxu3 %v5196_v10  ;;  %vm1674_vm8 = vcmp.eq.f32.partialorder %v1673_v63, 8.507059e+37 }
 0x43d   :  { %v1665_v58 = vmul.f32 %v3999_v42, %v5339_v28  ;;  %4002 = vtanh.f32 %v1639_v18  ;;  %vm1670_vm2 = vweird.f32 %v3999_v42  ;;  %vm1652_vm5 = vmor %vm1650_vm3, %vm1651_vm1  ;;  %2060 = vmatpush.msra.mxu1 %v5230_v14  ;;  %2041 = vmatpush.msra.mxu0 %v5242_v9  ;;  %vm1689_vm10 = vweird.f32 %v5374_v46 }
 0x43e   :  { %v1647_v29 = vsub.f32 1.0, %v1646_v52  ;;  %2078 = vmatpush.msra.mxu2 %v5204_v15  ;;  %2098 = vmatpush.msra.mxu3 %v5210_v19  ;;  %vm1671_vm6 = vmor %vm1669_vm4, %vm1670_vm2  ;;  %v1693_v14 = vand.u32 2147483647, %v5374_v46 }
 0x43f   :  { %v1666_v35 = vsub.f32 1.0, %v1665_v58  ;;  %2061 = vmatpush.msra.mxu1 %v5244_v51  ;;  %2042 = vmatpush.msra.mxu0 %v5256_v16  ;;  %v6670_v16 = vld [vmem:[#allocation29_spill] sm:$0xff] }
 0x440   :  { %v1648_v54 = vmul.f32 %v3997_v24, %v1647_v29  ;;  %2079 = vmatpush.msra.mxu2 %v5218_v26  ;;  %2099 = vmatpush.msra.mxu3 %v5224_v59  ;;  %vm1694_vm12 = vcmp.eq.f32.partialorder %v1693_v14, 8.507059e+37 }
 0x441   :  { %v1667_v62 = vmul.f32 %v3999_v42, %v1666_v35  ;;  %2062 = vmatpush.msra.mxu1 %v5258_v60  ;;  %2043 = vmatpush.msra.mxu0 %v5269_v43  ;;  %v6671_v60 = vld [vmem:[#allocation30_spill] sm:$0xff]  ;;  %v6674_v43 = vld [vmem:[#allocation33_spill] sm:$0xff] }
 0x442   :  { %v5399_v0 = vpop.eup %4000  ;;  %v1649_v2 = vadd.f32 %v3997_v24, %v1648_v54  ;;  %2080 = vmatpush.msra.mxu2 %v5232_v22  ;;  %2100 = vmatpush.msra.mxu3 %v5238_v8 }
 0x443   :  { %v1668_v4 = vadd.f32 %v3999_v42, %v1667_v62  ;;  %v1685_v10 = vmul.f32 %v5399_v0, %v5374_v46  ;;  %v4003_v15 = vpop.eup %4002  ;;  %vm1690_vm9 = vweird.f32 %v5399_v0  ;;  %2063 = vmatpush.msra.mxu1 %v5271_v48  ;;  %2044 = vmatpush.msra.mxu0 %v5279_v31  ;;  %v6675_v48 = vld [vmem:[#allocation34_spill] sm:$0xff]  ;;  %v6678_v31 = vld [vmem:[#allocation17_spill] sm:$0xff] }
 0x444   :  { %v1653_v12 = vsel %vm1652_vm5, %v3997_v24, %v1649_v2  ;;  %2081 = vmatpush.msra.mxu2 %v5246_v55  ;;  %2101 = vmatpush.msra.mxu3 %v5252_v17  ;;  %vm1691_vm11 = vmor %vm1689_vm10, %vm1690_vm9  ;;  %v6669_v17 = vld [vmem:[#allocation28_spill] sm:$0xff] }
 0x445   :  { %v1658_v19 = vsel %vm1655_vm7, %v1657_v3, %v1653_v12  ;;  %v1672_v56 = vsel %vm1671_vm6, %v3999_v42, %v1668_v4  ;;  %v1686_v36 = vsub.f32 1.0, %v1685_v10  ;;  %2064 = vmatpush.msra.mxu1 %v5284_v37  ;;  %2045 = vmatpush.msra.mxu0 %v5292_v41  ;;  %v6679_v37 = vld [vmem:[#allocation18_spill] sm:$0xff] }
 0x446   :  { %v1677_v20 = vsel %vm1674_vm8, %v1676_v11, %v1672_v56  ;;  %v1700_v25 = vmul.f32 %v4003_v15, %v1658_v19  ;;  %2082 = vmatpush.msra.mxu2 %v5260_v23  ;;  %2102 = vmatpush.msra.mxu3 %v5265_v57  ;;  %v6672_v23 = vld [vmem:[#allocation31_spill] sm:$0xff]  ;;  %v6673_v57 = vld [vmem:[#allocation32_spill] sm:$0xff] }
 0x447   :  { %v1699_v24 = vmul.f32 %v1677_v20, %v5159_v39  ;;  %v1687_v26 = vmul.f32 %v5399_v0, %v1686_v36  ;;  %v1695_v39 = vand.u32 2147483648, %v5374_v46  ;;  %2065 = vmatpush.msra.mxu1 %v5294_v44  ;;  %2046 = vmatpush.msra.mxu0 %v5303_v49  ;;  %v1709_v41 = vld [vmem:[#allocation2 + $0x26] ss:$8 sm:$0xf] }
 0x448   :  { %2083 = vmatpush.msra.mxu2 %v5275_v21  ;;  %2103 = vmatpush.msra.mxu3 %v5277_v30  ;;  %v6676_v21 = vld [vmem:[#allocation35_spill] sm:$0xff]  ;;  %v6677_v30 = vld [vmem:[#allocation36_spill] sm:$0xff]  ;;  %v1723_v5 = vperm.slane %v1709_v41, 3  ;;  %v1722_v61 = vperm.slane %v1709_v41, 2 }
 0x449   :  { %v5423_v59 = vadd.f32 %v1700_v25, %v1699_v24  ;;  %v1688_v7 = vadd.f32 %v5399_v0, %v1687_v26  ;;  %v1696_v8 = vor.u32 1.1754944e-38, %v1695_v39  ;;  %2066 = vmatpush.msra.mxu1 %v5305_v27  ;;  %2047 = vmatpush.msra.mxu0 %v6671_v60  ;;  %v1707_v44 = vld [vmem:[#allocation2 + $0x6] ss:$8 sm:$0xf] }
 0x44a   :  { %2084 = vmatpush.msra.mxu2 %v5286_v38  ;;  %2104 = vmatpush.msra.mxu3 %v5288_v40  ;;  %v6680_v38 = vld [vmem:[#allocation19_spill] sm:$0xff]  ;;  %v6681_v40 = vld [vmem:[#allocation20_spill] sm:$0xff]  ;;  %v1711_v49 = vperm.slane %v1707_v44, 0  ;;  %v1712_v27 = vperm.slane %v1707_v44, 1  ;;  %v1713_v62 = vperm.slane %v1707_v44, 2 }
 0x44b   :  { %4004 = vtanh.f32 %v5423_v59  ;;  %v1692_v22 = vsel %vm1691_vm11, %v5399_v0, %v1688_v7  ;;  %2067 = vmatpush.msra.mxu1 %v6672_v23  ;;  %2048 = vmatpush.msra.mxu0 %v6675_v48 }
 0x44c   :  { %2085 = vmatpush.msra.mxu2 %v5296_v45  ;;  %2105 = vmatpush.msra.mxu3 %v5301_v47  ;;  %v1697_v51 = vsel %vm1694_vm12, %v1696_v8, %v1692_v22  ;;  %v1720_v45 = vperm.slane %v1709_v41, 0  ;;  %v1721_v47 = vperm.slane %v1709_v41, 1  ;;  %v1730_v2 = vsel %vm293_vm0, %v1713_v62, %v1722_v61  ;;  %v2246_v61 = vld [vmem:[#allocation9 + $0x1e0] sm:$0xff]  ;;  %v2247_v62 = vld [vmem:[#allocation9 + $0x1e8] sm:$0xff] }
 0x44d   :  { %2068 = vmatpush.msra.mxu1 %v6676_v21  ;;  %2049 = vmatpush.msra.mxu0 %v6678_v31 }
 0x44e   :  { %2086 = vmatpush.msra.mxu2 %v6669_v17  ;;  %2106 = vmatpush.msra.mxu3 %v6670_v16  ;;  %v1729_v28 = vsel %vm293_vm0, %v1712_v27, %v1721_v47 }
 0x44f   :  { %2069 = vmatpush.msra.mxu1 %v6679_v37  ;;  %2050 = vmatpush.msra.mxu0 %v5358_v1 }
 0x450   :  { %2087 = vmatpush.msra.mxu2 %v6673_v57  ;;  %2107 = vmatpush.msra.mxu3 %v6674_v43 }
 0x451   :  { %v4005_v9 = vpop.eup %4004  ;;  %2070 = vmatpush.msra.mxu1 %v5360_v13 }
 0x452   :  { %v1703_v55 = vmul.f32 %v4005_v9, %v1697_v51  ;;  %2088 = vmatpush.msra.mxu2 %v5335_v34  ;;  %2108 = vmatpush.msra.mxu3 %v6677_v30  ;;  %v1728_v34 = vsel %vm293_vm0, %v1711_v49, %v1720_v45  ;;  %v5478_v49 = vld [vmem:[#allocation2 + $0x7] ss:$8 sm:$0xf] }
 0x454   :  { %1812 = vmatmul.f32.vlgmr.msrb.gmra.mxu0 %v1703_v55  ;;  %1704 = vst [vmem:[#allocation3 + $0x5] sm:$0x1] %v1703_v55  ;;  %1832 = vmatmul.f32.vlgmr.msrb.gmra.mxu1 %v1703_v55 }
 0x455   :  { %1705 = vst [vmem:[#allocation3 + $0xc] sm:$0x2] %v1703_v55  ;;  %1852 = vmatmul.f32.vlgmr.msrb.gmra.mxu2 %v1703_v55  ;;  %1872 = vmatmul.f32.vlgmr.msrb.gmra.mxu3 %v1703_v55 }
 0x456   :  { %2089 = vmatpush.msra.mxu2 %v6680_v38  ;;  %2109 = vmatpush.msra.mxu3 %v6681_v40 }
 0x457   :  { %2260 = vmatpush.msrb.mxu0 %v2246_v61  ;;  %2283 = vmatpush.msrb.mxu1 %v2247_v62  ;;  %v2196_v61 = vld [vmem:[#allocation9 + $0x50] sm:$0xff]  ;;  %v2197_v62 = vld [vmem:[#allocation9 + $0x58] sm:$0xff] }
 0x458   :  { %2090 = vmatpush.msra.mxu2 %v5364_v33  ;;  %2110 = vmatpush.msra.mxu3 %v5366_v6  ;;  %v1714_v33 = vperm.slane %v1707_v44, 3 }
 0x45a   :  { %v1731_v6 = vsel %vm293_vm0, %v1714_v33, %v1723_v5  ;;  %v2244_v33 = vld [vmem:[#allocation9 + $0x1d0] sm:$0xff] }
 0x4d1   :  { %v1813_v46 = vpop.f32.mrf.mxu0  ;;  %v1833_v52 = vpop.f32.mrf.mxu1 }
 0x4d2   :  { %v1876_v42 = vadd.f32 %v1813_v46, %v1728_v34  ;;  %v1877_v1 = vadd.f32 %v1833_v52, %v1729_v28  ;;  %v1950_v46 = vperm.slane %v5478_v49, 0  ;;  %v1951_v28 = vperm.slane %v5478_v49, 1  ;;  %v2248_v52 = vld [vmem:[#allocation9 + $0x1f0] sm:$0xff] }
 0x4d3   :  { %2306 = vmatpush.msrb.mxu2 %v2248_v52 }
 0x4d4   :  { %v3871_v32 = vmul.f32 -1.442695, %v1876_v42  ;;  %v3872_v13 = vmul.f32 -1.442695, %v1877_v1  ;;  %v2249_v42 = vld [vmem:[#allocation9 + $0x1f8] sm:$0xff] }
 0x4d5   :  { %2329 = vmatpush.msrb.mxu3 %v2249_v42  ;;  %2307 = vmatpush.msrb.mxu2 %v2244_v33  ;;  %v2211_v33 = vld [vmem:[#allocation9 + $0xc8] sm:$0xff] }
 0x4d6   :  { %4006 = vpow2.f32 %v3871_v32 }
 0x4d7   :  { %4008 = vpow2.f32 %v3872_v13 }
 0x4d8   :  { %v1873_v18 = vpop.f32.mrf.mxu3  ;;  %v1853_v63 = vpop.f32.mrf.mxu2 }
 0x4d9   :  { %v1879_v58 = vadd.f32 %v1873_v18, %v1731_v6  ;;  %v1878_v10 = vadd.f32 %v1853_v63, %v1730_v2  ;;  %v2245_v6 = vld [vmem:[#allocation9 + $0x1d8] sm:$0xff]  ;;  %v2236_v63 = vld [vmem:[#allocation9 + $0x190] sm:$0xff] }
 0x4da   :  { %2330 = vmatpush.msrb.mxu3 %v2245_v6  ;;  %v2237_v2 = vld [vmem:[#allocation9 + $0x198] sm:$0xff] }
 0x4db   :  { %v3873_v29 = vmul.f32 -1.442695, %v1879_v58 }
 0x4dc   :  { %v4007_v35 = vpop.eup %4006 }
 0x4dd   :  { %v4009_v50 = vpop.eup %4008  ;;  %v1883_v53 = vadd.f32 1.0, %v4007_v35  ;;  %4010 = vpow2.f32 %v3873_v29  ;;  %v2240_v29 = vld [vmem:[#allocation9 + $0x1b0] sm:$0xff]  ;;  %v2241_v35 = vld [vmem:[#allocation9 + $0x1b8] sm:$0xff] }
 0x4de   :  { %v1902_v54 = vadd.f32 1.0, %v4009_v50  ;;  %2308 = vmatpush.msrb.mxu2 %v2240_v29  ;;  %2331 = vmatpush.msrb.mxu3 %v2241_v35  ;;  %v2201_v29 = vld [vmem:[#allocation9 + $0x78] sm:$0xff] }
 0x4df   :  { %4012 = vrcp.f32 %v1883_v53  ;;  %v1895_v36 = vand.u32 2147483648, %v1883_v53  ;;  %v1893_v24 = vand.u32 2147483647, %v1883_v53  ;;  %vm1889_vm15 = vweird.f32 %v1883_v53 }
 0x4e0   :  { %4014 = vrcp.f32 %v1902_v54  ;;  %v1914_v20 = vand.u32 2147483648, %v1902_v54  ;;  %v1912_v7 = vand.u32 2147483647, %v1902_v54  ;;  %vm1908_vm1 = vweird.f32 %v1902_v54  ;;  %2309 = vmatpush.msrb.mxu2 %v2236_v63  ;;  %2332 = vmatpush.msrb.mxu3 %v2237_v2  ;;  %v2202_v2 = vld [vmem:[#allocation9 + $0x80] sm:$0xff] }
 0x4e1   :  { %v1896_v22 = vor.u32 1.1754944e-38, %v1895_v36  ;;  %vm1894_vm4 = vcmp.eq.f32.partialorder %v1893_v24, 8.507059e+37  ;;  %v2239_v36 = vld [vmem:[#allocation9 + $0x1a8] sm:$0xff] }
 0x4e2   :  { %v1915_v51 = vor.u32 1.1754944e-38, %v1914_v20  ;;  %vm1913_vm5 = vcmp.eq.f32.partialorder %v1912_v7, 8.507059e+37  ;;  %v2228_v20 = vld [vmem:[#allocation9 + $0x150] sm:$0xff]  ;;  %v2235_v7 = vld [vmem:[#allocation9 + $0x188] sm:$0xff] }
 0x4e3   :  { %v4011_v0 = vpop.eup %4010 }
 0x4e4   :  { %v1922_v3 = vadd.f32 1.0, %v4011_v0  ;;  %v1953_v0 = vperm.slane %v5478_v49, 3 }
 0x4e5   :  { %v4013_v4 = vpop.eup %4012 }
 0x4e6   :  { %v4015_v11 = vpop.eup %4014  ;;  %v1885_v12 = vmul.f32 %v4013_v4, %v1883_v53  ;;  %4016 = vrcp.f32 %v1922_v3  ;;  %vm1890_vm13 = vweird.f32 %v4013_v4  ;;  %v1934_v37 = vand.u32 2147483648, %v1922_v3 }
 0x4e7   :  { %v1904_v15 = vmul.f32 %v4015_v11, %v1902_v54  ;;  %4018 = vtanh.f32 %v1878_v10  ;;  %vm1909_vm14 = vweird.f32 %v4015_v11  ;;  %vm1891_vm2 = vmor %vm1889_vm15, %vm1890_vm13  ;;  %vm1928_vm7 = vweird.f32 %v1922_v3  ;;  %v2232_v10 = vld [vmem:[#allocation9 + $0x170] sm:$0xff] }
 0x4e8   :  { %v1886_v19 = vsub.f32 1.0, %v1885_v12  ;;  %vm1910_vm3 = vmor %vm1908_vm1, %vm1909_vm14  ;;  %v1932_v38 = vand.u32 2147483647, %v1922_v3  ;;  %v1935_v41 = vor.u32 1.1754944e-38, %v1934_v37  ;;  %2310 = vmatpush.msrb.mxu2 %v2232_v10  ;;  %v2223_v37 = vld [vmem:[#allocation9 + $0x128] sm:$0xff] }
 0x4e9   :  { %v1905_v56 = vsub.f32 1.0, %v1904_v15  ;;  %v2233_v15 = vld [vmem:[#allocation9 + $0x178] sm:$0xff] }
 0x4ea   :  { %v1887_v25 = vmul.f32 %v4013_v4, %v1886_v19  ;;  %vm1933_vm9 = vcmp.eq.f32.partialorder %v1932_v38, 8.507059e+37  ;;  %2333 = vmatpush.msrb.mxu3 %v2233_v15  ;;  %2311 = vmatpush.msrb.mxu2 %v2228_v20  ;;  %v2212_v38 = vld [vmem:[#allocation9 + $0xd0] sm:$0xff]  ;;  %v2193_v15 = vld [vmem:[#allocation9 + $0x38] sm:$0xff]  ;;  %v2199_v20 = vld [vmem:[#allocation9 + $0x68] sm:$0xff] }
 0x4eb   :  { %v1906_v26 = vmul.f32 %v4015_v11, %v1905_v56  ;;  %v2238_v56 = vld [vmem:[#allocation9 + $0x1a0] sm:$0xff] }
 0x4ec   :  { %v4017_v39 = vpop.eup %4016  ;;  %v1888_v14 = vadd.f32 %v4013_v4, %v1887_v25  ;;  %v2229_v25 = vld [vmem:[#allocation9 + $0x158] sm:$0xff] }
 0x4ed   :  { %v1907_v8 = vadd.f32 %v4015_v11, %v1906_v26  ;;  %v1924_v9 = vmul.f32 %v4017_v39, %v1922_v3  ;;  %v4019_v17 = vpop.eup %4018  ;;  %vm1929_vm6 = vweird.f32 %v4017_v39  ;;  %v2242_v3 = vld [vmem:[#allocation9 + $0x1c0] sm:$0xff]  ;;  %2334 = vmatpush.msrb.mxu3 %v2229_v25 }
 0x4ee   :  { %v1892_v55 = vsel %vm1891_vm2, %v4013_v4, %v1888_v14  ;;  %vm1930_vm8 = vmor %vm1928_vm7, %vm1929_vm6  ;;  %v2243_v4 = vld [vmem:[#allocation9 + $0x1c8] sm:$0xff]  ;;  %2261 = vmatpush.msrb.mxu0 %v2242_v3  ;;  %v2234_v26 = vld [vmem:[#allocation9 + $0x180] sm:$0xff] }
 0x4ef   :  { %v1897_v16 = vsel %vm1894_vm4, %v1896_v22, %v1892_v55  ;;  %v1911_v60 = vsel %vm1910_vm3, %v4015_v11, %v1907_v8  ;;  %v1925_v23 = vsub.f32 1.0, %v1924_v9  ;;  %2284 = vmatpush.msrb.mxu1 %v2243_v4  ;;  %v2225_v22 = vld [vmem:[#allocation9 + $0x138] sm:$0xff]  ;;  %v2231_v55 = vld [vmem:[#allocation9 + $0x168] sm:$0xff] }
 0x4f0   :  { %v1916_v57 = vsel %vm1913_vm5, %v1915_v51, %v1911_v60  ;;  %v1939_v43 = vmul.f32 %v4019_v17, %v1897_v16  ;;  %2262 = vmatpush.msrb.mxu0 %v2238_v56  ;;  %2335 = vmatpush.msrb.mxu3 %v2225_v22  ;;  %v2230_v51 = vld [vmem:[#allocation9 + $0x160] sm:$0xff]  ;;  %v2220_v17 = vld [vmem:[#allocation9 + $0x110] sm:$0xff]  ;;  %v2221_v60 = vld [vmem:[#allocation9 + $0x118] sm:$0xff] }
 0x4f1   :  { %v1938_v48 = vmul.f32 %v1916_v57, %v5423_v59  ;;  %v1926_v21 = vmul.f32 %v4017_v39, %v1925_v23  ;;  %v5476_v59 = vld [vmem:[#allocation2 + $0x27] ss:$8 sm:$0xf]  ;;  %2285 = vmatpush.msrb.mxu1 %v2239_v36 }
 0x4f2   :  { %v1959_v27 = vperm.slane %v5476_v59, 0  ;;  %v1960_v34 = vperm.slane %v5476_v59, 1  ;;  %v1962_v54 = vperm.slane %v5476_v59, 3  ;;  %2263 = vmatpush.msrb.mxu0 %v2234_v26  ;;  %2336 = vmatpush.msrb.mxu3 %v2221_v60  ;;  %v2226_v23 = vld [vmem:[#allocation9 + $0x140] sm:$0xff]  ;;  %v2227_v57 = vld [vmem:[#allocation9 + $0x148] sm:$0xff]  ;;  %v2188_v26 = vld [vmem:[#allocation9 + $0x10] sm:$0xff] }
 0x4f3   :  { %v5473_v30 = vadd.f32 %v1939_v43, %v1938_v48  ;;  %v1927_v31 = vadd.f32 %v4017_v39, %v1926_v21  ;;  %2286 = vmatpush.msrb.mxu1 %v2235_v7  ;;  %v2216_v43 = vld [vmem:[#allocation9 + $0xf0] sm:$0xff]  ;;  %v1961_v48 = vperm.slane %v5476_v59, 2  ;;  %v2217_v21 = vld [vmem:[#allocation9 + $0xf8] sm:$0xff]  ;;  %v2214_v59 = vld [vmem:[#allocation9 + $0xe0] sm:$0xff] }
 0x4f4   :  { %v1967_v1 = vsel %vm293_vm0, %v1950_v46, %v1959_v27  ;;  %v1968_v13 = vsel %vm293_vm0, %v1951_v28, %v1960_v34  ;;  %v1970_v11 = vsel %vm293_vm0, %v1953_v0, %v1962_v54  ;;  %2264 = vmatpush.msrb.mxu0 %v2230_v51  ;;  %2337 = vmatpush.msrb.mxu3 %v2217_v21  ;;  %v2208_v27 = vld [vmem:[#allocation9 + $0xb0] sm:$0xff]  ;;  %v2209_v34 = vld [vmem:[#allocation9 + $0xb8] sm:$0xff]  ;;  %v2215_v28 = vld [vmem:[#allocation9 + $0xe8] sm:$0xff] }
 0x4f5   :  { %4020 = vtanh.f32 %v5473_v30  ;;  %v1931_v40 = vsel %vm1930_vm8, %v4017_v39, %v1927_v31  ;;  %v2224_v39 = vld [vmem:[#allocation9 + $0x130] sm:$0xff]  ;;  %2287 = vmatpush.msrb.mxu1 %v2231_v55  ;;  %v2222_v31 = vld [vmem:[#allocation9 + $0x120] sm:$0xff]  ;;  %v2203_v3 = vld [vmem:[#allocation9 + $0x88] sm:$0xff] }
 0x4f6   :  { %v1936_v45 = vsel %vm1933_vm9, %v1935_v41, %v1931_v40  ;;  %2312 = vmatpush.msrb.mxu2 %v2224_v39  ;;  %2265 = vmatpush.msrb.mxu0 %v2226_v23  ;;  %v2213_v40 = vld [vmem:[#allocation9 + $0xd8] sm:$0xff]  ;;  %v2218_v41 = vld [vmem:[#allocation9 + $0x100] sm:$0xff]  ;;  %v2195_v23 = vld [vmem:[#allocation9 + $0x48] sm:$0xff] }
 0x4f7   :  { %2288 = vmatpush.msrb.mxu1 %v2227_v57  ;;  %2338 = vmatpush.msrb.mxu3 %v2213_v40  ;;  %v2198_v36 = vld [vmem:[#allocation9 + $0x60] sm:$0xff]  ;;  %v2189_v7 = vld [vmem:[#allocation9 + $0x18] sm:$0xff] }
 0x4f8   :  { %2313 = vmatpush.msrb.mxu2 %v2220_v17  ;;  %2266 = vmatpush.msrb.mxu0 %v2222_v31  ;;  %v5533_v51 = vld [vmem:[#allocation10 + $0x1f8] sm:$0xff]  ;;  %v2194_v60 = vld [vmem:[#allocation9 + $0x40] sm:$0xff]  ;;  %v5547_v31 = vld [vmem:[#allocation10 + $0x1d0] sm:$0xff] }
 0x4f9   :  { %2289 = vmatpush.msrb.mxu1 %v2223_v37  ;;  %2339 = vmatpush.msrb.mxu3 %v2209_v34  ;;  %v5549_v37 = vld [vmem:[#allocation10 + $0x1d8] sm:$0xff] }
 0x4fa   :  { %2314 = vmatpush.msrb.mxu2 %v2216_v43  ;;  %2267 = vmatpush.msrb.mxu0 %v2218_v41  ;;  %v2190_v41 = vld [vmem:[#allocation9 + $0x20] sm:$0xff]  ;;  %v5557_v34 = vld [vmem:[#allocation10 + $0x1b8] sm:$0xff] }
 0x4fb   :  { %v4021_v44 = vpop.eup %4020  ;;  %v5653_v39 = vld [vmem:[#allocation10 + $0xd8] sm:$0xff] }
 0x4fc   :  { %v1942_v47 = vmul.f32 %v4021_v44, %v1936_v45  ;;  %v1952_v44 = vperm.slane %v5478_v49, 2  ;;  %2315 = vmatpush.msrb.mxu2 %v2212_v38  ;;  %2268 = vmatpush.msrb.mxu0 %v2214_v59  ;;  %v2187_v59 = vld [vmem:[#allocation9 + $0x8] sm:$0xff]  ;;  %6689 = vst [vmem:[#allocation22_spill] sm:$0xff] %v5653_v39  ;;  %v5665_v55 = vld [vmem:[#allocation10 + $0xb8] sm:$0xff] }
 0x4fd   :  { %6691 = vst [vmem:[#allocation24_spill] sm:$0xff] %v5665_v55 }
 0x4fe   :  { %2051 = vmatmul.f32.vlgmr.msra.gmra.mxu0 %v1942_v47  ;;  %1943 = vst [vmem:[#allocation3 + $0x6] sm:$0x1] %v1942_v47  ;;  %2071 = vmatmul.f32.vlgmr.msra.gmra.mxu1 %v1942_v47  ;;  %v1969_v52 = vsel %vm293_vm0, %v1952_v44, %v1961_v48  ;;  %v2191_v44 = vld [vmem:[#allocation9 + $0x28] sm:$0xff] }
 0x4ff   :  { %1944 = vst [vmem:[#allocation3 + $0xd] sm:$0x2] %v1942_v47  ;;  %2091 = vmatmul.f32.vlgmr.msra.gmra.mxu2 %v1942_v47  ;;  %2111 = vmatmul.f32.vlgmr.msra.gmra.mxu3 %v1942_v47  ;;  %v2219_v47 = vld [vmem:[#allocation9 + $0x108] sm:$0xff] }
 0x500   :  { %2290 = vmatpush.msrb.mxu1 %v2219_v47  ;;  %2316 = vmatpush.msrb.mxu2 %v2208_v27  ;;  %v5555_v27 = vld [vmem:[#allocation10 + $0x1b0] sm:$0xff] }
 0x502   :  { %2291 = vmatpush.msrb.mxu1 %v2215_v28 }
 0x504   :  { %2292 = vmatpush.msrb.mxu1 %v2211_v33  ;;  %v5576_v33 = vld [vmem:[#allocation10 + $0x1c8] sm:$0xff] }
 0x57b   :  { %v2052_v32 = vpop.f32.mrf.mxu0  ;;  %v2072_v5 = vpop.f32.mrf.mxu1 }
 0x57c   :  { %v2115_v18 = vadd.f32 %v2052_v32, %v1967_v1  ;;  %v2116_v58 = vadd.f32 %v2072_v5, %v1968_v13  ;;  %v2204_v1 = vld [vmem:[#allocation9 + $0x90] sm:$0xff]  ;;  %v2205_v32 = vld [vmem:[#allocation9 + $0x98] sm:$0xff]  ;;  %v2210_v5 = vld [vmem:[#allocation9 + $0xc0] sm:$0xff] }
 0x57d   :  { %2317 = vmatpush.msrb.mxu2 %v2204_v1  ;;  %2340 = vmatpush.msrb.mxu3 %v2205_v32  ;;  %v5569_v32 = vld [vmem:[#allocation10 + $0x190] sm:$0xff] }
 0x57e   :  { %v3874_v50 = vmul.f32 -1.442695, %v2115_v18  ;;  %v3875_v53 = vmul.f32 -1.442695, %v2116_v58  ;;  %v2200_v58 = vld [vmem:[#allocation9 + $0x70] sm:$0xff]  ;;  %2269 = vmatpush.msrb.mxu0 %v2210_v5  ;;  %v5574_v5 = vld [vmem:[#allocation10 + $0x1c0] sm:$0xff] }
 0x57f   :  { %2318 = vmatpush.msrb.mxu2 %v2200_v58  ;;  %2341 = vmatpush.msrb.mxu3 %v2201_v29  ;;  %v5584_v58 = vld [vmem:[#allocation10 + $0x178] sm:$0xff]  ;;  %v5723_v29 = vld [vmem:[#allocation10 + $0x10] sm:$0xff] }
 0x580   :  { %4022 = vpow2.f32 %v3874_v50  ;;  %v2206_v50 = vld [vmem:[#allocation9 + $0xa0] sm:$0xff]  ;;  %6707 = vst [vmem:[#allocation20_spill] sm:$0xff] %v5723_v29 }
 0x581   :  { %4024 = vpow2.f32 %v3875_v53  ;;  %v2207_v53 = vld [vmem:[#allocation9 + $0xa8] sm:$0xff]  ;;  %2270 = vmatpush.msrb.mxu0 %v2206_v50  ;;  %2319 = vmatpush.msrb.mxu2 %v2196_v61 }
 0x582   :  { %v2112_v12 = vpop.f32.mrf.mxu3  ;;  %v2092_v45 = vpop.f32.mrf.mxu2  ;;  %2293 = vmatpush.msrb.mxu1 %v2207_v53  ;;  %2342 = vmatpush.msrb.mxu3 %v2197_v62  ;;  %v5603_v53 = vld [vmem:[#allocation10 + $0x150] sm:$0xff]  ;;  %v5609_v62 = vld [vmem:[#allocation10 + $0x180] sm:$0xff] }
 0x583   :  { %v2118_v19 = vadd.f32 %v2112_v12, %v1970_v11  ;;  %v2117_v13 = vadd.f32 %v2092_v45, %v1969_v52  ;;  %v2192_v12 = vld [vmem:[#allocation9 + $0x30] sm:$0xff]  ;;  %2271 = vmatpush.msrb.mxu0 %v2202_v2  ;;  %v5561_v52 = vld [vmem:[#allocation10 + $0x1e0] sm:$0xff]  ;;  %v5617_v2 = vld [vmem:[#allocation10 + $0x138] sm:$0xff] }
 0x584   :  { %2294 = vmatpush.msrb.mxu1 %v2203_v3  ;;  %2320 = vmatpush.msrb.mxu2 %v2192_v12 }
 0x585   :  { %v3876_v24 = vmul.f32 -1.442695, %v2118_v19  ;;  %2343 = vmatpush.msrb.mxu3 %v2193_v15  ;;  %2272 = vmatpush.msrb.mxu0 %v2198_v36  ;;  %v5627_v15 = vld [vmem:[#allocation10 + $0x110] sm:$0xff]  ;;  %v5635_v36 = vld [vmem:[#allocation10 + $0x148] sm:$0xff] }
 0x586   :  { %v4023_v14 = vpop.eup %4022  ;;  %2295 = vmatpush.msrb.mxu1 %v2199_v20  ;;  %2321 = vmatpush.msrb.mxu2 %v2188_v26  ;;  %v5639_v20 = vld [vmem:[#allocation10 + $0xf0] sm:$0xff]  ;;  %v5647_v26 = vld [vmem:[#allocation10 + $0x128] sm:$0xff] }
 0x587   :  { %v4025_v8 = vpop.eup %4024  ;;  %v5489_v9 = vadd.f32 1.0, %v4023_v14  ;;  %4026 = vpow2.f32 %v3876_v24  ;;  %2344 = vmatpush.msrb.mxu3 %v2189_v7  ;;  %2273 = vmatpush.msrb.mxu0 %v2194_v60  ;;  %v5651_v7 = vld [vmem:[#allocation10 + $0xd0] sm:$0xff]  ;;  %v5675_v60 = vld [vmem:[#allocation10 + $0xe8] sm:$0xff] }
 0x588   :  { %v5491_v16 = vadd.f32 1.0, %v4025_v8  ;;  %2296 = vmatpush.msrb.mxu1 %v2195_v23  ;;  %6688 = vst [vmem:[#allocation21_spill] sm:$0xff] %v5651_v7  ;;  %v5677_v23 = vld [vmem:[#allocation10 + $0x90] sm:$0xff] }
 0x589   :  { %4028 = vrcp.f32 %v5489_v9  ;;  %v2134_v0 = vand.u32 2147483648, %v5489_v9  ;;  %v2132_v11 = vand.u32 2147483647, %v5489_v9  ;;  %vm2128_vm12 = vweird.f32 %v5489_v9  ;;  %2508 = vmatpush.msra.mxu3 %v5533_v51  ;;  %2274 = vmatpush.msrb.mxu0 %v2190_v41  ;;  %6692 = vst [vmem:[#allocation25_spill] sm:$0xff] %v5677_v23  ;;  %v5695_v41 = vld [vmem:[#allocation10 + $0xa8] sm:$0xff] }
 0x58a   :  { %4030 = vrcp.f32 %v5491_v16  ;;  %v2153_v4 = vand.u32 2147483648, %v5491_v16  ;;  %v2151_v56 = vand.u32 2147483647, %v5491_v16  ;;  %vm2147_vm13 = vweird.f32 %v5491_v16  ;;  %2297 = vmatpush.msrb.mxu1 %v2191_v44  ;;  %6698 = vst [vmem:[#allocation31_spill] sm:$0xff] %v5695_v41  ;;  %v5699_v44 = vld [vmem:[#allocation10 + $0x50] sm:$0xff] }
 0x58b   :  { %v2135_v14 = vor.u32 1.1754944e-38, %v2134_v0  ;;  %vm2133_vm1 = vcmp.eq.f32.partialorder %v2132_v11, 8.507059e+37  ;;  %2509 = vmatpush.msra.mxu3 %v5549_v37  ;;  %v5615_v0 = vld [vmem:[#allocation10 + $0x130] sm:$0xff]  ;;  %v5623_v11 = vld [vmem:[#allocation10 + $0x168] sm:$0xff]  ;;  %6699 = vst [vmem:[#allocation32_spill] sm:$0xff] %v5699_v44 }
 0x58c   :  { %v2154_v17 = vor.u32 1.1754944e-38, %v2153_v4  ;;  %vm2152_vm2 = vcmp.eq.f32.partialorder %v2151_v56, 8.507059e+37  ;;  %2298 = vmatpush.msrb.mxu1 %v2187_v59  ;;  %v5633_v56 = vld [vmem:[#allocation10 + $0x140] sm:$0xff]  ;;  %v5711_v59 = vld [vmem:[#allocation10 + $0x88] sm:$0xff] }
 0x58d   :  { %v4027_v46 = vpop.eup %4026  ;;  %2510 = vmatpush.msra.mxu3 %v5557_v34  ;;  %6702 = vst [vmem:[#allocation35_spill] sm:$0xff] %v5711_v59 }
 0x58e   :  { %v5498_v42 = vadd.f32 1.0, %v4027_v46  ;;  %v2186_v46 = vld [vmem:[#allocation9] sm:$0xff] }
 0x58f   :  { %v5500_v49 = vpop.eup %4028  ;;  %2275 = vmatpush.msrb.mxu0 %v2186_v46  ;;  %v5709_v46 = vld [vmem:[#allocation10 + $0x80] sm:$0xff] }
 0x590   :  { %v5502_v6 = vpop.eup %4030  ;;  %v2124_v18 = vmul.f32 %v5500_v49, %v5489_v9  ;;  %4032 = vrcp.f32 %v5498_v42  ;;  %vm2129_vm10 = vweird.f32 %v5500_v49  ;;  %v5531_v9 = vld [vmem:[#allocation10 + $0x1f0] sm:$0xff]  ;;  %vm2167_vm4 = vweird.f32 %v5498_v42  ;;  %6701 = vst [vmem:[#allocation34_spill] sm:$0xff] %v5709_v46 }
 0x591   :  { %v2143_v35 = vmul.f32 %v5502_v6, %v5491_v16  ;;  %4034 = vtanh.f32 %v2117_v13  ;;  %vm2148_vm11 = vweird.f32 %v5502_v6  ;;  %vm5524_vm14 = vmor %vm2128_vm12, %vm2129_vm10  ;;  %2488 = vmatpush.msra.mxu2 %v5531_v9  ;;  %v2173_v13 = vand.u32 2147483648, %v5498_v42  ;;  %2448 = vmatpush.msra.mxu0 %v5561_v52 }
 0x592   :  { %v2125_v54 = vsub.f32 1.0, %v2124_v18  ;;  %vm5537_vm15 = vmor %vm2147_vm13, %vm2148_vm11  ;;  %v5582_v18 = vld [vmem:[#allocation10 + $0x170] sm:$0xff] }
 0x593   :  { %v2144_v63 = vsub.f32 1.0, %v2143_v35  ;;  %2489 = vmatpush.msra.mxu2 %v5547_v31  ;;  %v5594_v35 = vld [vmem:[#allocation10 + $0x1a0] sm:$0xff]  ;;  %2449 = vmatpush.msra.mxu0 %v5574_v5  ;;  %v2174_v61 = vor.u32 1.1754944e-38, %v2173_v13 }
 0x594   :  { %v2126_v10 = vmul.f32 %v5500_v49, %v2125_v54  ;;  %v5605_v54 = vld [vmem:[#allocation10 + $0x158] sm:$0xff]  ;;  %v5717_v13 = vld [vmem:[#allocation10 + $0x60] sm:$0xff] }
 0x595   :  { %v2145_v19 = vmul.f32 %v5502_v6, %v2144_v63  ;;  %2490 = vmatpush.msra.mxu2 %v5555_v27  ;;  %v5611_v63 = vld [vmem:[#allocation10 + $0x188] sm:$0xff]  ;;  %2450 = vmatpush.msra.mxu0 %v5594_v35  ;;  %6705 = vst [vmem:[#allocation18_spill] sm:$0xff] %v5717_v13 }
 0x596   :  { %v5517_v25 = vpop.eup %4032  ;;  %v2127_v24 = vadd.f32 %v5500_v49, %v2126_v10  ;;  %v5621_v10 = vld [vmem:[#allocation10 + $0x160] sm:$0xff] }
 0x597   :  { %v2146_v22 = vadd.f32 %v5502_v6, %v2145_v19  ;;  %v2163_v8 = vmul.f32 %v5517_v25, %v5498_v42  ;;  %v4035_v57 = vpop.eup %4034  ;;  %vm2168_vm3 = vweird.f32 %v5517_v25  ;;  %2491 = vmatpush.msra.mxu2 %v5569_v32  ;;  %2451 = vmatpush.msra.mxu0 %v5609_v62  ;;  %v5629_v19 = vld [vmem:[#allocation10 + $0x118] sm:$0xff] }
 0x598   :  { %v2131_v16 = vsel %vm5524_vm14, %v5500_v49, %v2127_v24  ;;  %v5571_v49 = vld [vmem:[#allocation10 + $0x198] sm:$0xff]  ;;  %vm5588_vm5 = vmor %vm2167_vm4, %vm2168_vm3  ;;  %v5645_v24 = vld [vmem:[#allocation10 + $0x120] sm:$0xff] }
 0x599   :  { %v2136_v43 = vsel %vm2133_vm1, %v2135_v14, %v2131_v16  ;;  %v2150_v48 = vsel %vm5537_vm15, %v5502_v6, %v2146_v22  ;;  %v2164_v21 = vsub.f32 1.0, %v2163_v8  ;;  %v2171_v6 = vand.u32 2147483647, %v5498_v42  ;;  %2511 = vmatpush.msra.mxu3 %v5571_v49  ;;  %v5596_v42 = vld [vmem:[#allocation10 + $0x1a8] sm:$0xff]  ;;  %2492 = vmatpush.msra.mxu2 %v5582_v18  ;;  %v5657_v14 = vld [vmem:[#allocation10 + $0x100] sm:$0xff]  ;;  %v5663_v8 = vld [vmem:[#allocation10 + $0xb0] sm:$0xff] }
 0x59a   :  { %v2155_v38 = vsel %vm2152_vm2, %v2154_v17, %v2150_v48  ;;  %v2178_v40 = vmul.f32 %v4035_v57, %v2136_v43  ;;  %2452 = vmatpush.msra.mxu0 %v5621_v10  ;;  %v5659_v22 = vld [vmem:[#allocation10 + $0x108] sm:$0xff]  ;;  %6690 = vst [vmem:[#allocation23_spill] sm:$0xff] %v5663_v8  ;;  %v5673_v16 = vld [vmem:[#allocation10 + $0xe0] sm:$0xff]  ;;  %v5679_v57 = vld [vmem:[#allocation10 + $0x98] sm:$0xff] }
 0x59b   :  { %v2177_v45 = vmul.f32 %v2155_v38, %v5473_v30  ;;  %v2165_v47 = vmul.f32 %v5517_v25, %v2164_v21  ;;  %v5563_v30 = vld [vmem:[#allocation10 + $0x1e8] sm:$0xff]  ;;  %2512 = vmatpush.msra.mxu3 %v5584_v58  ;;  %vm2172_vm6 = vcmp.eq.f32.partialorder %v2171_v6, 8.507059e+37  ;;  %2493 = vmatpush.msra.mxu2 %v5603_v53  ;;  %6693 = vst [vmem:[#allocation26_spill] sm:$0xff] %v5679_v57  ;;  %v5681_v43 = vld [vmem:[#allocation10 + $0xc0] sm:$0xff]  ;;  %v5687_v21 = vld [vmem:[#allocation10 + $0x70] sm:$0xff] }
 0x59c   :  { %2468 = vmatpush.msra.mxu1 %v5563_v30  ;;  %2453 = vmatpush.msra.mxu0 %v5633_v56  ;;  %v5683_v48 = vld [vmem:[#allocation10 + $0xc8] sm:$0xff]  ;;  %6695 = vst [vmem:[#allocation28_spill] sm:$0xff] %v5687_v21  ;;  %v5689_v38 = vld [vmem:[#allocation10 + $0x78] sm:$0xff] }
 0x59d   :  { %v2179_v28 = vadd.f32 %v2178_v40, %v2177_v45  ;;  %v2166_v1 = vadd.f32 %v5517_v25, %v2165_v47  ;;  %2513 = vmatpush.msra.mxu3 %v5605_v54  ;;  %2494 = vmatpush.msra.mxu2 %v5615_v0  ;;  %6694 = vst [vmem:[#allocation27_spill] sm:$0xff] %v5683_v48  ;;  %v5693_v40 = vld [vmem:[#allocation10 + $0xa0] sm:$0xff]  ;;  %v5701_v45 = vld [vmem:[#allocation10 + $0x58] sm:$0xff]  ;;  %v5719_v6 = vld [vmem:[#allocation10 + $0x68] sm:$0xff] }
 0x59e   :  { %2469 = vmatpush.msra.mxu1 %v5576_v33  ;;  %2454 = vmatpush.msra.mxu0 %v5645_v24  ;;  %6696 = vst [vmem:[#allocation29_spill] sm:$0xff] %v5689_v38 }
 0x59f   :  { %4036 = vtanh.f32 %v2179_v28  ;;  %v2170_v50 = vsel %vm5588_vm5, %v5517_v25, %v2166_v1  ;;  %2514 = vmatpush.msra.mxu3 %v5617_v2  ;;  %v5641_v25 = vld [vmem:[#allocation10 + $0xf8] sm:$0xff]  ;;  %2495 = vmatpush.msra.mxu2 %v5627_v15  ;;  %6697 = vst [vmem:[#allocation30_spill] sm:$0xff] %v5693_v40  ;;  %v5713_v28 = vld [vmem:[#allocation10 + $0x30] sm:$0xff] }
 0x5a0   :  { %2470 = vmatpush.msra.mxu1 %v5596_v42  ;;  %v2175_v4 = vsel %vm2172_vm6, %v2174_v61, %v2170_v50  ;;  %2455 = vmatpush.msra.mxu0 %v5657_v14  ;;  %6700 = vst [vmem:[#allocation33_spill] sm:$0xff] %v5701_v45  ;;  %v5715_v1 = vld [vmem:[#allocation10 + $0x38] sm:$0xff]  ;;  %v5729_v61 = vld [vmem:[#allocation10 + $0x40] sm:$0xff] }
 0x5a1   :  { %2515 = vmatpush.msra.mxu3 %v5629_v19  ;;  %2496 = vmatpush.msra.mxu2 %v5639_v20  ;;  %6703 = vst [vmem:[#allocation36_spill] sm:$0xff] %v5713_v28  ;;  %v5725_v50 = vld [vmem:[#allocation10 + $0x18] sm:$0xff] }
 0x5a2   :  { %2471 = vmatpush.msra.mxu1 %v5611_v63  ;;  %2456 = vmatpush.msra.mxu0 %v5673_v16  ;;  %6704 = vst [vmem:[#allocation17_spill] sm:$0xff] %v5715_v1 }
 0x5a3   :  { %2516 = vmatpush.msra.mxu3 %v5641_v25  ;;  %2497 = vmatpush.msra.mxu2 %v5651_v7  ;;  %6706 = vst [vmem:[#allocation19_spill] sm:$0xff] %v5719_v6 }
 0x5a4   :  { %2472 = vmatpush.msra.mxu1 %v5623_v11  ;;  %2457 = vmatpush.msra.mxu0 %v5681_v43  ;;  %6708 = vst [vmem:[#allocation37_spill] sm:$0xff] %v5725_v50 }
 0x5a5   :  { %v4037_v3 = vpop.eup %4036  ;;  %2517 = vmatpush.msra.mxu3 %v5653_v39  ;;  %2498 = vmatpush.msra.mxu2 %v5663_v8  ;;  %6709 = vst [vmem:[#allocation38_spill] sm:$0xff] %v5729_v61 }
 0x5a6   :  { %v2181_v12 = vmul.f32 %v4037_v3, %v2175_v4  ;;  %2473 = vmatpush.msra.mxu1 %v5635_v36  ;;  %2458 = vmatpush.msra.mxu0 %v5693_v40  ;;  %v5731_v3 = vld [vmem:[#allocation10 + $0x48] sm:$0xff]  ;;  %v5737_v4 = vld [vmem:[#allocation10 + $0x20] sm:$0xff] }
 0x5a7   :  { %2518 = vmatpush.msra.mxu3 %v5665_v55  ;;  %2499 = vmatpush.msra.mxu2 %v5677_v23  ;;  %6710 = vst [vmem:[#allocation39_spill] sm:$0xff] %v5731_v3 }
 0x5a8   :  { %2182 = vst [vmem:[#allocation3 + $0x7] sm:$0x1] %v2181_v12  ;;  %2474 = vmatpush.msra.mxu1 %v5647_v26  ;;  %2459 = vmatpush.msra.mxu0 %v5709_v46 }
 0x5a9   :  { %2183 = vst [vmem:[#allocation3 + $0xe] sm:$0x2] %v2181_v12  ;;  %2519 = vmatpush.msra.mxu3 %v5679_v57  ;;  %2500 = vmatpush.msra.mxu2 %v5687_v21  ;;  %v5739_v12 = vld [vmem:[#allocation10 + $0x28] sm:$0xff] }
 0x5aa   :  { %2475 = vmatpush.msra.mxu1 %v5659_v22  ;;  %2460 = vmatpush.msra.mxu0 %v5717_v13  ;;  %6711 = vst [vmem:[#allocation40_spill] sm:$0xff] %v5737_v4 }
 0x5ab   :  { %2520 = vmatpush.msra.mxu3 %v5689_v38  ;;  %2501 = vmatpush.msra.mxu2 %v5699_v44  ;;  %6712 = vst [vmem:[#allocation41_spill] sm:$0xff] %v5739_v12 }
 0x5ac   :  { %2476 = vmatpush.msra.mxu1 %v5675_v60  ;;  %2461 = vmatpush.msra.mxu0 %v5729_v61 }
 0x5ad   :  { %2521 = vmatpush.msra.mxu3 %v5701_v45  ;;  %2502 = vmatpush.msra.mxu2 %v5713_v28 }
 0x5ae   :  { %2477 = vmatpush.msra.mxu1 %v5683_v48  ;;  %2462 = vmatpush.msra.mxu0 %v5737_v4 }
 0x5af   :  { %v2184_v17 = vld [vmem:[#allocation3] sm:$0xff]  ;;  %2522 = vmatpush.msra.mxu3 %v5715_v1  ;;  %2503 = vmatpush.msra.mxu2 %v5723_v29 }
 0x5b0   :  { %2276 = vmatmul.f32.vlgmr.msrb.gmra.mxu0 %v2184_v17  ;;  %2299 = vmatmul.f32.vlgmr.msrb.gmra.mxu1 %v2184_v17  ;;  %v2185_v47 = vld [vmem:[#allocation3 + $0x8] sm:$0xff] }
 0x5b1   :  { %2322 = vmatmul.f32.vlgmr.msrb.gmra.mxu2 %v2184_v17  ;;  %2345 = vmatmul.f32.vlgmr.msrb.gmra.mxu3 %v2184_v17  ;;  %v5743_v17 = vld [vmem:[#allocation10] sm:$0xff] }
 0x5b2   :  { %2478 = vmatpush.msra.mxu1 %v5695_v41  ;;  %2523 = vmatpush.msra.mxu3 %v5725_v50  ;;  %6713 = vst [vmem:[#allocation42_spill] sm:$0xff] %v5743_v17  ;;  %v6715_v50 = vmov 0.0  }
 0x5b3   :  { %2659 = vmatpush.msrb.mxu2 %v5531_v9  ;;  %2463 = vmatpush.msra.mxu0 %v5743_v17 }
 0x5b4   :  { %2479 = vmatpush.msra.mxu1 %v5711_v59  ;;  %2679 = vmatpush.msrb.mxu3 %v5533_v51 }
 0x5b5   :  { %2619 = vmatpush.msrb.mxu0 %v5561_v52  ;;  %2660 = vmatpush.msrb.mxu2 %v5547_v31 }
 0x5b6   :  { %2480 = vmatpush.msra.mxu1 %v5719_v6  ;;  %2680 = vmatpush.msrb.mxu3 %v5549_v37 }
 0x5b7   :  { %2620 = vmatpush.msrb.mxu0 %v5574_v5  ;;  %2661 = vmatpush.msrb.mxu2 %v5555_v27 }
 0x5b8   :  { %2279 = vmatmul.f32.gmra.mxu0 %v2185_v47  ;;  %2302 = vmatmul.f32.gmra.mxu1 %v2185_v47 }
 0x5b9   :  { %2325 = vmatmul.f32.gmra.mxu2 %v2185_v47  ;;  %2348 = vmatmul.f32.gmra.mxu3 %v2185_v47  ;;  %v5745_v47 = vld [vmem:[#allocation10 + $0x8] sm:$0xff] }
 0x5ba   :  { %2481 = vmatpush.msra.mxu1 %v5731_v3  ;;  %6714 = vst [vmem:[#allocation43_spill] sm:$0xff] %v5745_v47  ;;  %2681 = vmatpush.msrb.mxu3 %v5557_v34 }
 0x5bb   :  { %2621 = vmatpush.msrb.mxu0 %v5594_v35  ;;  %2662 = vmatpush.msrb.mxu2 %v5569_v32 }
 0x5bc   :  { %2482 = vmatpush.msra.mxu1 %v5739_v12  ;;  %2682 = vmatpush.msrb.mxu3 %v5571_v49 }
 0x5bd   :  { %2622 = vmatpush.msrb.mxu0 %v5609_v62  ;;  %2663 = vmatpush.msrb.mxu2 %v5582_v18 }
 0x5be   :  { %2483 = vmatpush.msra.mxu1 %v5745_v47  ;;  %2683 = vmatpush.msrb.mxu3 %v5584_v58 }
 0x5bf   :  { %2623 = vmatpush.msrb.mxu0 %v5621_v10  ;;  %2664 = vmatpush.msrb.mxu2 %v5603_v53 }
 0x5c0   :  { %2464 = vmatmul.f32.vlgmr.msra.gmra.mxu0 %v6715_v50  ;;  %2484 = vmatmul.f32.vlgmr.msra.gmra.mxu1 %v6715_v50 }
 0x5c1   :  { %2504 = vmatmul.f32.vlgmr.msra.gmra.mxu2 %v6715_v50  ;;  %2524 = vmatmul.f32.vlgmr.msra.gmra.mxu3 %v6715_v50  ;;  %v6716_v50 = vld [vmem:[#allocation37_spill] sm:$0xff] }
 0x5c2   :  { %2639 = vmatpush.msrb.mxu1 %v5563_v30  ;;  %2684 = vmatpush.msrb.mxu3 %v5605_v54 }
 0x5c3   :  { %2624 = vmatpush.msrb.mxu0 %v5633_v56  ;;  %2665 = vmatpush.msrb.mxu2 %v5615_v0 }
 0x5c4   :  { %2640 = vmatpush.msrb.mxu1 %v5576_v33  ;;  %2685 = vmatpush.msrb.mxu3 %v5617_v2 }
 0x5c5   :  { %2625 = vmatpush.msrb.mxu0 %v5645_v24  ;;  %2666 = vmatpush.msrb.mxu2 %v5627_v15 }
 0x5c6   :  { %2641 = vmatpush.msrb.mxu1 %v5596_v42  ;;  %2686 = vmatpush.msrb.mxu3 %v5629_v19 }
 0x5c7   :  { %2626 = vmatpush.msrb.mxu0 %v5657_v14  ;;  %2667 = vmatpush.msrb.mxu2 %v5639_v20 }
 0x5c8   :  { %2642 = vmatpush.msrb.mxu1 %v5611_v63  ;;  %2687 = vmatpush.msrb.mxu3 %v5641_v25 }
 0x5c9   :  { %2627 = vmatpush.msrb.mxu0 %v5673_v16  ;;  %2668 = vmatpush.msrb.mxu2 %v5651_v7 }
 0x5ca   :  { %2643 = vmatpush.msrb.mxu1 %v5623_v11  ;;  %2688 = vmatpush.msrb.mxu3 %v5653_v39 }
 0x5cb   :  { %2628 = vmatpush.msrb.mxu0 %v5681_v43  ;;  %2669 = vmatpush.msrb.mxu2 %v5663_v8 }
 0x5cc   :  { %2644 = vmatpush.msrb.mxu1 %v5635_v36  ;;  %2689 = vmatpush.msrb.mxu3 %v5665_v55 }
 0x5cd   :  { %2629 = vmatpush.msrb.mxu0 %v5693_v40  ;;  %2670 = vmatpush.msrb.mxu2 %v5677_v23 }
 0x5ce   :  { %2645 = vmatpush.msrb.mxu1 %v5647_v26  ;;  %2690 = vmatpush.msrb.mxu3 %v5679_v57 }
 0x5cf   :  { %2630 = vmatpush.msrb.mxu0 %v5709_v46  ;;  %2671 = vmatpush.msrb.mxu2 %v5687_v21 }
 0x5d0   :  { %2646 = vmatpush.msrb.mxu1 %v5659_v22  ;;  %2691 = vmatpush.msrb.mxu3 %v5689_v38 }
 0x5d1   :  { %2631 = vmatpush.msrb.mxu0 %v5717_v13  ;;  %2672 = vmatpush.msrb.mxu2 %v5699_v44 }
 0x5d2   :  { %2647 = vmatpush.msrb.mxu1 %v5675_v60  ;;  %2692 = vmatpush.msrb.mxu3 %v5701_v45 }
 0x5d3   :  { %2632 = vmatpush.msrb.mxu0 %v5729_v61  ;;  %2673 = vmatpush.msrb.mxu2 %v5713_v28 }
 0x5d4   :  { %2648 = vmatpush.msrb.mxu1 %v5683_v48  ;;  %2693 = vmatpush.msrb.mxu3 %v5715_v1 }
 0x5d5   :  { %2633 = vmatpush.msrb.mxu0 %v5737_v4  ;;  %2674 = vmatpush.msrb.mxu2 %v5723_v29 }
 0x5d6   :  { %2649 = vmatpush.msrb.mxu1 %v5695_v41  ;;  %2694 = vmatpush.msrb.mxu3 %v6716_v50 }
 0x5d7   :  { %2634 = vmatpush.msrb.mxu0 %v5743_v17  ;;  %2830 = vmatpush.msra.mxu2 %v5531_v9 }
 0x5d8   :  { %2650 = vmatpush.msrb.mxu1 %v5711_v59  ;;  %2850 = vmatpush.msra.mxu3 %v5533_v51 }
 0x5d9   :  { %2790 = vmatpush.msra.mxu0 %v5561_v52  ;;  %2831 = vmatpush.msra.mxu2 %v5547_v31 }
 0x5da   :  { %2651 = vmatpush.msrb.mxu1 %v5719_v6  ;;  %2851 = vmatpush.msra.mxu3 %v5549_v37 }
 0x5db   :  { %2791 = vmatpush.msra.mxu0 %v5574_v5  ;;  %2832 = vmatpush.msra.mxu2 %v5555_v27 }
 0x5dc   :  { %2652 = vmatpush.msrb.mxu1 %v5731_v3  ;;  %2852 = vmatpush.msra.mxu3 %v5557_v34 }
 0x5dd   :  { %2792 = vmatpush.msra.mxu0 %v5594_v35  ;;  %2833 = vmatpush.msra.mxu2 %v5569_v32 }
 0x5de   :  { %2653 = vmatpush.msrb.mxu1 %v5739_v12  ;;  %2853 = vmatpush.msra.mxu3 %v5571_v49 }
 0x5df   :  { %2793 = vmatpush.msra.mxu0 %v5609_v62  ;;  %2834 = vmatpush.msra.mxu2 %v5582_v18 }
 0x5e0   :  { %2654 = vmatpush.msrb.mxu1 %v5745_v47  ;;  %2854 = vmatpush.msra.mxu3 %v5584_v58 }
 0x5e1   :  { %2794 = vmatpush.msra.mxu0 %v5621_v10  ;;  %2835 = vmatpush.msra.mxu2 %v5603_v53 }
 0x5e2   :  { %2810 = vmatpush.msra.mxu1 %v5563_v30  ;;  %2855 = vmatpush.msra.mxu3 %v5605_v54 }
 0x5e3   :  { %2795 = vmatpush.msra.mxu0 %v5633_v56  ;;  %2836 = vmatpush.msra.mxu2 %v5615_v0 }
 0x5e4   :  { %2811 = vmatpush.msra.mxu1 %v5576_v33  ;;  %2856 = vmatpush.msra.mxu3 %v5617_v2 }
 0x5e5   :  { %2796 = vmatpush.msra.mxu0 %v5645_v24  ;;  %2837 = vmatpush.msra.mxu2 %v5627_v15 }
 0x5e6   :  { %2812 = vmatpush.msra.mxu1 %v5596_v42  ;;  %2857 = vmatpush.msra.mxu3 %v5629_v19 }
 0x5e7   :  { %2797 = vmatpush.msra.mxu0 %v5657_v14  ;;  %2838 = vmatpush.msra.mxu2 %v5639_v20 }
 0x5e8   :  { %2813 = vmatpush.msra.mxu1 %v5611_v63  ;;  %2858 = vmatpush.msra.mxu3 %v5641_v25 }
 0x5e9   :  { %2798 = vmatpush.msra.mxu0 %v5673_v16  ;;  %2839 = vmatpush.msra.mxu2 %v5651_v7 }
 0x5ea   :  { %2814 = vmatpush.msra.mxu1 %v5623_v11  ;;  %2859 = vmatpush.msra.mxu3 %v5653_v39 }
 0x5eb   :  { %2799 = vmatpush.msra.mxu0 %v5681_v43  ;;  %2840 = vmatpush.msra.mxu2 %v5663_v8 }
 0x5ec   :  { %2815 = vmatpush.msra.mxu1 %v5635_v36  ;;  %2860 = vmatpush.msra.mxu3 %v5665_v55 }
 0x5ed   :  { %2800 = vmatpush.msra.mxu0 %v5693_v40  ;;  %2841 = vmatpush.msra.mxu2 %v5677_v23 }
 0x5ee   :  { %2816 = vmatpush.msra.mxu1 %v5647_v26  ;;  %2861 = vmatpush.msra.mxu3 %v5679_v57 }
 0x5ef   :  { %2801 = vmatpush.msra.mxu0 %v5709_v46  ;;  %2842 = vmatpush.msra.mxu2 %v5687_v21 }
 0x5f0   :  { %2817 = vmatpush.msra.mxu1 %v5659_v22  ;;  %2862 = vmatpush.msra.mxu3 %v5689_v38 }
 0x5f1   :  { %2802 = vmatpush.msra.mxu0 %v5717_v13  ;;  %2843 = vmatpush.msra.mxu2 %v5699_v44 }
 0x5f2   :  { %2818 = vmatpush.msra.mxu1 %v5675_v60  ;;  %2863 = vmatpush.msra.mxu3 %v5701_v45  ;;  %v2250_v45 = vld [vmem:[%s6461_s6] sm:$0xf] }
 0x5f3   :  { %2803 = vmatpush.msra.mxu0 %v5729_v61  ;;  %2844 = vmatpush.msra.mxu2 %v5713_v28  ;;  %v2252_v44 = vperm.slane %v2250_v45, 0 }
 0x5f4   :  { %2819 = vmatpush.msra.mxu1 %v5683_v48  ;;  %2864 = vmatpush.msra.mxu3 %v5715_v1  ;;  %v2254_v1 = vperm.slane %v2250_v45, 2 }
 0x5f5   :  { %2804 = vmatpush.msra.mxu0 %v5737_v4  ;;  %2845 = vmatpush.msra.mxu2 %v5723_v29  ;;  %v2253_v4 = vperm.slane %v2250_v45, 1 }
 0x5f6   :  { %2820 = vmatpush.msra.mxu1 %v5695_v41  ;;  %2865 = vmatpush.msra.mxu3 %v6716_v50 }
 0x5f7   :  { %2805 = vmatpush.msra.mxu0 %v5743_v17  ;;  %v2255_v17 = vperm.slane %v2250_v45, 3 }
 0x5f8   :  { %2821 = vmatpush.msra.mxu1 %v5711_v59 }
 0x5fa   :  { %2822 = vmatpush.msra.mxu1 %v5719_v6 }
 0x5fc   :  { %2823 = vmatpush.msra.mxu1 %v5731_v3 }
 0x5fe   :  { %2824 = vmatpush.msra.mxu1 %v5739_v12 }
 0x600   :  { %2825 = vmatpush.msra.mxu1 %v5745_v47 }
 0x62d   :  { %v2277_v3 = vpop.f32.mrf.mxu0  ;;  %v2300_v12 = vpop.f32.mrf.mxu1 }
 0x62e   :  { %v2278_v61 = vadd.f32 %v2277_v3, %v2252_v44  ;;  %v2301_v28 = vadd.f32 %v2300_v12, %v2253_v4 }
 0x630   :  { %2352 = vst [vmem:[#allocation2] sm:$0xff] %v2278_v61 }
 0x631   :  { %2353 = vst [vmem:[#allocation2 + $0x8] sm:$0xff] %v2301_v28 }
 0x634   :  { %v2323_v38 = vpop.f32.mrf.mxu2  ;;  %v2346_v47 = vpop.f32.mrf.mxu3 }
 0x635   :  { %v2324_v21 = vadd.f32 %v2323_v38, %v2254_v1  ;;  %v2347_v29 = vadd.f32 %v2346_v47, %v2255_v17  ;;  %v2280_v6 = vpop.f32.mrf.mxu0  ;;  %v2303_v50 = vpop.f32.mrf.mxu1 }
 0x636   :  { %v2281_v13 = vadd.f32 %v2280_v6, %v2252_v44  ;;  %v2304_v57 = vadd.f32 %v2303_v50, %v2253_v4 }
 0x637   :  { %2354 = vst [vmem:[#allocation2 + $0x10] sm:$0xff] %v2324_v21 }
 0x638   :  { %2355 = vst [vmem:[#allocation2 + $0x18] sm:$0xff] %v2347_v29 }
 0x639   :  { %2356 = vst [vmem:[#allocation2 + $0x20] sm:$0xff] %v2281_v13 }
 0x63a   :  { %2357 = vst [vmem:[#allocation2 + $0x28] sm:$0xff] %v2304_v57 }
 0x63c   :  { %v2326_v23 = vpop.f32.mrf.mxu2  ;;  %v2349_v59 = vpop.f32.mrf.mxu3 }
 0x63d   :  { %v2327_v3 = vadd.f32 %v2326_v23, %v2254_v1  ;;  %v2350_v12 = vadd.f32 %v2349_v59, %v2255_v17  ;;  %v2465_v46 = vpop.f32.mrf.mxu0  ;;  %v2485_v8 = vpop.f32.mrf.mxu1 }
 0x63f   :  { %2358 = vst [vmem:[#allocation2 + $0x30] sm:$0xff] %v2327_v3  ;;  %v2360_v28 = vld [vmem:[#allocation2] ss:$8 sm:$0xf] }
 0x640   :  { %2359 = vst [vmem:[#allocation2 + $0x38] sm:$0xff] %v2350_v12  ;;  %v2363_v61 = vperm.slane %v2360_v28, 0  ;;  %v2364_v38 = vperm.slane %v2360_v28, 1  ;;  %v2366_v44 = vperm.slane %v2360_v28, 3 }
 0x644   :  { %v2525_v21 = vpop.f32.mrf.mxu3 }
 0x647   :  { %v2361_v45 = vld [vmem:[#allocation2 + $0x20] ss:$8 sm:$0xf] }
 0x648   :  { %v2372_v47 = vperm.slane %v2361_v45, 0  ;;  %v2373_v55 = vperm.slane %v2361_v45, 1  ;;  %v2375_v6 = vperm.slane %v2361_v45, 3  ;;  %v2374_v7 = vperm.slane %v2361_v45, 2 }
 0x64a   :  { %v2380_v13 = vsel %vm293_vm0, %v2363_v61, %v2372_v47  ;;  %v2381_v57 = vsel %vm293_vm0, %v2364_v38, %v2373_v55  ;;  %v2383_v23 = vsel %vm293_vm0, %v2366_v44, %v2375_v6  ;;  %v2365_v55 = vperm.slane %v2360_v28, 2 }
 0x64b   :  { %v2528_v59 = vadd.f32 %v2465_v46, %v2380_v13  ;;  %v2529_v1 = vadd.f32 %v2485_v8, %v2381_v57  ;;  %v2531_v29 = vadd.f32 %v2525_v21, %v2383_v23  ;;  %v2505_v8 = vpop.f32.mrf.mxu2 }
 0x64c   :  { %v2382_v46 = vsel %vm293_vm0, %v2365_v55, %v2374_v7 }
 0x64d   :  { %v3877_v4 = vmul.f32 -1.442695, %v2528_v59  ;;  %v3878_v17 = vmul.f32 -1.442695, %v2529_v1  ;;  %v3879_v50 = vmul.f32 -1.442695, %v2531_v29  ;;  %v2530_v47 = vadd.f32 %v2505_v8, %v2382_v46 }
 0x64f   :  { %4038 = vpow2.f32 %v3877_v4 }
 0x650   :  { %4040 = vpow2.f32 %v3878_v17 }
 0x651   :  { %4042 = vpow2.f32 %v3879_v50 }
 0x655   :  { %v4039_v3 = vpop.eup %4038 }
 0x656   :  { %v4041_v12 = vpop.eup %4040  ;;  %v2535_v41 = vadd.f32 1.0, %v4039_v3 }
 0x657   :  { %v4043_v40 = vpop.eup %4042  ;;  %v2554_v39 = vadd.f32 1.0, %v4041_v12 }
 0x658   :  { %4044 = vrcp.f32 %v2535_v41  ;;  %v2574_v61 = vadd.f32 1.0, %v4043_v40  ;;  %v2545_v59 = vand.u32 2147483647, %v2535_v41  ;;  %v2547_v1 = vand.u32 2147483648, %v2535_v41 }
 0x659   :  { %4046 = vrcp.f32 %v2554_v39  ;;  %v2566_v45 = vand.u32 2147483648, %v2554_v39  ;;  %v2564_v7 = vand.u32 2147483647, %v2554_v39  ;;  %vm2541_vm9 = vweird.f32 %v2535_v41 }
 0x65a   :  { %4048 = vrcp.f32 %v2574_v61  ;;  %vm2560_vm10 = vweird.f32 %v2554_v39  ;;  %v2548_v50 = vor.u32 1.1754944e-38, %v2547_v1  ;;  %vm2546_vm12 = vcmp.eq.f32.partialorder %v2545_v59, 8.507059e+37 }
 0x65b   :  { %4050 = vtanh.f32 %v2530_v47  ;;  %v2567_v12 = vor.u32 1.1754944e-38, %v2566_v45  ;;  %vm2565_vm14 = vcmp.eq.f32.partialorder %v2564_v7, 8.507059e+37  ;;  %vm2580_vm1 = vweird.f32 %v2574_v61 }
 0x65c   :  { %v2584_v1 = vand.u32 2147483647, %v2574_v61 }
 0x65e   :  { %v4045_v38 = vpop.eup %4044  ;;  %vm2585_vm3 = vcmp.eq.f32.partialorder %v2584_v1, 8.507059e+37 }
 0x65f   :  { %v4047_v44 = vpop.eup %4046  ;;  %v2537_v6 = vmul.f32 %v4045_v38, %v2535_v41  ;;  %vm2542_vm7 = vweird.f32 %v4045_v38 }
 0x660   :  { %v2556_v21 = vmul.f32 %v4047_v44, %v2554_v39  ;;  %v4049_v57 = vpop.eup %4048  ;;  %vm2561_vm8 = vweird.f32 %v4047_v44  ;;  %vm2543_vm11 = vmor %vm2541_vm9, %vm2542_vm7  ;;  %v2586_v39 = vand.u32 2147483648, %v2574_v61 }
 0x661   :  { %v2538_v13 = vsub.f32 1.0, %v2537_v6  ;;  %v2576_v28 = vmul.f32 %v4049_v57, %v2574_v61  ;;  %vm2562_vm13 = vmor %vm2560_vm10, %vm2561_vm8  ;;  %v4051_v46 = vpop.eup %4050  ;;  %vm2581_vm15 = vweird.f32 %v4049_v57 }
 0x662   :  { %v2557_v23 = vsub.f32 1.0, %v2556_v21  ;;  %vm2582_vm2 = vmor %vm2580_vm1, %vm2581_vm15  ;;  %v2587_v59 = vor.u32 1.1754944e-38, %v2586_v39 }
 0x663   :  { %v2539_v29 = vmul.f32 %v4045_v38, %v2538_v13  ;;  %v2577_v17 = vsub.f32 1.0, %v2576_v28 }
 0x664   :  { %v2558_v40 = vmul.f32 %v4047_v44, %v2557_v23 }
 0x665   :  { %v2540_v4 = vadd.f32 %v4045_v38, %v2539_v29  ;;  %v2578_v13 = vmul.f32 %v4049_v57, %v2577_v17 }
 0x666   :  { %v2559_v3 = vadd.f32 %v4047_v44, %v2558_v40 }
 0x667   :  { %v2544_v55 = vsel %vm2543_vm11, %v4045_v38, %v2540_v4  ;;  %v2579_v41 = vadd.f32 %v4049_v57, %v2578_v13 }
 0x668   :  { %v2549_v8 = vsel %vm2546_vm12, %v2548_v50, %v2544_v55  ;;  %v2563_v47 = vsel %vm2562_vm13, %v4047_v44, %v2559_v3 }
 0x669   :  { %v2568_v6 = vsel %vm2565_vm14, %v2567_v12, %v2563_v47  ;;  %v2591_v21 = vmul.f32 %v4051_v46, %v2549_v8  ;;  %v2583_v38 = vsel %vm2582_vm2, %v4049_v57, %v2579_v41 }
 0x66a   :  { %v2590_v23 = vmul.f32 0.0, %v2568_v6  ;;  %v2588_v44 = vsel %vm2585_vm3, %v2587_v59, %v2583_v38 }
 0x66c   :  { %v5890_v48 = vadd.f32 %v2591_v21, %v2590_v23 }
 0x66e   :  { %4052 = vtanh.f32 %v5890_v48 }
 0x674   :  { %v4053_v45 = vpop.eup %4052 }
 0x675   :  { %v2594_v29 = vmul.f32 %v4053_v45, %v2588_v44 }
 0x677   :  { %2635 = vmatmul.f32.vlgmr.msrb.gmra.mxu0 %v2594_v29  ;;  %2655 = vmatmul.f32.vlgmr.msrb.gmra.mxu1 %v2594_v29 }
 0x678   :  { %2675 = vmatmul.f32.vlgmr.msrb.gmra.mxu2 %v2594_v29  ;;  %2695 = vmatmul.f32.vlgmr.msrb.gmra.mxu3 %v2594_v29 }
 0x679   :  { %2961 = vmatpush.msrb.mxu0 %v5561_v52  ;;  %2981 = vmatpush.msrb.mxu1 %v5563_v30  ;;  %v6723_v52 = vld [vmem:[#allocation24_spill] sm:$0xff]  ;;  %v6724_v30 = vld [vmem:[#allocation34_spill] sm:$0xff] }
 0x67a   :  { %3001 = vmatpush.msrb.mxu2 %v5531_v9  ;;  %3021 = vmatpush.msrb.mxu3 %v5533_v51  ;;  %v6717_v9 = vld [vmem:[#allocation27_spill] sm:$0xff]  ;;  %v6718_v51 = vld [vmem:[#allocation21_spill] sm:$0xff] }
 0x67b   :  { %2962 = vmatpush.msrb.mxu0 %v5574_v5  ;;  %2982 = vmatpush.msrb.mxu1 %v5576_v33  ;;  %v6727_v5 = vld [vmem:[#allocation26_spill] sm:$0xff] }
 0x67c   :  { %3002 = vmatpush.msrb.mxu2 %v5547_v31  ;;  %3022 = vmatpush.msrb.mxu3 %v5549_v37  ;;  %v6719_v31 = vld [vmem:[#allocation22_spill] sm:$0xff] }
 0x67d   :  { %2963 = vmatpush.msrb.mxu0 %v5594_v35  ;;  %2983 = vmatpush.msrb.mxu1 %v5596_v42  ;;  %v6720_v37 = vld [vmem:[#allocation30_spill] sm:$0xff]  ;;  %v6731_v35 = vld [vmem:[#allocation29_spill] sm:$0xff] }
 0x67e   :  { %3003 = vmatpush.msrb.mxu2 %v5555_v27  ;;  %3023 = vmatpush.msrb.mxu3 %v5557_v34  ;;  %v6721_v27 = vld [vmem:[#allocation31_spill] sm:$0xff]  ;;  %v6728_v33 = vld [vmem:[#allocation18_spill] sm:$0xff] }
 0x67f   :  { %2964 = vmatpush.msrb.mxu0 %v5609_v62  ;;  %2984 = vmatpush.msrb.mxu1 %v5611_v63  ;;  %v6722_v34 = vld [vmem:[#allocation23_spill] sm:$0xff]  ;;  %v6732_v42 = vld [vmem:[#allocation38_spill] sm:$0xff]  ;;  %v6735_v62 = vld [vmem:[#allocation33_spill] sm:$0xff] }
 0x680   :  { %3004 = vmatpush.msrb.mxu2 %v5569_v32  ;;  %3024 = vmatpush.msrb.mxu3 %v5571_v49  ;;  %v6725_v32 = vld [vmem:[#allocation35_spill] sm:$0xff]  ;;  %v6726_v49 = vld [vmem:[#allocation25_spill] sm:$0xff]  ;;  %v6736_v63 = vld [vmem:[#allocation40_spill] sm:$0xff] }
 0x681   :  { %2965 = vmatpush.msrb.mxu0 %v5621_v10  ;;  %2985 = vmatpush.msrb.mxu1 %v5623_v11  ;;  %v6739_v10 = vld [vmem:[#allocation17_spill] sm:$0xff]  ;;  %v6740_v11 = vld [vmem:[#allocation42_spill] sm:$0xff] }
 0x682   :  { %3005 = vmatpush.msrb.mxu2 %v5582_v18  ;;  %3025 = vmatpush.msrb.mxu3 %v5584_v58  ;;  %v6729_v18 = vld [vmem:[#allocation19_spill] sm:$0xff]  ;;  %v6730_v58 = vld [vmem:[#allocation28_spill] sm:$0xff] }
 0x683   :  { %2966 = vmatpush.msrb.mxu0 %v5633_v56  ;;  %2986 = vmatpush.msrb.mxu1 %v5635_v36  ;;  %v6743_v56 = vld [vmem:[#allocation37_spill] sm:$0xff] }
 0x684   :  { %3006 = vmatpush.msrb.mxu2 %v5603_v53  ;;  %3026 = vmatpush.msrb.mxu3 %v5605_v54  ;;  %v6733_v53 = vld [vmem:[#allocation39_spill] sm:$0xff]  ;;  %v6734_v54 = vld [vmem:[#allocation32_spill] sm:$0xff] }
 0x685   :  { %2967 = vmatpush.msrb.mxu0 %v5645_v24  ;;  %2987 = vmatpush.msrb.mxu1 %v5647_v26  ;;  %v2596_v36 = vld [vmem:[#allocation2 + $0x21] ss:$8 sm:$0xf] }
 0x686   :  { %3007 = vmatpush.msrb.mxu2 %v5615_v0  ;;  %3027 = vmatpush.msrb.mxu3 %v5617_v2  ;;  %v6737_v0 = vld [vmem:[#allocation41_spill] sm:$0xff]  ;;  %v6738_v2 = vld [vmem:[#allocation36_spill] sm:$0xff]  ;;  %v2608_v24 = vperm.slane %v2596_v36, 1  ;;  %v2610_v12 = vperm.slane %v2596_v36, 3  ;;  %v2609_v39 = vperm.slane %v2596_v36, 2 }
 0x687   :  { %2968 = vmatpush.msrb.mxu0 %v5657_v14  ;;  %2988 = vmatpush.msrb.mxu1 %v5659_v22 }
 0x688   :  { %3008 = vmatpush.msrb.mxu2 %v5627_v15  ;;  %3028 = vmatpush.msrb.mxu3 %v5629_v19  ;;  %v6741_v15 = vld [vmem:[#allocation43_spill] sm:$0xff]  ;;  %v6742_v19 = vld [vmem:[#allocation20_spill] sm:$0xff] }
 0x689   :  { %2969 = vmatpush.msrb.mxu0 %v5673_v16  ;;  %2989 = vmatpush.msrb.mxu1 %v5675_v60 }
 0x68a   :  { %3009 = vmatpush.msrb.mxu2 %v5639_v20  ;;  %3029 = vmatpush.msrb.mxu3 %v5641_v25  ;;  %v2595_v20 = vld [vmem:[#allocation2 + $0x1] ss:$8 sm:$0xf]  ;;  %v2607_v25 = vperm.slane %v2596_v36, 0 }
 0x68b   :  { %2970 = vmatpush.msrb.mxu0 %v5681_v43  ;;  %2990 = vmatpush.msrb.mxu1 %v6717_v9  ;;  %v2598_v26 = vperm.slane %v2595_v20, 0  ;;  %v2599_v61 = vperm.slane %v2595_v20, 1  ;;  %v2601_v55 = vperm.slane %v2595_v20, 3  ;;  %v2600_v1 = vperm.slane %v2595_v20, 2 }
 0x68c   :  { %3010 = vmatpush.msrb.mxu2 %v6718_v51  ;;  %3030 = vmatpush.msrb.mxu3 %v6719_v31 }
 0x68d   :  { %2971 = vmatpush.msrb.mxu0 %v6720_v37  ;;  %2991 = vmatpush.msrb.mxu1 %v6721_v27  ;;  %v2615_v57 = vsel %vm293_vm0, %v2598_v26, %v2607_v25  ;;  %v2616_v40 = vsel %vm293_vm0, %v2599_v61, %v2608_v24  ;;  %v2618_v46 = vsel %vm293_vm0, %v2601_v55, %v2610_v12 }
 0x68e   :  { %3011 = vmatpush.msrb.mxu2 %v6722_v34  ;;  %3031 = vmatpush.msrb.mxu3 %v6723_v52  ;;  %v2617_v45 = vsel %vm293_vm0, %v2600_v1, %v2609_v39 }
 0x68f   :  { %2972 = vmatpush.msrb.mxu0 %v6724_v30  ;;  %2992 = vmatpush.msrb.mxu1 %v6725_v32 }
 0x690   :  { %3012 = vmatpush.msrb.mxu2 %v6726_v49  ;;  %3032 = vmatpush.msrb.mxu3 %v6727_v5 }
 0x691   :  { %2973 = vmatpush.msrb.mxu0 %v6728_v33  ;;  %2993 = vmatpush.msrb.mxu1 %v6729_v18 }
 0x692   :  { %3013 = vmatpush.msrb.mxu2 %v6730_v58  ;;  %3033 = vmatpush.msrb.mxu3 %v6731_v35 }
 0x693   :  { %2974 = vmatpush.msrb.mxu0 %v6732_v42  ;;  %2994 = vmatpush.msrb.mxu1 %v6733_v53 }
 0x694   :  { %3014 = vmatpush.msrb.mxu2 %v6734_v54  ;;  %3034 = vmatpush.msrb.mxu3 %v6735_v62 }
 0x695   :  { %2975 = vmatpush.msrb.mxu0 %v6736_v63  ;;  %2995 = vmatpush.msrb.mxu1 %v6737_v0 }
 0x696   :  { %3015 = vmatpush.msrb.mxu2 %v6738_v2  ;;  %3035 = vmatpush.msrb.mxu3 %v6739_v10 }
 0x697   :  { %2976 = vmatpush.msrb.mxu0 %v6740_v11  ;;  %2996 = vmatpush.msrb.mxu1 %v6741_v15 }
 0x698   :  { %3016 = vmatpush.msrb.mxu2 %v6742_v19  ;;  %3036 = vmatpush.msrb.mxu3 %v6743_v56 }
 0x6f4   :  { %v2636_v28 = vpop.f32.mrf.mxu0  ;;  %v2656_v7 = vpop.f32.mrf.mxu1 }
 0x6f5   :  { %v2699_v4 = vadd.f32 %v2636_v28, %v2615_v57  ;;  %v2700_v17 = vadd.f32 %v2656_v7, %v2616_v40 }
 0x6f7   :  { %v3880_v50 = vmul.f32 -1.442695, %v2699_v4  ;;  %v3881_v3 = vmul.f32 -1.442695, %v2700_v17 }
 0x6f9   :  { %4054 = vpow2.f32 %v3880_v50 }
 0x6fa   :  { %4056 = vpow2.f32 %v3881_v3 }
 0x6fb   :  { %v2696_v8 = vpop.f32.mrf.mxu3  ;;  %v2676_v38 = vpop.f32.mrf.mxu2 }
 0x6fc   :  { %v2702_v47 = vadd.f32 %v2696_v8, %v2618_v46  ;;  %v2701_v51 = vadd.f32 %v2676_v38, %v2617_v45 }
 0x6fe   :  { %v3882_v6 = vmul.f32 -1.442695, %v2702_v47 }
 0x6ff   :  { %v4055_v21 = vpop.eup %4054 }
 0x700   :  { %v4057_v13 = vpop.eup %4056  ;;  %v2706_v23 = vadd.f32 1.0, %v4055_v21  ;;  %4058 = vpow2.f32 %v3882_v6 }
 0x701   :  { %v2725_v41 = vadd.f32 1.0, %v4057_v13 }
 0x702   :  { %4060 = vrcp.f32 %v2706_v23  ;;  %v2718_v26 = vand.u32 2147483648, %v2706_v23  ;;  %v2716_v36 = vand.u32 2147483647, %v2706_v23  ;;  %vm2712_vm6 = vweird.f32 %v2706_v23 }
 0x703   :  { %4062 = vrcp.f32 %v2725_v41  ;;  %v2737_v61 = vand.u32 2147483648, %v2725_v41  ;;  %v2735_v28 = vand.u32 2147483647, %v2725_v41  ;;  %vm2731_vm7 = vweird.f32 %v2725_v41 }
 0x704   :  { %v2719_v4 = vor.u32 1.1754944e-38, %v2718_v26  ;;  %vm2717_vm10 = vcmp.eq.f32.partialorder %v2716_v36, 8.507059e+37  ;;  %v5983_v26 = vld [vmem:[#allocation10 + $0x1d0] sm:$0xff]  ;;  %v5992_v36 = vld [vmem:[#allocation10 + $0x1a8] sm:$0xff] }
 0x705   :  { %v2738_v3 = vor.u32 1.1754944e-38, %v2737_v61  ;;  %vm2736_vm11 = vcmp.eq.f32.partialorder %v2735_v28, 8.507059e+37  ;;  %v5986_v61 = vld [vmem:[#allocation10 + $0x1d8] sm:$0xff] }
 0x706   :  { %v4059_v59 = vpop.eup %4058  ;;  %v5998_v28 = vld [vmem:[#allocation10 + $0x1b8] sm:$0xff] }
 0x707   :  { %v2745_v44 = vadd.f32 1.0, %v4059_v59 }
 0x708   :  { %v4061_v29 = vpop.eup %4060 }
 0x709   :  { %v4063_v31 = vpop.eup %4062  ;;  %v2708_v34 = vmul.f32 %v4061_v29, %v2706_v23  ;;  %4064 = vrcp.f32 %v2745_v44  ;;  %vm2713_vm4 = vweird.f32 %v4061_v29  ;;  %v2757_v1 = vand.u32 2147483648, %v2745_v44 }
 0x70a   :  { %v2727_v52 = vmul.f32 %v4063_v31, %v2725_v41  ;;  %4066 = vtanh.f32 %v2701_v51  ;;  %vm2732_vm5 = vweird.f32 %v4063_v31  ;;  %vm2714_vm8 = vmor %vm2712_vm6, %vm2713_vm4  ;;  %vm2751_vm13 = vweird.f32 %v2745_v44 }
 0x70b   :  { %v2709_v25 = vsub.f32 1.0, %v2708_v34  ;;  %vm2733_vm9 = vmor %vm2731_vm7, %vm2732_vm5  ;;  %v2755_v38 = vand.u32 2147483647, %v2745_v44  ;;  %v2758_v45 = vor.u32 1.1754944e-38, %v2757_v1  ;;  %v5968_v34 = vld [vmem:[#allocation10 + $0x1e8] sm:$0xff]  ;;  %v6051_v1 = vld [vmem:[#allocation10 + $0x110] sm:$0xff] }
 0x70c   :  { %v2728_v24 = vsub.f32 1.0, %v2727_v52  ;;  %v5974_v52 = vld [vmem:[#allocation10 + $0x1f8] sm:$0xff] }
 0x70d   :  { %v2710_v57 = vmul.f32 %v4061_v29, %v2709_v25  ;;  %vm2756_vm15 = vcmp.eq.f32.partialorder %v2755_v38, 8.507059e+37  ;;  %v5977_v25 = vld [vmem:[#allocation10 + $0x1c0] sm:$0xff]  ;;  %v6054_v38 = vld [vmem:[#allocation10 + $0x118] sm:$0xff] }
 0x70e   :  { %v2729_v20 = vmul.f32 %v4063_v31, %v2728_v24  ;;  %v5980_v24 = vld [vmem:[#allocation10 + $0x1c8] sm:$0xff] }
 0x70f   :  { %v4065_v40 = vpop.eup %4064  ;;  %v2711_v7 = vadd.f32 %v4061_v29, %v2710_v57  ;;  %v5989_v57 = vld [vmem:[#allocation10 + $0x1a0] sm:$0xff] }
 0x710   :  { %v2730_v17 = vadd.f32 %v4063_v31, %v2729_v20  ;;  %v2747_v50 = vmul.f32 %v4065_v40, %v2745_v44  ;;  %v4067_v55 = vpop.eup %4066  ;;  %vm2752_vm12 = vweird.f32 %v4065_v40  ;;  %v5971_v44 = vld [vmem:[#allocation10 + $0x1f0] sm:$0xff] }
 0x711   :  { %v2715_v12 = vsel %vm2714_vm8, %v4061_v29, %v2711_v7  ;;  %vm2753_vm14 = vmor %vm2751_vm13, %vm2752_vm12  ;;  %v5995_v20 = vld [vmem:[#allocation10 + $0x1b0] sm:$0xff]  ;;  %v6004_v7 = vld [vmem:[#allocation10 + $0x188] sm:$0xff] }
 0x712   :  { %v2720_v46 = vsel %vm2717_vm10, %v2719_v4, %v2715_v12  ;;  %v2734_v8 = vsel %vm2733_vm9, %v4063_v31, %v2730_v17  ;;  %v2748_v47 = vsub.f32 1.0, %v2747_v50  ;;  %v6007_v4 = vld [vmem:[#allocation10 + $0x190] sm:$0xff]  ;;  %v6010_v17 = vld [vmem:[#allocation10 + $0x198] sm:$0xff]  ;;  %v6013_v50 = vld [vmem:[#allocation10 + $0x160] sm:$0xff] }
 0x713   :  { %v2739_v6 = vsel %vm2736_vm11, %v2738_v3, %v2734_v8  ;;  %v2762_v21 = vmul.f32 %v4067_v55, %v2720_v46  ;;  %v6016_v3 = vld [vmem:[#allocation10 + $0x168] sm:$0xff]  ;;  %v6019_v12 = vld [vmem:[#allocation10 + $0x170] sm:$0xff]  ;;  %v6022_v55 = vld [vmem:[#allocation10 + $0x178] sm:$0xff] }
 0x714   :  { %v2761_v13 = vmul.f32 %v2739_v6, %v5890_v48  ;;  %v2749_v39 = vmul.f32 %v4065_v40, %v2748_v47  ;;  %v5965_v48 = vld [vmem:[#allocation10 + $0x1e0] sm:$0xff]  ;;  %v6028_v8 = vld [vmem:[#allocation10 + $0x148] sm:$0xff]  ;;  %v6031_v47 = vld [vmem:[#allocation10 + $0x150] sm:$0xff] }
 0x715   :  { %v6025_v46 = vld [vmem:[#allocation10 + $0x140] sm:$0xff]  ;;  %v6034_v6 = vld [vmem:[#allocation10 + $0x158] sm:$0xff] }
 0x716   :  { %v5962_v23 = vadd.f32 %v2762_v21, %v2761_v13  ;;  %v2750_v41 = vadd.f32 %v4065_v40, %v2749_v39  ;;  %v6037_v21 = vld [vmem:[#allocation10 + $0x120] sm:$0xff]  ;;  %v6040_v13 = vld [vmem:[#allocation10 + $0x128] sm:$0xff]  ;;  %v6043_v39 = vld [vmem:[#allocation10 + $0x130] sm:$0xff] }
 0x718   :  { %4068 = vtanh.f32 %v5962_v23  ;;  %v2754_v59 = vsel %vm2753_vm14, %v4065_v40, %v2750_v41  ;;  %v6001_v40 = vld [vmem:[#allocation10 + $0x180] sm:$0xff]  ;;  %v6046_v41 = vld [vmem:[#allocation10 + $0x138] sm:$0xff] }
 0x719   :  { %v2759_v51 = vsel %vm2756_vm15, %v2758_v45, %v2754_v59  ;;  %v6059_v59 = vld [vmem:[#allocation10 + $0xf0] sm:$0xff]  ;;  %v6062_v45 = vld [vmem:[#allocation10 + $0xf8] sm:$0xff] }
 0x71e   :  { %v4069_v29 = vpop.eup %4068 }
 0x71f   :  { %v2765_v31 = vmul.f32 %v4069_v29, %v2759_v51 }
 0x721   :  { %2806 = vmatmul.f32.vlgmr.msra.gmra.mxu0 %v2765_v31  ;;  %2826 = vmatmul.f32.vlgmr.msra.gmra.mxu1 %v2765_v31 }
 0x722   :  { %2846 = vmatmul.f32.vlgmr.msra.gmra.mxu2 %v2765_v31  ;;  %2866 = vmatmul.f32.vlgmr.msra.gmra.mxu3 %v2765_v31 }
 0x723   :  { %3132 = vmatpush.msra.mxu0 %v5965_v48  ;;  %3152 = vmatpush.msra.mxu1 %v5968_v34 }
 0x724   :  { %3172 = vmatpush.msra.mxu2 %v5971_v44  ;;  %3192 = vmatpush.msra.mxu3 %v5974_v52 }
 0x725   :  { %3133 = vmatpush.msra.mxu0 %v5977_v25  ;;  %3153 = vmatpush.msra.mxu1 %v5980_v24 }
 0x726   :  { %3173 = vmatpush.msra.mxu2 %v5983_v26  ;;  %3193 = vmatpush.msra.mxu3 %v5986_v61 }
 0x727   :  { %3134 = vmatpush.msra.mxu0 %v5989_v57  ;;  %3154 = vmatpush.msra.mxu1 %v5992_v36 }
 0x728   :  { %3174 = vmatpush.msra.mxu2 %v5995_v20  ;;  %3194 = vmatpush.msra.mxu3 %v5998_v28 }
 0x729   :  { %3135 = vmatpush.msra.mxu0 %v6001_v40  ;;  %3155 = vmatpush.msra.mxu1 %v6004_v7 }
 0x72a   :  { %3175 = vmatpush.msra.mxu2 %v6007_v4  ;;  %3195 = vmatpush.msra.mxu3 %v6010_v17 }
 0x72b   :  { %3136 = vmatpush.msra.mxu0 %v6013_v50  ;;  %3156 = vmatpush.msra.mxu1 %v6016_v3 }
 0x72c   :  { %3176 = vmatpush.msra.mxu2 %v6019_v12  ;;  %3196 = vmatpush.msra.mxu3 %v6022_v55 }
 0x72d   :  { %3137 = vmatpush.msra.mxu0 %v6025_v46  ;;  %3157 = vmatpush.msra.mxu1 %v6028_v8 }
 0x72e   :  { %3177 = vmatpush.msra.mxu2 %v6031_v47  ;;  %3197 = vmatpush.msra.mxu3 %v6034_v6 }
 0x72f   :  { %3138 = vmatpush.msra.mxu0 %v6037_v21  ;;  %3158 = vmatpush.msra.mxu1 %v6040_v13 }
 0x730   :  { %3178 = vmatpush.msra.mxu2 %v6043_v39  ;;  %3198 = vmatpush.msra.mxu3 %v6046_v41 }
 0x731   :  { %3139 = vmatpush.msra.mxu0 %v5657_v14  ;;  %3159 = vmatpush.msra.mxu1 %v5659_v22  ;;  %v6067_v14 = vld [vmem:[#allocation10 + $0xd0] sm:$0xff]  ;;  %v6070_v22 = vld [vmem:[#allocation10 + $0xd8] sm:$0xff] }
 0x732   :  { %3179 = vmatpush.msra.mxu2 %v6051_v1  ;;  %3199 = vmatpush.msra.mxu3 %v6054_v38  ;;  %6744 = vst [vmem:[#allocation27_spill] sm:$0xff] %v6067_v14 }
 0x733   :  { %3140 = vmatpush.msra.mxu0 %v5673_v16  ;;  %3160 = vmatpush.msra.mxu1 %v5675_v60  ;;  %6745 = vst [vmem:[#allocation21_spill] sm:$0xff] %v6070_v22  ;;  %v6075_v16 = vld [vmem:[#allocation10 + $0xb0] sm:$0xff]  ;;  %v6078_v60 = vld [vmem:[#allocation10 + $0xb8] sm:$0xff] }
 0x734   :  { %3180 = vmatpush.msra.mxu2 %v6059_v59  ;;  %3200 = vmatpush.msra.mxu3 %v6062_v45  ;;  %6746 = vst [vmem:[#allocation22_spill] sm:$0xff] %v6075_v16 }
 0x735   :  { %3141 = vmatpush.msra.mxu0 %v5681_v43  ;;  %3161 = vmatpush.msra.mxu1 %v6717_v9  ;;  %6747 = vst [vmem:[#allocation30_spill] sm:$0xff] %v6078_v60  ;;  %v2767_v43 = vld [vmem:[#allocation2 + $0x22] ss:$8 sm:$0xf] }
 0x736   :  { %3181 = vmatpush.msra.mxu2 %v6067_v14  ;;  %3201 = vmatpush.msra.mxu3 %v6070_v22  ;;  %v2766_v9 = vld [vmem:[#allocation2 + $0x2] ss:$8 sm:$0xf]  ;;  %v2780_v29 = vperm.slane %v2767_v43, 2 }
 0x737   :  { %3142 = vmatpush.msra.mxu0 %v6720_v37  ;;  %3162 = vmatpush.msra.mxu1 %v6721_v27  ;;  %v2778_v37 = vperm.slane %v2767_v43, 0  ;;  %v2779_v27 = vperm.slane %v2767_v43, 1  ;;  %v2771_v51 = vperm.slane %v2766_v9, 2 }
 0x738   :  { %3182 = vmatpush.msra.mxu2 %v6075_v16  ;;  %3202 = vmatpush.msra.mxu3 %v6078_v60 }
 0x739   :  { %3143 = vmatpush.msra.mxu0 %v6724_v30  ;;  %3163 = vmatpush.msra.mxu1 %v6725_v32  ;;  %v2769_v30 = vperm.slane %v2766_v9, 0  ;;  %v2770_v32 = vperm.slane %v2766_v9, 1 }
 0x73a   :  { %3183 = vmatpush.msra.mxu2 %v6726_v49  ;;  %3203 = vmatpush.msra.mxu3 %v6727_v5 }
 0x73b   :  { %3144 = vmatpush.msra.mxu0 %v6728_v33  ;;  %3164 = vmatpush.msra.mxu1 %v6729_v18  ;;  %v2786_v49 = vsel %vm293_vm0, %v2769_v30, %v2778_v37  ;;  %v2787_v33 = vsel %vm293_vm0, %v2770_v32, %v2779_v27  ;;  %v2788_v27 = vsel %vm293_vm0, %v2771_v51, %v2780_v29 }
 0x73c   :  { %3184 = vmatpush.msra.mxu2 %v6730_v58  ;;  %3204 = vmatpush.msra.mxu3 %v6731_v35 }
 0x73d   :  { %3145 = vmatpush.msra.mxu0 %v6732_v42  ;;  %3165 = vmatpush.msra.mxu1 %v6733_v53 }
 0x73e   :  { %3185 = vmatpush.msra.mxu2 %v6734_v54  ;;  %3205 = vmatpush.msra.mxu3 %v6735_v62  ;;  %v2781_v54 = vperm.slane %v2767_v43, 3  ;;  %v2772_v62 = vperm.slane %v2766_v9, 3 }
 0x73f   :  { %3146 = vmatpush.msra.mxu0 %v6736_v63  ;;  %3166 = vmatpush.msra.mxu1 %v6737_v0 }
 0x740   :  { %3186 = vmatpush.msra.mxu2 %v6738_v2  ;;  %3206 = vmatpush.msra.mxu3 %v6739_v10  ;;  %v2789_v63 = vsel %vm293_vm0, %v2772_v62, %v2781_v54 }
 0x741   :  { %3147 = vmatpush.msra.mxu0 %v6740_v11  ;;  %3167 = vmatpush.msra.mxu1 %v6741_v15 }
 0x742   :  { %3187 = vmatpush.msra.mxu2 %v6742_v19  ;;  %3207 = vmatpush.msra.mxu3 %v6743_v56 }
 0x79e   :  { %v2807_v5 = vpop.f32.mrf.mxu0  ;;  %v2827_v18 = vpop.f32.mrf.mxu1 }
 0x79f   :  { %v2870_v58 = vadd.f32 %v2807_v5, %v2786_v49  ;;  %v2871_v35 = vadd.f32 %v2827_v18, %v2787_v33 }
 0x7a1   :  { %v3883_v42 = vmul.f32 -1.442695, %v2870_v58  ;;  %v3884_v53 = vmul.f32 -1.442695, %v2871_v35 }
 0x7a3   :  { %4070 = vpow2.f32 %v3883_v42 }
 0x7a4   :  { %4072 = vpow2.f32 %v3884_v53 }
 0x7a5   :  { %v2867_v0 = vpop.f32.mrf.mxu3  ;;  %v2847_v31 = vpop.f32.mrf.mxu2 }
 0x7a6   :  { %v2873_v2 = vadd.f32 %v2867_v0, %v2789_v63  ;;  %v2872_v49 = vadd.f32 %v2847_v31, %v2788_v27 }
 0x7a8   :  { %v3885_v10 = vmul.f32 -1.442695, %v2873_v2 }
 0x7a9   :  { %v4071_v11 = vpop.eup %4070 }
 0x7aa   :  { %v4073_v15 = vpop.eup %4072  ;;  %v2877_v19 = vadd.f32 1.0, %v4071_v11  ;;  %4074 = vpow2.f32 %v3885_v10 }
 0x7ab   :  { %v2896_v56 = vadd.f32 1.0, %v4073_v15 }
 0x7ac   :  { %4076 = vrcp.f32 %v2877_v19  ;;  %v2889_v42 = vand.u32 2147483648, %v2877_v19  ;;  %v2887_v43 = vand.u32 2147483647, %v2877_v19  ;;  %vm2883_vm3 = vweird.f32 %v2877_v19 }
 0x7ad   :  { %4078 = vrcp.f32 %v2896_v56  ;;  %v2908_v53 = vand.u32 2147483648, %v2896_v56  ;;  %v2906_v62 = vand.u32 2147483647, %v2896_v56  ;;  %vm2902_vm4 = vweird.f32 %v2896_v56 }
 0x7ae   :  { %v2890_v2 = vor.u32 1.1754944e-38, %v2889_v42  ;;  %vm2888_vm7 = vcmp.eq.f32.partialorder %v2887_v43, 8.507059e+37 }
 0x7af   :  { %v2909_v15 = vor.u32 1.1754944e-38, %v2908_v53  ;;  %vm2907_vm8 = vcmp.eq.f32.partialorder %v2906_v62, 8.507059e+37  ;;  %v6148_v62 = vld [vmem:[#allocation10 + $0xe8] sm:$0xff] }
 0x7b0   :  { %v4075_v37 = vpop.eup %4074 }
 0x7b1   :  { %v2916_v30 = vadd.f32 1.0, %v4075_v37 }
 0x7b2   :  { %v4077_v32 = vpop.eup %4076 }
 0x7b3   :  { %v4079_v5 = vpop.eup %4078  ;;  %v2879_v33 = vmul.f32 %v4077_v32, %v2877_v19  ;;  %4080 = vrcp.f32 %v2916_v30  ;;  %vm2884_vm1 = vweird.f32 %v4077_v32  ;;  %vm2922_vm10 = vweird.f32 %v2916_v30 }
 0x7b4   :  { %v2898_v18 = vmul.f32 %v4079_v5, %v2896_v56  ;;  %4082 = vtanh.f32 %v2872_v49  ;;  %vm2903_vm2 = vweird.f32 %v4079_v5  ;;  %vm2885_vm5 = vmor %vm2883_vm3, %vm2884_vm1 }
 0x7b5   :  { %v2880_v58 = vsub.f32 1.0, %v2879_v33  ;;  %vm2904_vm6 = vmor %vm2902_vm4, %vm2903_vm2 }
 0x7b6   :  { %v2899_v35 = vsub.f32 1.0, %v2898_v18 }
 0x7b7   :  { %v2881_v54 = vmul.f32 %v4077_v32, %v2880_v58 }
 0x7b8   :  { %v2900_v9 = vmul.f32 %v4079_v5, %v2899_v35  ;;  %v2928_v35 = vand.u32 2147483648, %v2916_v30 }
 0x7b9   :  { %v4081_v63 = vpop.eup %4080  ;;  %v2882_v0 = vadd.f32 %v4077_v32, %v2881_v54 }
 0x7ba   :  { %v2901_v10 = vadd.f32 %v4079_v5, %v2900_v9  ;;  %v2918_v11 = vmul.f32 %v4081_v63, %v2916_v30  ;;  %v4083_v51 = vpop.eup %4082  ;;  %vm2923_vm9 = vweird.f32 %v4081_v63  ;;  %v2929_v53 = vor.u32 1.1754944e-38, %v2928_v35  ;;  %v6145_v9 = vld [vmem:[#allocation10 + $0xe0] sm:$0xff] }
 0x7bb   :  { %v2886_v29 = vsel %vm2885_vm5, %v4077_v32, %v2882_v0  ;;  %v2926_v32 = vand.u32 2147483647, %v2916_v30  ;;  %vm2924_vm11 = vmor %vm2922_vm10, %vm2923_vm9  ;;  %v6140_v30 = vld [vmem:[#allocation10 + $0x108] sm:$0xff]  ;;  %v6205_v35 = vld [vmem:[#allocation10 + $0x20] sm:$0xff] }
 0x7bc   :  { %v2891_v31 = vsel %vm2888_vm7, %v2890_v2, %v2886_v29  ;;  %v2905_v37 = vsel %vm2904_vm6, %v4079_v5, %v2901_v10  ;;  %v2919_v27 = vsub.f32 1.0, %v2918_v11  ;;  %v6156_v0 = vld [vmem:[#allocation10 + $0xc8] sm:$0xff]  ;;  %v6161_v2 = vld [vmem:[#allocation10 + $0xa0] sm:$0xff]  ;;  %v6175_v29 = vld [vmem:[#allocation10 + $0x90] sm:$0xff]  ;;  %6762 = vst [vmem:[#allocation33_spill] sm:$0xff] %v6205_v35 }
 0x7bd   :  { %v2910_v49 = vsel %vm2907_vm8, %v2909_v15, %v2905_v37  ;;  %v2933_v33 = vmul.f32 %v4083_v51, %v2891_v31  ;;  %vm2927_vm12 = vcmp.eq.f32.partialorder %v2926_v32, 8.507059e+37  ;;  %6748 = vst [vmem:[#allocation31_spill] sm:$0xff] %v6161_v2  ;;  %v6164_v10 = vld [vmem:[#allocation10 + $0xa8] sm:$0xff]  ;;  %v6169_v11 = vld [vmem:[#allocation10 + $0x80] sm:$0xff]  ;;  %v6178_v51 = vld [vmem:[#allocation10 + $0x98] sm:$0xff] }
 0x7be   :  { %v2932_v18 = vmul.f32 %v2910_v49, %v5962_v23  ;;  %v2920_v58 = vmul.f32 %v4081_v63, %v2919_v27  ;;  %v6137_v23 = vld [vmem:[#allocation10 + $0x100] sm:$0xff]  ;;  %6749 = vst [vmem:[#allocation23_spill] sm:$0xff] %v6164_v10  ;;  %v6172_v15 = vld [vmem:[#allocation10 + $0x88] sm:$0xff]  ;;  %v6187_v27 = vld [vmem:[#allocation10 + $0x70] sm:$0xff] }
 0x7bf   :  { %6750 = vst [vmem:[#allocation24_spill] sm:$0xff] %v6169_v11  ;;  %v6181_v31 = vld [vmem:[#allocation10 + $0x60] sm:$0xff]  ;;  %v6184_v37 = vld [vmem:[#allocation10 + $0x68] sm:$0xff]  ;;  %v6190_v49 = vld [vmem:[#allocation10 + $0x78] sm:$0xff] }
 0x7c0   :  { %v6106_v19 = vadd.f32 %v2933_v33, %v2932_v18  ;;  %v2921_v56 = vadd.f32 %v4081_v63, %v2920_v58  ;;  %6751 = vst [vmem:[#allocation34_spill] sm:$0xff] %v6172_v15  ;;  %v6193_v33 = vld [vmem:[#allocation10 + $0x40] sm:$0xff]  ;;  %v6196_v18 = vld [vmem:[#allocation10 + $0x48] sm:$0xff]  ;;  %v6199_v58 = vld [vmem:[#allocation10 + $0x50] sm:$0xff] }
 0x7c1   :  { %6752 = vst [vmem:[#allocation35_spill] sm:$0xff] %v6175_v29  ;;  %v6208_v32 = vld [vmem:[#allocation10 + $0x28] sm:$0xff] }
 0x7c2   :  { %4084 = vtanh.f32 %v6106_v19  ;;  %v2925_v42 = vsel %vm2924_vm11, %v4081_v63, %v2921_v56  ;;  %v6153_v63 = vld [vmem:[#allocation10 + $0xc0] sm:$0xff]  ;;  %6753 = vst [vmem:[#allocation25_spill] sm:$0xff] %v6178_v51  ;;  %v6202_v56 = vld [vmem:[#allocation10 + $0x58] sm:$0xff] }
 0x7c3   :  { %v2930_v54 = vsel %vm2927_vm12, %v2929_v53, %v2925_v42  ;;  %6754 = vst [vmem:[#allocation26_spill] sm:$0xff] %v6181_v31  ;;  %v6211_v42 = vld [vmem:[#allocation10 + $0x30] sm:$0xff]  ;;  %v6214_v53 = vld [vmem:[#allocation10 + $0x38] sm:$0xff] }
 0x7c4   :  { %6755 = vst [vmem:[#allocation18_spill] sm:$0xff] %v6184_v37 }
 0x7c5   :  { %6756 = vst [vmem:[#allocation19_spill] sm:$0xff] %v6187_v27 }
 0x7c6   :  { %6757 = vst [vmem:[#allocation28_spill] sm:$0xff] %v6190_v49 }
 0x7c7   :  { %6758 = vst [vmem:[#allocation29_spill] sm:$0xff] %v6193_v33 }
 0x7c8   :  { %v4085_v5 = vpop.eup %4084  ;;  %6759 = vst [vmem:[#allocation38_spill] sm:$0xff] %v6196_v18 }
 0x7c9   :  { %v2936_v43 = vmul.f32 %v4085_v5, %v2930_v54  ;;  %6760 = vst [vmem:[#allocation39_spill] sm:$0xff] %v6199_v58  ;;  %v6217_v5 = vld [vmem:[#allocation10] sm:$0xff]  ;;  %v6220_v54 = vld [vmem:[#allocation10 + $0x8] sm:$0xff] }
 0x7ca   :  { %6761 = vst [vmem:[#allocation32_spill] sm:$0xff] %v6202_v56 }
 0x7cb   :  { %2977 = vmatmul.f32.vlgmr.msrb.gmra.mxu0 %v2936_v43  ;;  %2997 = vmatmul.f32.vlgmr.msrb.gmra.mxu1 %v2936_v43  ;;  %6763 = vst [vmem:[#allocation40_spill] sm:$0xff] %v6208_v32 }
 0x7cc   :  { %3017 = vmatmul.f32.vlgmr.msrb.gmra.mxu2 %v2936_v43  ;;  %3037 = vmatmul.f32.vlgmr.msrb.gmra.mxu3 %v2936_v43  ;;  %6764 = vst [vmem:[#allocation41_spill] sm:$0xff] %v6211_v42  ;;  %v6223_v43 = vld [vmem:[#allocation10 + $0x10] sm:$0xff] }
 0x7cd   :  { %3303 = vmatpush.msrb.mxu0 %v5965_v48  ;;  %3323 = vmatpush.msrb.mxu1 %v5968_v34  ;;  %6765 = vst [vmem:[#allocation36_spill] sm:$0xff] %v6214_v53 }
 0x7ce   :  { %3343 = vmatpush.msrb.mxu2 %v5971_v44  ;;  %3363 = vmatpush.msrb.mxu3 %v5974_v52  ;;  %6766 = vst [vmem:[#allocation17_spill] sm:$0xff] %v6217_v5 }
 0x7cf   :  { %3304 = vmatpush.msrb.mxu0 %v5977_v25  ;;  %3324 = vmatpush.msrb.mxu1 %v5980_v24  ;;  %6767 = vst [vmem:[#allocation42_spill] sm:$0xff] %v6220_v54 }
 0x7d0   :  { %3344 = vmatpush.msrb.mxu2 %v5983_v26  ;;  %3364 = vmatpush.msrb.mxu3 %v5986_v61  ;;  %6768 = vst [vmem:[#allocation43_spill] sm:$0xff] %v6223_v43 }
 0x7d1   :  { %3305 = vmatpush.msrb.mxu0 %v5989_v57  ;;  %3325 = vmatpush.msrb.mxu1 %v5992_v36 }
 0x7d2   :  { %3345 = vmatpush.msrb.mxu2 %v5995_v20  ;;  %3365 = vmatpush.msrb.mxu3 %v5998_v28 }
 0x7d3   :  { %3306 = vmatpush.msrb.mxu0 %v6001_v40  ;;  %3326 = vmatpush.msrb.mxu1 %v6004_v7 }
 0x7d4   :  { %3346 = vmatpush.msrb.mxu2 %v6007_v4  ;;  %3366 = vmatpush.msrb.mxu3 %v6010_v17 }
 0x7d5   :  { %3307 = vmatpush.msrb.mxu0 %v6013_v50  ;;  %3327 = vmatpush.msrb.mxu1 %v6016_v3 }
 0x7d6   :  { %3347 = vmatpush.msrb.mxu2 %v6019_v12  ;;  %3367 = vmatpush.msrb.mxu3 %v6022_v55 }
 0x7d7   :  { %3308 = vmatpush.msrb.mxu0 %v6025_v46  ;;  %3328 = vmatpush.msrb.mxu1 %v6028_v8 }
 0x7d8   :  { %3348 = vmatpush.msrb.mxu2 %v6031_v47  ;;  %3368 = vmatpush.msrb.mxu3 %v6034_v6 }
 0x7d9   :  { %3309 = vmatpush.msrb.mxu0 %v6037_v21  ;;  %3329 = vmatpush.msrb.mxu1 %v6040_v13 }
 0x7da   :  { %3349 = vmatpush.msrb.mxu2 %v6043_v39  ;;  %3369 = vmatpush.msrb.mxu3 %v6046_v41 }
 0x7db   :  { %3310 = vmatpush.msrb.mxu0 %v6137_v23  ;;  %3330 = vmatpush.msrb.mxu1 %v6140_v30 }
 0x7dc   :  { %3350 = vmatpush.msrb.mxu2 %v6051_v1  ;;  %3370 = vmatpush.msrb.mxu3 %v6054_v38 }
 0x7dd   :  { %3311 = vmatpush.msrb.mxu0 %v6145_v9  ;;  %3331 = vmatpush.msrb.mxu1 %v6148_v62 }
 0x7de   :  { %3351 = vmatpush.msrb.mxu2 %v6059_v59  ;;  %3371 = vmatpush.msrb.mxu3 %v6062_v45 }
 0x7df   :  { %3312 = vmatpush.msrb.mxu0 %v6153_v63  ;;  %3332 = vmatpush.msrb.mxu1 %v6156_v0 }
 0x7e0   :  { %3352 = vmatpush.msrb.mxu2 %v6067_v14  ;;  %3372 = vmatpush.msrb.mxu3 %v6070_v22 }
 0x7e1   :  { %3313 = vmatpush.msrb.mxu0 %v6161_v2  ;;  %3333 = vmatpush.msrb.mxu1 %v6164_v10 }
 0x7e2   :  { %3353 = vmatpush.msrb.mxu2 %v6075_v16  ;;  %3373 = vmatpush.msrb.mxu3 %v6078_v60 }
 0x7e3   :  { %3314 = vmatpush.msrb.mxu0 %v6169_v11  ;;  %3334 = vmatpush.msrb.mxu1 %v6172_v15 }
 0x7e4   :  { %3354 = vmatpush.msrb.mxu2 %v6175_v29  ;;  %3374 = vmatpush.msrb.mxu3 %v6178_v51 }
 0x7e5   :  { %3315 = vmatpush.msrb.mxu0 %v6181_v31  ;;  %3335 = vmatpush.msrb.mxu1 %v6184_v37 }
 0x7e6   :  { %3355 = vmatpush.msrb.mxu2 %v6187_v27  ;;  %3375 = vmatpush.msrb.mxu3 %v6190_v49 }
 0x7e7   :  { %3316 = vmatpush.msrb.mxu0 %v6193_v33  ;;  %3336 = vmatpush.msrb.mxu1 %v6196_v18 }
 0x7e8   :  { %3356 = vmatpush.msrb.mxu2 %v6199_v58  ;;  %3376 = vmatpush.msrb.mxu3 %v6202_v56 }
 0x7e9   :  { %3317 = vmatpush.msrb.mxu0 %v6205_v35  ;;  %3337 = vmatpush.msrb.mxu1 %v6208_v32  ;;  %v6226_v32 = vld [vmem:[#allocation10 + $0x18] sm:$0xff] }
 0x7ea   :  { %3357 = vmatpush.msrb.mxu2 %v6211_v42  ;;  %3377 = vmatpush.msrb.mxu3 %v6214_v53  ;;  %6769 = vst [vmem:[#allocation20_spill] sm:$0xff] %v6226_v32  ;;  %v2938_v42 = vld [vmem:[#allocation2 + $0x23] ss:$8 sm:$0xf] }
 0x7eb   :  { %3318 = vmatpush.msrb.mxu0 %v6217_v5  ;;  %3338 = vmatpush.msrb.mxu1 %v6220_v54  ;;  %v2937_v35 = vld [vmem:[#allocation2 + $0x3] ss:$8 sm:$0xf]  ;;  %v2949_v56 = vperm.slane %v2938_v42, 0  ;;  %v2950_v53 = vperm.slane %v2938_v42, 1  ;;  %v2952_v51 = vperm.slane %v2938_v42, 3 }
 0x7ec   :  { %3358 = vmatpush.msrb.mxu2 %v6223_v43  ;;  %3378 = vmatpush.msrb.mxu3 %v6226_v32  ;;  %v2940_v58 = vperm.slane %v2937_v35, 0  ;;  %v2941_v18 = vperm.slane %v2937_v35, 1  ;;  %v2943_v29 = vperm.slane %v2937_v35, 3 }
 0x7ee   :  { %v2957_v5 = vsel %vm293_vm0, %v2940_v58, %v2949_v56  ;;  %v2958_v49 = vsel %vm293_vm0, %v2941_v18, %v2950_v53  ;;  %v2960_v32 = vsel %vm293_vm0, %v2943_v29, %v2952_v51 }
 0x848   :  { %v2978_v33 = vpop.f32.mrf.mxu0  ;;  %v2998_v54 = vpop.f32.mrf.mxu1 }
 0x849   :  { %v3041_v27 = vadd.f32 %v2978_v33, %v2957_v5  ;;  %v3042_v37 = vadd.f32 %v2998_v54, %v2958_v49  ;;  %v2951_v33 = vperm.slane %v2938_v42, 2  ;;  %v2942_v49 = vperm.slane %v2937_v35, 2 }
 0x84b   :  { %v3886_v31 = vmul.f32 -1.442695, %v3041_v27  ;;  %v3887_v43 = vmul.f32 -1.442695, %v3042_v37 }
 0x84d   :  { %4086 = vpow2.f32 %v3886_v31  ;;  %v2959_v31 = vsel %vm293_vm0, %v2942_v49, %v2951_v33 }
 0x84e   :  { %4088 = vpow2.f32 %v3887_v43 }
 0x84f   :  { %v3038_v15 = vpop.f32.mrf.mxu3  ;;  %v3018_v27 = vpop.f32.mrf.mxu2 }
 0x850   :  { %v3044_v11 = vadd.f32 %v3038_v15, %v2960_v32  ;;  %v3043_v5 = vadd.f32 %v3018_v27, %v2959_v31 }
 0x852   :  { %v3888_v60 = vmul.f32 -1.442695, %v3044_v11 }
 0x853   :  { %v4087_v16 = vpop.eup %4086 }
 0x854   :  { %v4089_v10 = vpop.eup %4088  ;;  %v3048_v58 = vadd.f32 1.0, %v4087_v16  ;;  %4090 = vpow2.f32 %v3888_v60 }
 0x855   :  { %v3067_v56 = vadd.f32 1.0, %v4089_v10 }
 0x856   :  { %4092 = vrcp.f32 %v3048_v58  ;;  %v3060_v16 = vand.u32 2147483648, %v3048_v58  ;;  %v3058_v42 = vand.u32 2147483647, %v3048_v58  ;;  %vm3054_vm15 = vweird.f32 %v3048_v58 }
 0x857   :  { %4094 = vrcp.f32 %v3067_v56  ;;  %v3079_v60 = vand.u32 2147483648, %v3067_v56  ;;  %v3077_v54 = vand.u32 2147483647, %v3067_v56  ;;  %vm3073_vm1 = vweird.f32 %v3067_v56 }
 0x858   :  { %v3061_v49 = vor.u32 1.1754944e-38, %v3060_v16  ;;  %vm3059_vm4 = vcmp.eq.f32.partialorder %v3058_v42, 8.507059e+37 }
 0x859   :  { %v3080_v31 = vor.u32 1.1754944e-38, %v3079_v60  ;;  %vm3078_vm5 = vcmp.eq.f32.partialorder %v3077_v54, 8.507059e+37 }
 0x85a   :  { %v4091_v37 = vpop.eup %4090 }
 0x85b   :  { %v3087_v18 = vadd.f32 1.0, %v4091_v37 }
 0x85c   :  { %v4093_v53 = vpop.eup %4092 }
 0x85d   :  { %v4095_v29 = vpop.eup %4094  ;;  %v3050_v51 = vmul.f32 %v4093_v53, %v3048_v58  ;;  %4096 = vrcp.f32 %v3087_v18  ;;  %vm3055_vm13 = vweird.f32 %v4093_v53  ;;  %v3099_v16 = vand.u32 2147483648, %v3087_v18 }
 0x85e   :  { %v3069_v11 = vmul.f32 %v4095_v29, %v3067_v56  ;;  %4098 = vtanh.f32 %v3043_v5  ;;  %vm3074_vm14 = vweird.f32 %v4095_v29  ;;  %vm3056_vm2 = vmor %vm3054_vm15, %vm3055_vm13  ;;  %vm3093_vm7 = vweird.f32 %v3087_v18 }
 0x85f   :  { %v3051_v15 = vsub.f32 1.0, %v3050_v51  ;;  %vm3075_vm3 = vmor %vm3073_vm1, %vm3074_vm14  ;;  %v3100_v42 = vor.u32 1.1754944e-38, %v3099_v16  ;;  %v6788_v16 = vld [vmem:[#allocation33_spill] sm:$0xff] }
 0x860   :  { %v3070_v32 = vsub.f32 1.0, %v3069_v11 }
 0x861   :  { %v3052_v10 = vmul.f32 %v4093_v53, %v3051_v15 }
 0x862   :  { %v3071_v35 = vmul.f32 %v4095_v29, %v3070_v32 }
 0x863   :  { %v4097_v43 = vpop.eup %4096  ;;  %v3053_v33 = vadd.f32 %v4093_v53, %v3052_v10 }
 0x864   :  { %v3072_v27 = vadd.f32 %v4095_v29, %v3071_v35  ;;  %v3089_v37 = vmul.f32 %v4097_v43, %v3087_v18  ;;  %v4099_v5 = vpop.eup %4098  ;;  %vm3094_vm6 = vweird.f32 %v4097_v43 }
 0x865   :  { %v3057_v51 = vsel %vm3056_vm2, %v4093_v53, %v3053_v33  ;;  %v3097_v53 = vand.u32 2147483647, %v3087_v18  ;;  %vm3095_vm8 = vmor %vm3093_vm7, %vm3094_vm6  ;;  %v6774_v18 = vld [vmem:[#allocation22_spill] sm:$0xff]  ;;  %v6776_v33 = vld [vmem:[#allocation24_spill] sm:$0xff] }
 0x866   :  { %v3062_v11 = vsel %vm3059_vm4, %v3061_v49, %v3057_v51  ;;  %v3076_v15 = vsel %vm3075_vm3, %v4095_v29, %v3072_v27  ;;  %v3090_v2 = vsub.f32 1.0, %v3089_v37  ;;  %v6777_v49 = vld [vmem:[#allocation34_spill] sm:$0xff]  ;;  %v6778_v27 = vld [vmem:[#allocation35_spill] sm:$0xff]  ;;  %v6779_v37 = vld [vmem:[#allocation25_spill] sm:$0xff] }
 0x867   :  { %v3081_v32 = vsel %vm3078_vm5, %v3080_v31, %v3076_v15  ;;  %v3104_v22 = vmul.f32 %v4099_v5, %v3062_v11  ;;  %vm3098_vm9 = vcmp.eq.f32.partialorder %v3097_v53, 8.507059e+37  ;;  %v6780_v31 = vld [vmem:[#allocation26_spill] sm:$0xff]  ;;  %v6782_v5 = vld [vmem:[#allocation19_spill] sm:$0xff]  ;;  %v6783_v11 = vld [vmem:[#allocation28_spill] sm:$0xff] }
 0x868   :  { %v3103_v14 = vmul.f32 %v3081_v32, %v6106_v19  ;;  %v3091_v10 = vmul.f32 %v4097_v43, %v3090_v2  ;;  %v6772_v19 = vld [vmem:[#allocation31_spill] sm:$0xff]  ;;  %v6781_v51 = vld [vmem:[#allocation18_spill] sm:$0xff]  ;;  %v6784_v15 = vld [vmem:[#allocation29_spill] sm:$0xff] }
 0x869   :  { %v6773_v2 = vld [vmem:[#allocation23_spill] sm:$0xff]  ;;  %v6785_v32 = vld [vmem:[#allocation38_spill] sm:$0xff]  ;;  %v6789_v53 = vld [vmem:[#allocation40_spill] sm:$0xff] }
 0x86a   :  { %v6234_v58 = vadd.f32 %v3104_v22, %v3103_v14  ;;  %v3092_v56 = vadd.f32 %v4097_v43, %v3091_v10  ;;  %v6770_v14 = vld [vmem:[#allocation27_spill] sm:$0xff]  ;;  %v6771_v22 = vld [vmem:[#allocation21_spill] sm:$0xff] }
 0x86b   :  { %v6786_v10 = vld [vmem:[#allocation39_spill] sm:$0xff] }
 0x86c   :  { %4100 = vtanh.f32 %v6234_v58  ;;  %v3096_v60 = vsel %vm3095_vm8, %v4097_v43, %v3092_v56  ;;  %v6775_v43 = vld [vmem:[#allocation30_spill] sm:$0xff]  ;;  %v6787_v56 = vld [vmem:[#allocation32_spill] sm:$0xff] }
 0x86d   :  { %v3101_v35 = vsel %vm3098_vm9, %v3100_v42, %v3096_v60  ;;  %v6790_v60 = vld [vmem:[#allocation41_spill] sm:$0xff]  ;;  %v6791_v42 = vld [vmem:[#allocation36_spill] sm:$0xff] }
 0x872   :  { %v4101_v29 = vpop.eup %4100 }
 0x873   :  { %v3107_v54 = vmul.f32 %v4101_v29, %v3101_v35  ;;  %v6792_v29 = vld [vmem:[#allocation17_spill] sm:$0xff]  ;;  %v6793_v35 = vld [vmem:[#allocation42_spill] sm:$0xff] }
 0x875   :  { %3148 = vmatmul.f32.vlgmr.msra.gmra.mxu0 %v3107_v54  ;;  %3168 = vmatmul.f32.vlgmr.msra.gmra.mxu1 %v3107_v54 }
 0x876   :  { %3188 = vmatmul.f32.vlgmr.msra.gmra.mxu2 %v3107_v54  ;;  %3208 = vmatmul.f32.vlgmr.msra.gmra.mxu3 %v3107_v54  ;;  %v6794_v54 = vld [vmem:[#allocation43_spill] sm:$0xff] }
 0x877   :  { %3474 = vmatpush.msra.mxu0 %v5965_v48  ;;  %3494 = vmatpush.msra.mxu1 %v5968_v34 }
 0x878   :  { %3514 = vmatpush.msra.mxu2 %v5971_v44  ;;  %3534 = vmatpush.msra.mxu3 %v5974_v52 }
 0x879   :  { %3475 = vmatpush.msra.mxu0 %v5977_v25  ;;  %3495 = vmatpush.msra.mxu1 %v5980_v24 }
 0x87a   :  { %3515 = vmatpush.msra.mxu2 %v5983_v26  ;;  %3535 = vmatpush.msra.mxu3 %v5986_v61 }
 0x87b   :  { %3476 = vmatpush.msra.mxu0 %v5989_v57  ;;  %3496 = vmatpush.msra.mxu1 %v5992_v36 }
 0x87c   :  { %3516 = vmatpush.msra.mxu2 %v5995_v20  ;;  %3536 = vmatpush.msra.mxu3 %v5998_v28 }
 0x87d   :  { %3477 = vmatpush.msra.mxu0 %v6001_v40  ;;  %3497 = vmatpush.msra.mxu1 %v6004_v7 }
 0x87e   :  { %3517 = vmatpush.msra.mxu2 %v6007_v4  ;;  %3537 = vmatpush.msra.mxu3 %v6010_v17 }
 0x87f   :  { %3478 = vmatpush.msra.mxu0 %v6013_v50  ;;  %3498 = vmatpush.msra.mxu1 %v6016_v3 }
 0x880   :  { %3518 = vmatpush.msra.mxu2 %v6019_v12  ;;  %3538 = vmatpush.msra.mxu3 %v6022_v55 }
 0x881   :  { %3479 = vmatpush.msra.mxu0 %v6025_v46  ;;  %3499 = vmatpush.msra.mxu1 %v6028_v8 }
 0x882   :  { %3519 = vmatpush.msra.mxu2 %v6031_v47  ;;  %3539 = vmatpush.msra.mxu3 %v6034_v6 }
 0x883   :  { %3480 = vmatpush.msra.mxu0 %v6037_v21  ;;  %3500 = vmatpush.msra.mxu1 %v6040_v13 }
 0x884   :  { %3520 = vmatpush.msra.mxu2 %v6043_v39  ;;  %3540 = vmatpush.msra.mxu3 %v6046_v41 }
 0x885   :  { %3481 = vmatpush.msra.mxu0 %v6137_v23  ;;  %3501 = vmatpush.msra.mxu1 %v6140_v30 }
 0x886   :  { %3521 = vmatpush.msra.mxu2 %v6051_v1  ;;  %3541 = vmatpush.msra.mxu3 %v6054_v38 }
 0x887   :  { %3482 = vmatpush.msra.mxu0 %v6145_v9  ;;  %3502 = vmatpush.msra.mxu1 %v6148_v62 }
 0x888   :  { %3522 = vmatpush.msra.mxu2 %v6059_v59  ;;  %3542 = vmatpush.msra.mxu3 %v6062_v45 }
 0x889   :  { %3483 = vmatpush.msra.mxu0 %v6153_v63  ;;  %3503 = vmatpush.msra.mxu1 %v6156_v0 }
 0x88a   :  { %3523 = vmatpush.msra.mxu2 %v6770_v14  ;;  %3543 = vmatpush.msra.mxu3 %v6771_v22 }
 0x88b   :  { %3484 = vmatpush.msra.mxu0 %v6772_v19  ;;  %3504 = vmatpush.msra.mxu1 %v6773_v2 }
 0x88c   :  { %3524 = vmatpush.msra.mxu2 %v6774_v18  ;;  %3544 = vmatpush.msra.mxu3 %v6775_v43 }
 0x88d   :  { %3485 = vmatpush.msra.mxu0 %v6776_v33  ;;  %3505 = vmatpush.msra.mxu1 %v6777_v49 }
 0x88e   :  { %3525 = vmatpush.msra.mxu2 %v6778_v27  ;;  %3545 = vmatpush.msra.mxu3 %v6779_v37 }
 0x88f   :  { %3486 = vmatpush.msra.mxu0 %v6780_v31  ;;  %3506 = vmatpush.msra.mxu1 %v6781_v51 }
 0x890   :  { %3526 = vmatpush.msra.mxu2 %v6782_v5  ;;  %3546 = vmatpush.msra.mxu3 %v6783_v11 }
 0x891   :  { %3487 = vmatpush.msra.mxu0 %v6784_v15  ;;  %3507 = vmatpush.msra.mxu1 %v6785_v32  ;;  %v6795_v15 = vld [vmem:[#allocation20_spill] sm:$0xff] }
 0x892   :  { %3527 = vmatpush.msra.mxu2 %v6786_v10  ;;  %3547 = vmatpush.msra.mxu3 %v6787_v56  ;;  %v3109_v32 = vld [vmem:[#allocation2 + $0x24] ss:$8 sm:$0xf] }
 0x893   :  { %3488 = vmatpush.msra.mxu0 %v6788_v16  ;;  %3508 = vmatpush.msra.mxu1 %v6789_v53  ;;  %v3108_v10 = vld [vmem:[#allocation2 + $0x4] ss:$8 sm:$0xf]  ;;  %v3120_v11 = vperm.slane %v3109_v32, 0  ;;  %v3121_v56 = vperm.slane %v3109_v32, 1  ;;  %v3123_v27 = vperm.slane %v3109_v32, 3 }
 0x894   :  { %3528 = vmatpush.msra.mxu2 %v6790_v60  ;;  %3548 = vmatpush.msra.mxu3 %v6791_v42  ;;  %v3111_v5 = vperm.slane %v3108_v10, 0  ;;  %v3112_v16 = vperm.slane %v3108_v10, 1 }
 0x895   :  { %3489 = vmatpush.msra.mxu0 %v6792_v29  ;;  %3509 = vmatpush.msra.mxu1 %v6793_v35 }
 0x896   :  { %3529 = vmatpush.msra.mxu2 %v6794_v54  ;;  %3549 = vmatpush.msra.mxu3 %v6795_v15  ;;  %v3128_v53 = vsel %vm293_vm0, %v3111_v5, %v3120_v11  ;;  %v3129_v60 = vsel %vm293_vm0, %v3112_v16, %v3121_v56  ;;  %v3114_v54 = vperm.slane %v3108_v10, 3  ;;  %v3113_v56 = vperm.slane %v3108_v10, 2 }
 0x898   :  { %v3131_v15 = vsel %vm293_vm0, %v3114_v54, %v3123_v27 }
 0x8f2   :  { %v3149_v51 = vpop.f32.mrf.mxu0  ;;  %v3169_v42 = vpop.f32.mrf.mxu1 }
 0x8f3   :  { %v3212_v31 = vadd.f32 %v3149_v51, %v3128_v53  ;;  %v3213_v29 = vadd.f32 %v3169_v42, %v3129_v60  ;;  %v3122_v51 = vperm.slane %v3109_v32, 2 }
 0x8f5   :  { %v3889_v37 = vmul.f32 -1.442695, %v3212_v31  ;;  %v3890_v35 = vmul.f32 -1.442695, %v3213_v29 }
 0x8f7   :  { %4102 = vpow2.f32 %v3889_v37  ;;  %v3130_v37 = vsel %vm293_vm0, %v3113_v56, %v3122_v51 }
 0x8f8   :  { %4104 = vpow2.f32 %v3890_v35 }
 0x8f9   :  { %v3209_v49 = vpop.f32.mrf.mxu3  ;;  %v3189_v31 = vpop.f32.mrf.mxu2 }
 0x8fa   :  { %v3215_v33 = vadd.f32 %v3209_v49, %v3131_v15  ;;  %v3214_v42 = vadd.f32 %v3189_v31, %v3130_v37 }
 0x8fc   :  { %v3891_v43 = vmul.f32 -1.442695, %v3215_v33 }
 0x8fd   :  { %v4103_v18 = vpop.eup %4102 }
 0x8fe   :  { %v4105_v2 = vpop.eup %4104  ;;  %v3219_v5 = vadd.f32 1.0, %v4103_v18  ;;  %4106 = vpow2.f32 %v3891_v43 }
 0x8ff   :  { %v3238_v11 = vadd.f32 1.0, %v4105_v2 }
 0x900   :  { %4108 = vrcp.f32 %v3219_v5  ;;  %v3231_v18 = vand.u32 2147483648, %v3219_v5  ;;  %v3229_v32 = vand.u32 2147483647, %v3219_v5  ;;  %vm3225_vm12 = vweird.f32 %v3219_v5 }
 0x901   :  { %4110 = vrcp.f32 %v3238_v11  ;;  %v3250_v2 = vand.u32 2147483648, %v3238_v11  ;;  %v3248_v35 = vand.u32 2147483647, %v3238_v11  ;;  %vm3244_vm13 = vweird.f32 %v3238_v11 }
 0x902   :  { %v3232_v56 = vor.u32 1.1754944e-38, %v3231_v18  ;;  %vm3230_vm1 = vcmp.eq.f32.partialorder %v3229_v32, 8.507059e+37 }
 0x903   :  { %v3251_v37 = vor.u32 1.1754944e-38, %v3250_v2  ;;  %vm3249_vm2 = vcmp.eq.f32.partialorder %v3248_v35, 8.507059e+37 }
 0x904   :  { %v4107_v16 = vpop.eup %4106 }
 0x905   :  { %v3258_v53 = vadd.f32 1.0, %v4107_v16 }
 0x906   :  { %v4109_v60 = vpop.eup %4108 }
 0x907   :  { %v4111_v27 = vpop.eup %4110  ;;  %v3221_v29 = vmul.f32 %v4109_v60, %v3219_v5  ;;  %4112 = vrcp.f32 %v3258_v53  ;;  %vm3226_vm10 = vweird.f32 %v4109_v60  ;;  %v3270_v18 = vand.u32 2147483648, %v3258_v53 }
 0x908   :  { %v3240_v33 = vmul.f32 %v4111_v27, %v3238_v11  ;;  %4114 = vtanh.f32 %v3214_v42  ;;  %vm3245_vm11 = vweird.f32 %v4111_v27  ;;  %vm3227_vm14 = vmor %vm3225_vm12, %vm3226_vm10  ;;  %vm3264_vm4 = vweird.f32 %v3258_v53 }
 0x909   :  { %v3222_v49 = vsub.f32 1.0, %v3221_v29  ;;  %vm3246_vm15 = vmor %vm3244_vm13, %vm3245_vm11  ;;  %v3271_v32 = vor.u32 1.1754944e-38, %v3270_v18 }
 0x90a   :  { %v3241_v15 = vsub.f32 1.0, %v3240_v33 }
 0x90b   :  { %v3223_v43 = vmul.f32 %v4109_v60, %v3222_v49 }
 0x90c   :  { %v3242_v10 = vmul.f32 %v4111_v27, %v3241_v15 }
 0x90d   :  { %v4113_v54 = vpop.eup %4112  ;;  %v3224_v51 = vadd.f32 %v4109_v60, %v3223_v43 }
 0x90e   :  { %v3243_v31 = vadd.f32 %v4111_v27, %v3242_v10  ;;  %v3260_v16 = vmul.f32 %v4113_v54, %v3258_v53  ;;  %v4115_v42 = vpop.eup %4114  ;;  %vm3265_vm3 = vweird.f32 %v4113_v54 }
 0x90f   :  { %v3228_v29 = vsel %vm3227_vm14, %v4109_v60, %v3224_v51  ;;  %v3268_v60 = vand.u32 2147483647, %v3258_v53  ;;  %vm3266_vm5 = vmor %vm3264_vm4, %vm3265_vm3 }
 0x910   :  { %v3233_v33 = vsel %vm3230_vm1, %v3232_v56, %v3228_v29  ;;  %v3247_v49 = vsel %vm3246_vm15, %v4111_v27, %v3243_v31  ;;  %v3261_v19 = vsub.f32 1.0, %v3260_v16 }
 0x911   :  { %v3252_v15 = vsel %vm3249_vm2, %v3251_v37, %v3247_v49  ;;  %v3275_v22 = vmul.f32 %v4115_v42, %v3233_v33  ;;  %vm3269_vm6 = vcmp.eq.f32.partialorder %v3268_v60, 8.507059e+37 }
 0x912   :  { %v3274_v14 = vmul.f32 %v3252_v15, %v6234_v58  ;;  %v3262_v43 = vmul.f32 %v4113_v54, %v3261_v19 }
 0x914   :  { %v6306_v5 = vadd.f32 %v3275_v22, %v3274_v14  ;;  %v3263_v11 = vadd.f32 %v4113_v54, %v3262_v43 }
 0x916   :  { %4116 = vtanh.f32 %v6306_v5  ;;  %v3267_v2 = vsel %vm3266_vm5, %v4113_v54, %v3263_v11 }
 0x917   :  { %v3272_v10 = vsel %vm3269_vm6, %v3271_v32, %v3267_v2 }
 0x91c   :  { %v4117_v27 = vpop.eup %4116 }
 0x91d   :  { %v3278_v35 = vmul.f32 %v4117_v27, %v3272_v10 }
 0x91f   :  { %3319 = vmatmul.f32.vlgmr.msrb.gmra.mxu0 %v3278_v35  ;;  %3339 = vmatmul.f32.vlgmr.msrb.gmra.mxu1 %v3278_v35 }
 0x920   :  { %3359 = vmatmul.f32.vlgmr.msrb.gmra.mxu2 %v3278_v35  ;;  %3379 = vmatmul.f32.vlgmr.msrb.gmra.mxu3 %v3278_v35 }
 0x921   :  { %3645 = vmatpush.msrb.mxu0 %v5965_v48  ;;  %3665 = vmatpush.msrb.mxu1 %v5968_v34  ;;  %v6796_v48 = vld [vmem:[#allocation27_spill] sm:$0xff]  ;;  %v6797_v34 = vld [vmem:[#allocation21_spill] sm:$0xff] }
 0x922   :  { %3685 = vmatpush.msrb.mxu2 %v5971_v44  ;;  %3705 = vmatpush.msrb.mxu3 %v5974_v52  ;;  %v6798_v44 = vld [vmem:[#allocation31_spill] sm:$0xff] }
 0x923   :  { %3646 = vmatpush.msrb.mxu0 %v5977_v25  ;;  %3666 = vmatpush.msrb.mxu1 %v5980_v24  ;;  %v6799_v52 = vld [vmem:[#allocation23_spill] sm:$0xff]  ;;  %v6800_v25 = vld [vmem:[#allocation22_spill] sm:$0xff] }
 0x924   :  { %3686 = vmatpush.msrb.mxu2 %v5983_v26  ;;  %3706 = vmatpush.msrb.mxu3 %v5986_v61  ;;  %v6801_v24 = vld [vmem:[#allocation30_spill] sm:$0xff]  ;;  %v6802_v26 = vld [vmem:[#allocation24_spill] sm:$0xff] }
 0x925   :  { %3647 = vmatpush.msrb.mxu0 %v5989_v57  ;;  %3667 = vmatpush.msrb.mxu1 %v5992_v36  ;;  %v6803_v61 = vld [vmem:[#allocation34_spill] sm:$0xff]  ;;  %v6804_v57 = vld [vmem:[#allocation35_spill] sm:$0xff]  ;;  %v6805_v36 = vld [vmem:[#allocation25_spill] sm:$0xff] }
 0x926   :  { %3687 = vmatpush.msrb.mxu2 %v5995_v20  ;;  %3707 = vmatpush.msrb.mxu3 %v5998_v28  ;;  %v6806_v20 = vld [vmem:[#allocation26_spill] sm:$0xff] }
 0x927   :  { %3648 = vmatpush.msrb.mxu0 %v6001_v40  ;;  %3668 = vmatpush.msrb.mxu1 %v6004_v7  ;;  %v6807_v28 = vld [vmem:[#allocation18_spill] sm:$0xff]  ;;  %v6808_v40 = vld [vmem:[#allocation19_spill] sm:$0xff]  ;;  %v6809_v7 = vld [vmem:[#allocation28_spill] sm:$0xff] }
 0x928   :  { %3688 = vmatpush.msrb.mxu2 %v6007_v4  ;;  %3708 = vmatpush.msrb.mxu3 %v6010_v17  ;;  %v6810_v4 = vld [vmem:[#allocation29_spill] sm:$0xff]  ;;  %v6811_v17 = vld [vmem:[#allocation38_spill] sm:$0xff] }
 0x929   :  { %3649 = vmatpush.msrb.mxu0 %v6013_v50  ;;  %3669 = vmatpush.msrb.mxu1 %v6016_v3  ;;  %v6812_v50 = vld [vmem:[#allocation39_spill] sm:$0xff]  ;;  %v6813_v3 = vld [vmem:[#allocation32_spill] sm:$0xff] }
 0x92a   :  { %3689 = vmatpush.msrb.mxu2 %v6019_v12  ;;  %3709 = vmatpush.msrb.mxu3 %v6022_v55  ;;  %v6814_v12 = vld [vmem:[#allocation33_spill] sm:$0xff]  ;;  %v6815_v55 = vld [vmem:[#allocation40_spill] sm:$0xff] }
 0x92b   :  { %3650 = vmatpush.msrb.mxu0 %v6025_v46  ;;  %3670 = vmatpush.msrb.mxu1 %v6028_v8  ;;  %v6816_v46 = vld [vmem:[#allocation41_spill] sm:$0xff]  ;;  %v6817_v8 = vld [vmem:[#allocation36_spill] sm:$0xff] }
 0x92c   :  { %3690 = vmatpush.msrb.mxu2 %v6031_v47  ;;  %3710 = vmatpush.msrb.mxu3 %v6034_v6  ;;  %v6818_v47 = vld [vmem:[#allocation17_spill] sm:$0xff]  ;;  %v6819_v6 = vld [vmem:[#allocation42_spill] sm:$0xff] }
 0x92d   :  { %3651 = vmatpush.msrb.mxu0 %v6037_v21  ;;  %3671 = vmatpush.msrb.mxu1 %v6040_v13  ;;  %v6820_v21 = vld [vmem:[#allocation43_spill] sm:$0xff]  ;;  %v6821_v13 = vld [vmem:[#allocation20_spill] sm:$0xff] }
 0x92e   :  { %3691 = vmatpush.msrb.mxu2 %v6043_v39  ;;  %3711 = vmatpush.msrb.mxu3 %v6046_v41  ;;  %v3280_v39 = vld [vmem:[#allocation2 + $0x25] ss:$8 sm:$0xf] }
 0x92f   :  { %3652 = vmatpush.msrb.mxu0 %v6137_v23  ;;  %3672 = vmatpush.msrb.mxu1 %v6140_v30  ;;  %v3279_v41 = vld [vmem:[#allocation2 + $0x5] ss:$8 sm:$0xf]  ;;  %v3294_v22 = vperm.slane %v3280_v39, 3  ;;  %v3293_v42 = vperm.slane %v3280_v39, 2 }
 0x930   :  { %3692 = vmatpush.msrb.mxu2 %v6051_v1  ;;  %3712 = vmatpush.msrb.mxu3 %v6054_v38  ;;  %v3291_v1 = vperm.slane %v3280_v39, 0  ;;  %v3292_v38 = vperm.slane %v3280_v39, 1  ;;  %v3285_v19 = vperm.slane %v3279_v41, 3  ;;  %v3284_v33 = vperm.slane %v3279_v41, 2 }
 0x931   :  { %3653 = vmatpush.msrb.mxu0 %v6145_v9  ;;  %3673 = vmatpush.msrb.mxu1 %v6148_v62 }
 0x932   :  { %3693 = vmatpush.msrb.mxu2 %v6059_v59  ;;  %3713 = vmatpush.msrb.mxu3 %v6062_v45  ;;  %v3282_v59 = vperm.slane %v3279_v41, 0  ;;  %v3283_v45 = vperm.slane %v3279_v41, 1  ;;  %v3302_v53 = vsel %vm293_vm0, %v3285_v19, %v3294_v22  ;;  %v3301_v43 = vsel %vm293_vm0, %v3284_v33, %v3293_v42 }
 0x933   :  { %3654 = vmatpush.msrb.mxu0 %v6153_v63  ;;  %3674 = vmatpush.msrb.mxu1 %v6156_v0 }
 0x934   :  { %3694 = vmatpush.msrb.mxu2 %v6796_v48  ;;  %3714 = vmatpush.msrb.mxu3 %v6797_v34  ;;  %v3299_v23 = vsel %vm293_vm0, %v3282_v59, %v3291_v1  ;;  %v3300_v9 = vsel %vm293_vm0, %v3283_v45, %v3292_v38  ;;  %v3450_v59 = vld [vmem:[#allocation2 + $0x6] ss:$8 sm:$0xf] }
 0x935   :  { %3655 = vmatpush.msrb.mxu0 %v6798_v44  ;;  %3675 = vmatpush.msrb.mxu1 %v6799_v52 }
 0x936   :  { %3695 = vmatpush.msrb.mxu2 %v6800_v25  ;;  %3715 = vmatpush.msrb.mxu3 %v6801_v24 }
 0x937   :  { %3656 = vmatpush.msrb.mxu0 %v6802_v26  ;;  %3676 = vmatpush.msrb.mxu1 %v6803_v61 }
 0x938   :  { %3696 = vmatpush.msrb.mxu2 %v6804_v57  ;;  %3716 = vmatpush.msrb.mxu3 %v6805_v36 }
 0x939   :  { %3657 = vmatpush.msrb.mxu0 %v6806_v20  ;;  %3677 = vmatpush.msrb.mxu1 %v6807_v28 }
 0x93a   :  { %3697 = vmatpush.msrb.mxu2 %v6808_v40  ;;  %3717 = vmatpush.msrb.mxu3 %v6809_v7 }
 0x93b   :  { %3658 = vmatpush.msrb.mxu0 %v6810_v4  ;;  %3678 = vmatpush.msrb.mxu1 %v6811_v17 }
 0x93c   :  { %3698 = vmatpush.msrb.mxu2 %v6812_v50  ;;  %3718 = vmatpush.msrb.mxu3 %v6813_v3 }
 0x93d   :  { %3659 = vmatpush.msrb.mxu0 %v6814_v12  ;;  %3679 = vmatpush.msrb.mxu1 %v6815_v55 }
 0x93e   :  { %3699 = vmatpush.msrb.mxu2 %v6816_v46  ;;  %3719 = vmatpush.msrb.mxu3 %v6817_v8 }
 0x93f   :  { %3660 = vmatpush.msrb.mxu0 %v6818_v47  ;;  %3680 = vmatpush.msrb.mxu1 %v6819_v6 }
 0x940   :  { %3700 = vmatpush.msrb.mxu2 %v6820_v21  ;;  %3720 = vmatpush.msrb.mxu3 %v6821_v13 }
 0x99c   :  { %v3320_v30 = vpop.f32.mrf.mxu0  ;;  %v3340_v62 = vpop.f32.mrf.mxu1 }
 0x99d   :  { %v3383_v63 = vadd.f32 %v3320_v30, %v3299_v23  ;;  %v3384_v0 = vadd.f32 %v3340_v62, %v3300_v9  ;;  %v3453_v30 = vperm.slane %v3450_v59, 0  ;;  %v3454_v9 = vperm.slane %v3450_v59, 1 }
 0x99f   :  { %v3892_v58 = vmul.f32 -1.442695, %v3383_v63  ;;  %v3893_v14 = vmul.f32 -1.442695, %v3384_v0 }
 0x9a1   :  { %4118 = vpow2.f32 %v3892_v58 }
 0x9a2   :  { %4120 = vpow2.f32 %v3893_v14 }
 0x9a3   :  { %v3380_v54 = vpop.f32.mrf.mxu3  ;;  %v3360_v49 = vpop.f32.mrf.mxu2 }
 0x9a4   :  { %v3386_v51 = vadd.f32 %v3380_v54, %v3302_v53  ;;  %v3385_v60 = vadd.f32 %v3360_v49, %v3301_v43  ;;  %v3455_v43 = vperm.slane %v3450_v59, 2 }
 0x9a6   :  { %v3894_v56 = vmul.f32 -1.442695, %v3386_v51  ;;  %v3456_v51 = vperm.slane %v3450_v59, 3 }
 0x9a7   :  { %v4119_v31 = vpop.eup %4118 }
 0x9a8   :  { %v4121_v16 = vpop.eup %4120  ;;  %v3390_v37 = vadd.f32 1.0, %v4119_v31  ;;  %4122 = vpow2.f32 %v3894_v56 }
 0x9a9   :  { %v3409_v29 = vadd.f32 1.0, %v4121_v16 }
 0x9aa   :  { %4124 = vrcp.f32 %v3390_v37  ;;  %v3402_v48 = vand.u32 2147483648, %v3390_v37  ;;  %v3400_v52 = vand.u32 2147483647, %v3390_v37  ;;  %vm3396_vm9 = vweird.f32 %v3390_v37 }
 0x9ab   :  { %4126 = vrcp.f32 %v3409_v29  ;;  %v3421_v34 = vand.u32 2147483648, %v3409_v29  ;;  %v3419_v24 = vand.u32 2147483647, %v3409_v29  ;;  %vm3415_vm10 = vweird.f32 %v3409_v29 }
 0x9ac   :  { %v3403_v57 = vor.u32 1.1754944e-38, %v3402_v48  ;;  %vm3401_vm13 = vcmp.eq.f32.partialorder %v3400_v52, 8.507059e+37 }
 0x9ad   :  { %v3422_v28 = vor.u32 1.1754944e-38, %v3421_v34  ;;  %vm3420_vm14 = vcmp.eq.f32.partialorder %v3419_v24, 8.507059e+37 }
 0x9ae   :  { %v4123_v15 = vpop.eup %4122 }
 0x9af   :  { %v3429_v11 = vadd.f32 1.0, %v4123_v15 }
 0x9b0   :  { %v4125_v18 = vpop.eup %4124 }
 0x9b1   :  { %v4127_v2 = vpop.eup %4126  ;;  %v3392_v32 = vmul.f32 %v4125_v18, %v3390_v37  ;;  %4128 = vrcp.f32 %v3429_v11  ;;  %vm3397_vm7 = vweird.f32 %v4125_v18  ;;  %v3441_v6 = vand.u32 2147483648, %v3429_v11 }
 0x9b2   :  { %v3411_v27 = vmul.f32 %v4127_v2, %v3409_v29  ;;  %4130 = vtanh.f32 %v3385_v60  ;;  %vm3416_vm8 = vweird.f32 %v4127_v2  ;;  %vm3398_vm11 = vmor %vm3396_vm9, %vm3397_vm7  ;;  %vm3435_vm1 = vweird.f32 %v3429_v11 }
 0x9b3   :  { %v3393_v10 = vsub.f32 1.0, %v3392_v32  ;;  %vm3417_vm12 = vmor %vm3415_vm10, %vm3416_vm8  ;;  %v3439_v21 = vand.u32 2147483647, %v3429_v11  ;;  %v3442_v39 = vor.u32 1.1754944e-38, %v3441_v6 }
 0x9b4   :  { %v3412_v35 = vsub.f32 1.0, %v3411_v27 }
 0x9b5   :  { %v3394_v44 = vmul.f32 %v4125_v18, %v3393_v10  ;;  %vm3440_vm3 = vcmp.eq.f32.partialorder %v3439_v21, 8.507059e+37 }
 0x9b6   :  { %v3413_v25 = vmul.f32 %v4127_v2, %v3412_v35 }
 0x9b7   :  { %v4129_v26 = vpop.eup %4128  ;;  %v3395_v61 = vadd.f32 %v4125_v18, %v3394_v44 }
 0x9b8   :  { %v3414_v36 = vadd.f32 %v4127_v2, %v3413_v25  ;;  %v3431_v20 = vmul.f32 %v4129_v26, %v3429_v11  ;;  %v4131_v7 = vpop.eup %4130  ;;  %vm3436_vm15 = vweird.f32 %v4129_v26 }
 0x9b9   :  { %v3399_v40 = vsel %vm3398_vm11, %v4125_v18, %v3395_v61  ;;  %vm3437_vm2 = vmor %vm3435_vm1, %vm3436_vm15 }
 0x9ba   :  { %v3404_v4 = vsel %vm3401_vm13, %v3403_v57, %v3399_v40  ;;  %v3418_v17 = vsel %vm3417_vm12, %v4127_v2, %v3414_v36  ;;  %v3432_v50 = vsub.f32 1.0, %v3431_v20 }
 0x9bb   :  { %v3423_v3 = vsel %vm3420_vm14, %v3422_v28, %v3418_v17  ;;  %v3446_v12 = vmul.f32 %v4131_v7, %v3404_v4 }
 0x9bc   :  { %v3445_v55 = vmul.f32 %v3423_v3, %v6306_v5  ;;  %v3433_v46 = vmul.f32 %v4129_v26, %v3432_v50  ;;  %v3451_v5 = vld [vmem:[#allocation2 + $0x26] ss:$8 sm:$0xf] }
 0x9bd   :  { %v3462_v45 = vperm.slane %v3451_v5, 0  ;;  %v3463_v23 = vperm.slane %v3451_v5, 1  ;;  %v3465_v54 = vperm.slane %v3451_v5, 3  ;;  %v3464_v15 = vperm.slane %v3451_v5, 2 }
 0x9be   :  { %v6378_v8 = vadd.f32 %v3446_v12, %v3445_v55  ;;  %v3434_v47 = vadd.f32 %v4129_v26, %v3433_v46 }
 0x9bf   :  { %v3470_v62 = vsel %vm293_vm0, %v3453_v30, %v3462_v45  ;;  %v3471_v0 = vsel %vm293_vm0, %v3454_v9, %v3463_v23  ;;  %v3473_v56 = vsel %vm293_vm0, %v3456_v51, %v3465_v54  ;;  %v3472_v60 = vsel %vm293_vm0, %v3455_v43, %v3464_v15  ;;  %v3621_v30 = vld [vmem:[#allocation2 + $0x7] ss:$8 sm:$0xf] }
 0x9c0   :  { %4132 = vtanh.f32 %v6378_v8  ;;  %v3438_v13 = vsel %vm3437_vm2, %v4129_v26, %v3434_v47  ;;  %v3804_v43 = vld [vmem:[%s6462_s7 + $0x60] sm:$0xff] }
 0x9c1   :  { %v3443_v1 = vsel %vm3440_vm3, %v3442_v39, %v3438_v13 }
 0x9c6   :  { %v4133_v41 = vpop.eup %4132 }
 0x9c7   :  { %v3449_v38 = vmul.f32 %v4133_v41, %v3443_v1 }
 0x9c9   :  { %3490 = vmatmul.f32.vlgmr.msra.gmra.mxu0 %v3449_v38  ;;  %3510 = vmatmul.f32.vlgmr.msra.gmra.mxu1 %v3449_v38 }
 0x9ca   :  { %3530 = vmatmul.f32.vlgmr.msra.gmra.mxu2 %v3449_v38  ;;  %3550 = vmatmul.f32.vlgmr.msra.gmra.mxu3 %v3449_v38 }
 0xa46   :  { %v3491_v63 = vpop.f32.mrf.mxu0  ;;  %v3511_v58 = vpop.f32.mrf.mxu1 }
 0xa47   :  { %v3554_v14 = vadd.f32 %v3491_v63, %v3470_v62  ;;  %v3555_v22 = vadd.f32 %v3511_v58, %v3471_v0  ;;  %v3624_v63 = vperm.slane %v3621_v30, 0  ;;  %v3625_v0 = vperm.slane %v3621_v30, 1 }
 0xa49   :  { %v3895_v19 = vmul.f32 -1.442695, %v3554_v14  ;;  %v3896_v53 = vmul.f32 -1.442695, %v3555_v22 }
 0xa4b   :  { %4134 = vpow2.f32 %v3895_v19 }
 0xa4c   :  { %4136 = vpow2.f32 %v3896_v53 }
 0xa4d   :  { %v3551_v31 = vpop.f32.mrf.mxu3  ;;  %v3531_v11 = vpop.f32.mrf.mxu2 }
 0xa4e   :  { %v3557_v16 = vadd.f32 %v3551_v31, %v3473_v56  ;;  %v3556_v27 = vadd.f32 %v3531_v11, %v3472_v60 }
 0xa50   :  { %v3897_v37 = vmul.f32 -1.442695, %v3557_v16  ;;  %v3807_v16 = vld [vmem:[%s6462_s7 + $0x78] sm:$0xff] }
 0xa51   :  { %v4135_v29 = vpop.eup %4134  ;;  %3812 = vmatpush.msra.mxu0 %v3807_v16 }
 0xa52   :  { %v4137_v42 = vpop.eup %4136  ;;  %v3561_v33 = vadd.f32 1.0, %v4135_v29  ;;  %4138 = vpow2.f32 %v3897_v37  ;;  %v3806_v37 = vld [vmem:[%s6462_s7 + $0x70] sm:$0xff]  ;;  %v3627_v29 = vperm.slane %v3621_v30, 3 }
 0xa53   :  { %v3580_v49 = vadd.f32 1.0, %v4137_v42  ;;  %v3805_v42 = vld [vmem:[%s6462_s7 + $0x68] sm:$0xff]  ;;  %3813 = vmatpush.msra.mxu0 %v3806_v37 }
 0xa54   :  { %4140 = vrcp.f32 %v3561_v33  ;;  %v3573_v52 = vand.u32 2147483648, %v3561_v33  ;;  %v3571_v26 = vand.u32 2147483647, %v3561_v33  ;;  %vm3567_vm6 = vweird.f32 %v3561_v33 }
 0xa55   :  { %4142 = vrcp.f32 %v3580_v49  ;;  %v3592_v25 = vand.u32 2147483648, %v3580_v49  ;;  %v3590_v57 = vand.u32 2147483647, %v3580_v49  ;;  %vm3586_vm7 = vweird.f32 %v3580_v49  ;;  %3814 = vmatpush.msra.mxu0 %v3805_v42 }
 0xa56   :  { %v3574_v28 = vor.u32 1.1754944e-38, %v3573_v52  ;;  %vm3572_vm10 = vcmp.eq.f32.partialorder %v3571_v26, 8.507059e+37 }
 0xa57   :  { %v3593_v4 = vor.u32 1.1754944e-38, %v3592_v25  ;;  %vm3591_vm11 = vcmp.eq.f32.partialorder %v3590_v57, 8.507059e+37  ;;  %3815 = vmatpush.msra.mxu0 %v3804_v43 }
 0xa58   :  { %v4139_v18 = vpop.eup %4138 }
 0xa59   :  { %v3600_v2 = vadd.f32 1.0, %v4139_v18  ;;  %v3803_v18 = vld [vmem:[%s6462_s7 + $0x58] sm:$0xff] }
 0xa5a   :  { %v4141_v32 = vpop.eup %4140  ;;  %3816 = vmatpush.msra.mxu0 %v3803_v18 }
 0xa5b   :  { %v4143_v10 = vpop.eup %4142  ;;  %v3563_v35 = vmul.f32 %v4141_v32, %v3561_v33  ;;  %4144 = vrcp.f32 %v3600_v2  ;;  %vm3568_vm4 = vweird.f32 %v4141_v32  ;;  %v3612_v41 = vand.u32 2147483648, %v3600_v2 }
 0xa5c   :  { %v3582_v48 = vmul.f32 %v4143_v10, %v3580_v49  ;;  %4146 = vtanh.f32 %v3556_v27  ;;  %vm3587_vm5 = vweird.f32 %v4143_v10  ;;  %vm3569_vm8 = vmor %vm3567_vm6, %vm3568_vm4  ;;  %vm3606_vm13 = vweird.f32 %v3600_v2  ;;  %v3802_v27 = vld [vmem:[%s6462_s7 + $0x50] sm:$0xff] }
 0xa5d   :  { %v3564_v34 = vsub.f32 1.0, %v3563_v35  ;;  %vm3588_vm9 = vmor %vm3586_vm7, %vm3587_vm5  ;;  %v3610_v1 = vand.u32 2147483647, %v3600_v2  ;;  %v3613_v5 = vor.u32 1.1754944e-38, %v3612_v41  ;;  %v3801_v35 = vld [vmem:[%s6462_s7 + $0x48] sm:$0xff]  ;;  %3817 = vmatpush.msra.mxu0 %v3802_v27 }
 0xa5e   :  { %v3583_v44 = vsub.f32 1.0, %v3582_v48 }
 0xa5f   :  { %v3565_v24 = vmul.f32 %v4141_v32, %v3564_v34  ;;  %vm3611_vm15 = vcmp.eq.f32.partialorder %v3610_v1, 8.507059e+37  ;;  %v3800_v34 = vld [vmem:[%s6462_s7 + $0x40] sm:$0xff]  ;;  %3818 = vmatpush.msra.mxu0 %v3801_v35 }
 0xa60   :  { %v3584_v61 = vmul.f32 %v4143_v10, %v3583_v44  ;;  %v3626_v44 = vperm.slane %v3621_v30, 2 }
 0xa61   :  { %v4145_v36 = vpop.eup %4144  ;;  %v3566_v20 = vadd.f32 %v4141_v32, %v3565_v24  ;;  %v3799_v24 = vld [vmem:[%s6462_s7 + $0x38] sm:$0xff]  ;;  %3819 = vmatpush.msra.mxu0 %v3800_v34 }
 0xa62   :  { %v3585_v40 = vadd.f32 %v4143_v10, %v3584_v61  ;;  %v3602_v7 = vmul.f32 %v4145_v36, %v3600_v2  ;;  %v4147_v50 = vpop.eup %4146  ;;  %vm3607_vm12 = vweird.f32 %v4145_v36 }
 0xa63   :  { %v3570_v17 = vsel %vm3569_vm8, %v4141_v32, %v3566_v20  ;;  %vm3608_vm14 = vmor %vm3606_vm13, %vm3607_vm12  ;;  %v3798_v20 = vld [vmem:[%s6462_s7 + $0x30] sm:$0xff]  ;;  %3820 = vmatpush.msra.mxu0 %v3799_v24  ;;  %vm3832_vm12 = vcmask 41984  }
 0xa64   :  { %v3575_v3 = vsel %vm3572_vm10, %v3574_v28, %v3570_v17  ;;  %v3589_v12 = vsel %vm3588_vm9, %v4143_v10, %v3585_v40  ;;  %v3603_v55 = vsub.f32 1.0, %v3602_v7 }
 0xa65   :  { %v3594_v46 = vsel %vm3591_vm11, %v3593_v4, %v3589_v12  ;;  %v3617_v47 = vmul.f32 %v4147_v50, %v3575_v3  ;;  %v3797_v4 = vld [vmem:[%s6462_s7 + $0x28] sm:$0xff]  ;;  %3821 = vmatpush.msra.mxu0 %v3798_v20  ;;  %v3796_v12 = vld [vmem:[%s6462_s7 + $0x20] sm:$0xff] }
 0xa66   :  { %v3616_v6 = vmul.f32 %v3594_v46, %v6378_v8  ;;  %v3604_v21 = vmul.f32 %v4145_v36, %v3603_v55  ;;  %v3622_v8 = vld [vmem:[#allocation2 + $0x27] ss:$8 sm:$0xf] }
 0xa67   :  { %v3633_v9 = vperm.slane %v3622_v8, 0  ;;  %v3634_v62 = vperm.slane %v3622_v8, 1  ;;  %v3636_v31 = vperm.slane %v3622_v8, 3  ;;  %v3635_v48 = vperm.slane %v3622_v8, 2  ;;  %3822 = vmatpush.msra.mxu0 %v3797_v4 }
 0xa68   :  { %v6386_v13 = vadd.f32 %v3617_v47, %v3616_v6  ;;  %v3605_v39 = vadd.f32 %v4145_v36, %v3604_v21 }
 0xa69   :  { %v3641_v58 = vsel %vm293_vm0, %v3624_v63, %v3633_v9  ;;  %v3642_v22 = vsel %vm293_vm0, %v3625_v0, %v3634_v62  ;;  %v3644_v33 = vsel %vm293_vm0, %v3627_v29, %v3636_v31  ;;  %v3643_v26 = vsel %vm293_vm0, %v3626_v44, %v3635_v48  ;;  %3823 = vmatpush.msra.mxu0 %v3796_v12  ;;  %v3793_v0 = vld [vmem:[%s6462_s7 + $0x8] sm:$0xff] }
 0xa6a   :  { %4148 = vtanh.f32 %v6386_v13  ;;  %v3609_v38 = vsel %vm3608_vm14, %v4145_v36, %v3605_v39  ;;  %v3795_v39 = vld [vmem:[%s6462_s7 + $0x18] sm:$0xff] }
 0xa6b   :  { %v3614_v45 = vsel %vm3611_vm15, %v3613_v5, %v3609_v38  ;;  %3824 = vmatpush.msra.mxu0 %v3795_v39 }
 0xa70   :  { %v4149_v59 = vpop.eup %4148 }
 0xa71   :  { %v3620_v23 = vmul.f32 %v4149_v59, %v3614_v45  ;;  %v3794_v45 = vld [vmem:[%s6462_s7 + $0x10] sm:$0xff] }
 0xa72   :  { %3825 = vmatpush.msra.mxu0 %v3794_v45 }
 0xa73   :  { %3661 = vmatmul.f32.vlgmr.msrb.gmra.mxu0 %v3620_v23  ;;  %3681 = vmatmul.f32.vlgmr.msrb.gmra.mxu1 %v3620_v23 }
 0xa74   :  { %3701 = vmatmul.f32.vlgmr.msrb.gmra.mxu2 %v3620_v23  ;;  %3721 = vmatmul.f32.vlgmr.msrb.gmra.mxu3 %v3620_v23 }
 0xa75   :  { %3826 = vmatpush.msra.mxu0 %v3793_v0 }
 0xaf0   :  { %v3662_v14 = vpop.f32.mrf.mxu0  ;;  %v3682_v19 = vpop.f32.mrf.mxu1 }
 0xaf1   :  { %v3725_v53 = vadd.f32 %v3662_v14, %v3641_v58  ;;  %v3726_v54 = vadd.f32 %v3682_v19, %v3642_v22  ;;  %v3792_v19 = vld [vmem:[%s6462_s7] sm:$0xff] }
 0xaf2   :  { %3827 = vmatpush.msra.mxu0 %v3792_v19 }
 0xaf3   :  { %v3898_v51 = vmul.f32 -1.442695, %v3725_v53  ;;  %v3899_v56 = vmul.f32 -1.442695, %v3726_v54 }
 0xaf5   :  { %4150 = vpow2.f32 %v3898_v51 }
 0xaf6   :  { %4152 = vpow2.f32 %v3899_v56 }
 0xaf7   :  { %v3722_v49 = vpop.f32.mrf.mxu3  ;;  %v3702_v52 = vpop.f32.mrf.mxu2 }
 0xaf8   :  { %v3728_v15 = vadd.f32 %v3722_v49, %v3644_v33  ;;  %v3727_v36 = vadd.f32 %v3702_v52, %v3643_v26  ;;  %v3909_v33 = vld [vmem:[%s6463_s8] ss:$0 sm:$0xff] }
 0xafa   :  { %v3900_v11 = vmul.f32 -1.442695, %v3728_v15 }
 0xafb   :  { %v4151_v60 = vpop.eup %4150 }
 0xafc   :  { %v4153_v2 = vpop.eup %4152  ;;  %v3732_v32 = vadd.f32 1.0, %v4151_v60  ;;  %4154 = vpow2.f32 %v3900_v11 }
 0xafd   :  { %v3751_v10 = vadd.f32 1.0, %v4153_v2 }
 0xafe   :  { %4156 = vrcp.f32 %v3732_v32  ;;  %v3744_v3 = vand.u32 2147483648, %v3732_v32  ;;  %v3742_v47 = vand.u32 2147483647, %v3732_v32  ;;  %vm3738_vm2 = vweird.f32 %v3732_v32 }
 0xaff   :  { %4158 = vrcp.f32 %v3751_v10  ;;  %v3763_v55 = vand.u32 2147483648, %v3751_v10  ;;  %v3761_v21 = vand.u32 2147483647, %v3751_v10  ;;  %vm3757_vm3 = vweird.f32 %v3751_v10 }
 0xb00   :  { %v3745_v38 = vor.u32 1.1754944e-38, %v3744_v3  ;;  %vm3743_vm6 = vcmp.eq.f32.partialorder %v3742_v47, 8.507059e+37 }
 0xb01   :  { %v3764_v23 = vor.u32 1.1754944e-38, %v3763_v55  ;;  %vm3762_vm7 = vcmp.eq.f32.partialorder %v3761_v21, 8.507059e+37 }
 0xb02   :  { %v4155_v25 = vpop.eup %4154 }
 0xb03   :  { %v6420_v61 = vadd.f32 1.0, %v4155_v25 }
 0xb04   :  { %v4157_v57 = vpop.eup %4156 }
 0xb05   :  { %v4159_v28 = vpop.eup %4158  ;;  %v3734_v40 = vmul.f32 %v4157_v57, %v3732_v32  ;;  %4160 = vrcp.f32 %v6420_v61  ;;  %vm3739_vm0 = vweird.f32 %v4157_v57  ;;  %v3783_v56 = vand.u32 2147483648, %v6420_v61 }
 0xb06   :  { %v3753_v7 = vmul.f32 %v4159_v28, %v3751_v10  ;;  %4162 = vtanh.f32 %v3727_v36  ;;  %vm3758_vm1 = vweird.f32 %v4159_v28  ;;  %vm3740_vm4 = vmor %vm3738_vm2, %vm3739_vm0  ;;  %vm3777_vm9 = vweird.f32 %v6420_v61 }
 0xb07   :  { %v3735_v17 = vsub.f32 1.0, %v3734_v40  ;;  %vm3759_vm5 = vmor %vm3757_vm3, %vm3758_vm1  ;;  %v3781_v31 = vand.u32 2147483647, %v6420_v61 }
 0xb08   :  { %v3754_v50 = vsub.f32 1.0, %v3753_v7 }
 0xb09   :  { %v3736_v46 = vmul.f32 %v4157_v57, %v3735_v17  ;;  %vm3782_vm11 = vcmp.eq.f32.partialorder %v3781_v31, 8.507059e+37 }
 0xb0a   :  { %v3755_v6 = vmul.f32 %v4159_v28, %v3754_v50 }
 0xb0b   :  { %v4161_v41 = vpop.eup %4160  ;;  %v3737_v1 = vadd.f32 %v4157_v57, %v3736_v46 }
 0xb0c   :  { %v3756_v5 = vadd.f32 %v4159_v28, %v3755_v6  ;;  %v3773_v59 = vmul.f32 %v4161_v41, %v6420_v61  ;;  %v4163_v30 = vpop.eup %4162  ;;  %vm3778_vm8 = vweird.f32 %v4161_v41 }
 0xb0d   :  { %v3741_v8 = vsel %vm3740_vm4, %v4157_v57, %v3737_v1  ;;  %vm3779_vm10 = vmor %vm3777_vm9, %vm3778_vm8 }
 0xb0e   :  { %v3746_v9 = vsel %vm3743_vm6, %v3745_v38, %v3741_v8  ;;  %v3760_v62 = vsel %vm3759_vm5, %v4159_v28, %v3756_v5  ;;  %v3774_v63 = vsub.f32 1.0, %v3773_v59 }
 0xb0f   :  { %v3765_v58 = vsel %vm3762_vm7, %v3764_v23, %v3760_v62  ;;  %v3788_v14 = vmul.f32 %v4163_v30, %v3746_v9 }
 0xb10   :  { %v3787_v22 = vmul.f32 %v3765_v58, %v6386_v13  ;;  %v3775_v53 = vmul.f32 %v4161_v41, %v3774_v63  ;;  %v3784_v13 = vor.u32 1.1754944e-38, %v3783_v56 }
 0xb12   :  { %v3789_v54 = vadd.f32 %v3788_v14, %v3787_v22  ;;  %v3776_v51 = vadd.f32 %v4161_v41, %v3775_v53 }
 0xb14   :  { %4164 = vtanh.f32 %v3789_v54  ;;  %v3780_v16 = vsel %vm3779_vm10, %v4161_v41, %v3776_v51 }
 0xb15   :  { %v3785_v29 = vsel %vm3782_vm11, %v3784_v13, %v3780_v16 }
 0xb1a   :  { %v4165_v37 = vpop.eup %4164 }
 0xb1b   :  { %v3791_v42 = vmul.f32 %v4165_v37, %v3785_v29 }
 0xb1d   :  { %3828 = vmatmul.f32.vlgmr.msra.gmra.mxu0 %v3791_v42 }
 0xb9a   :  { %v3829_v49 = vpop.f32.mrf.mxu0 }
 0xb9b   :  { %v3830_v15 = vadd.f32 %v3909_v33, %v3829_v49 }
 0xb9d   :  { %3833 = vst.msk [vmem:[#allocation12] sm:$0x3] %vm3832_vm12, %v3830_v15 }
 0xb9e   :  { %3844 = dma.vmem_to_hbm [thread:$0]  %s3840_s17, 32, %s3842_s20, [#allocation6]  }
 0xb9f   :  { %4356 = dma.done.wait [#allocation6], 32  }
 0xba0   :  { %4357 = vsyncadd [#allocation6], 4294967264 }
 0xba1   :  { %3849 = vsyncpa [#allocation5], 1 }
 0xba2   :  { %3850 = vsyncpa [#allocation8], 1 }
 0xba3   :  { %3851 = vsyncpa [#allocation11], 1 }
 0xba4   :  { %3852 = vsyncpa [#allocation6], 1 }

</bundles_post_ra>
